<compile_context>
chip_gen: v7x
topology: tpu7x:2x2x1
jax: 0.10.0
libtpu: 0.0.40
codegen_flags: <defaults>
</compile_context>

<pallas_src>
import jax
import jax.numpy as jnp
from jax.experimental import pallas as pl
from jax.experimental.pallas import tpu as pltpu

K = 4          # ConvTranspose kernel size
STRIDE = 2
PAD = 1
BN_EPS = 1e-5
_VMEM_LIMIT = 32 * 1024 * 1024   # explicit scoped-VMEM budget (<= every chip)


def _pick_tile(m, preferred=(1024, 512, 256, 128)):
    """Largest row tile from `preferred` (multiples of 128) dividing m, else m.
    Sweep per generation: larger on v5e/v6e (128 MiB VMEM), smaller on v7x."""
    for t in preferred:
        if m % t == 0:
            return t
    return m


# ----------------------------------------------------------------------------
# Pallas kernels
# ----------------------------------------------------------------------------
def _linear_kernel(z_ref, w_ref, b_ref, o_ref):
    acc = jnp.dot(z_ref[...], w_ref[...], preferred_element_type=jnp.float32)
    o_ref[...] = (acc + b_ref[...]).astype(o_ref.dtype)


def linear_pallas(z, w, b):
    """z:(N,Z) @ w:(Z,F) + b:(1,F) -> (N,F), tiled over the F axis."""
    N, Z = z.shape
    F = w.shape[1]
    tf = _pick_tile(F, preferred=(512, 256, 128))
    return pl.pallas_call(
        _linear_kernel,
        out_shape=jax.ShapeDtypeStruct((N, F), jnp.float32),
        grid=(F // tf,),
        in_specs=[
            pl.BlockSpec((N, Z), lambda j: (0, 0)),
            pl.BlockSpec((Z, tf), lambda j: (0, j)),
            pl.BlockSpec((1, tf), lambda j: (0, j)),
        ],
        out_specs=pl.BlockSpec((N, tf), lambda j: (0, j)),
        compiler_params=pltpu.CompilerParams(
            dimension_semantics=("parallel",),
            vmem_limit_bytes=_VMEM_LIMIT),
    )(z, w, b)


def _deconv_stats_kernel(taps_ref, w_ref, pre_ref, psum_ref, psq_ref):
    # ONE deep MXU matmul per (phase, M-tile): (TM, 4*Cin) @ (4*Cin, Cout).
    acc = jnp.dot(taps_ref[0], w_ref[0], preferred_element_type=jnp.float32)
    pre_ref[...] = acc[None]

    # BatchNorm pass 1: per-channel partial sum / sum-of-squares, accumulated
    # across the inner ("arbitrary") M-tile axis into a resident output block.
    @pl.when(pl.program_id(1) == 0)
    def _init():
        psum_ref[...] = jnp.zeros_like(psum_ref)
        psq_ref[...] = jnp.zeros_like(psq_ref)

    psum_ref[...] += jnp.sum(acc, axis=0, keepdims=True)[None]
    psq_ref[...] += jnp.sum(acc * acc, axis=0, keepdims=True)[None]


def deconv_phase_matmul_pallas(taps, w_ph, tm):
    """taps:(4, M, 4*Cin), w_ph:(4, 4*Cin, Cout)
       -> pre:(4, M, Cout), psum:(4, 1, Cout), psq:(4, 1, Cout)."""
    P, M, KC = taps.shape
    Cout = w_ph.shape[-1]
    n_m = M // tm
    return pl.pallas_call(
        _deconv_stats_kernel,
        out_shape=(jax.ShapeDtypeStruct((P, M, Cout), jnp.float32),
                   jax.ShapeDtypeStruct((P, 1, Cout), jnp.float32),
                   jax.ShapeDtypeStruct((P, 1, Cout), jnp.float32)),
        grid=(P, n_m),
        in_specs=[
            pl.BlockSpec((1, tm, KC), lambda p, m: (p, m, 0)),
            pl.BlockSpec((1, KC, Cout), lambda p, m: (p, 0, 0)),
        ],
        out_specs=(pl.BlockSpec((1, tm, Cout), lambda p, m: (p, m, 0)),
                   pl.BlockSpec((1, 1, Cout), lambda p, m: (p, 0, 0)),
                   pl.BlockSpec((1, 1, Cout), lambda p, m: (p, 0, 0))),
        compiler_params=pltpu.CompilerParams(
            dimension_semantics=("parallel", "arbitrary"),
            vmem_limit_bytes=_VMEM_LIMIT),
    )(taps, w_ph)


def _affine_relu_kernel(pre_ref, scale_ref, shift_ref, o_ref):
    # BatchNorm pass 2 folded into scale/shift, fused with ReLU.
    o_ref[...] = jnp.maximum(pre_ref[...] * scale_ref[...] + shift_ref[...], 0.0)


def affine_relu_pallas(pre, scale, shift, tm):
    """pre:(4, M, C) * scale:(1,1,C) + shift:(1,1,C), ReLU -> (4, M, C)."""
    P, M, C = pre.shape
    n_m = M // tm
    return pl.pallas_call(
        _affine_relu_kernel,
        out_shape=jax.ShapeDtypeStruct((P, M, C), jnp.float32),
        grid=(P, n_m),
        in_specs=[
            pl.BlockSpec((1, tm, C), lambda p, m: (p, m, 0)),
            pl.BlockSpec((1, 1, C), lambda p, m: (0, 0, 0)),
            pl.BlockSpec((1, 1, C), lambda p, m: (0, 0, 0)),
        ],
        out_specs=pl.BlockSpec((1, tm, C), lambda p, m: (p, m, 0)),
        compiler_params=pltpu.CompilerParams(
            dimension_semantics=("parallel", "parallel"),
            vmem_limit_bytes=_VMEM_LIMIT),
    )(pre, scale, shift)


def _deconv_tanh_kernel(taps_ref, w_ref, o_ref):
    acc = jnp.dot(taps_ref[0], w_ref[0], preferred_element_type=jnp.float32)
    o_ref[...] = jnp.tanh(acc)[None]


def deconv_tanh_pallas(taps, w_ph, tm):
    """Final (no-BN) layer: conv + tanh fused.  taps:(4,M,4*Cin) -> (4,M,Cout)."""
    P, M, KC = taps.shape
    Cout = w_ph.shape[-1]
    n_m = M // tm
    return pl.pallas_call(
        _deconv_tanh_kernel,
        out_shape=jax.ShapeDtypeStruct((P, M, Cout), jnp.float32),
        grid=(P, n_m),
        in_specs=[
            pl.BlockSpec((1, tm, KC), lambda p, m: (p, m, 0)),
            pl.BlockSpec((1, KC, Cout), lambda p, m: (p, 0, 0)),
        ],
        out_specs=pl.BlockSpec((1, tm, Cout), lambda p, m: (p, m, 0)),
        compiler_params=pltpu.CompilerParams(
            dimension_semantics=("parallel", "parallel"),
            vmem_limit_bytes=_VMEM_LIMIT),
    )(taps, w_ph)


# ----------------------------------------------------------------------------
# Host-side glue (pure data movement / weight packing) for the phase form
#
# Sub-pixel decomposition of ConvTranspose2d(k=4, s=2, p=1):
#   out[n, 2i+ph, 2j+pw, :] = sum_{dh,dw in {0,1}}
#       x_pad[n, i+ph+dh, j+pw+dw, :] @ W[:, :, 3-ph-2*dh, 3-pw-2*dw]
# with x_pad = zero-pad(x, 1 each side).  4 taps / output pixel (vs 16 with the
# dilate+pad formulation), no zero multiplies.
# ----------------------------------------------------------------------------
def phase_taps(x_nhwc):
    """x:(N,H,W,Cin) -> (4, N*H*W, 4*Cin); phase p = ph*2+pw, tap order (dh,dw,cin)."""
    N, H, W, Cin = x_nhwc.shape
    xp = jnp.pad(x_nhwc, ((0, 0), (1, 1), (1, 1), (0, 0)))
    phases = []
    for ph in range(2):
        for pw in range(2):
            taps = []
            for dh in range(2):
                for dw in range(2):
                    taps.append(xp[:, ph + dh:ph + dh + H, pw + dw:pw + dw + W, :])
            t = jnp.concatenate(taps, axis=-1)            # (N, H, W, 4*Cin)
            phases.append(t.reshape(N * H * W, 4 * Cin))
    return jnp.stack(phases, axis=0)                       # (4, M, 4*Cin)


def phase_weights(w_pt):
    """PyTorch ConvTranspose2d weight (Cin, Cout, 4, 4) -> (4, 4*Cin, Cout),
    row order (dh, dw, cin) matching phase_taps."""
    ws = []
    for ph in range(2):
        for pw in range(2):
            taps = []
            for dh in range(2):
                for dw in range(2):
                    kh = (3 - ph) - 2 * dh
                    kw = (3 - pw) - 2 * dw
                    taps.append(w_pt[:, :, kh, kw])        # (Cin, Cout)
            ws.append(jnp.concatenate(taps, axis=0))       # (4*Cin, Cout)
    return jnp.stack(ws, axis=0)                            # (4, 4*Cin, Cout)


def interleave_phases_nhwc(y, N, H, W, C):
    """y:(4, N*H*W, C) -> (N, 2H, 2W, C)."""
    y = y.reshape(2, 2, N, H, W, C)                        # (ph, pw, n, i, j, c)
    y = jnp.transpose(y, (2, 3, 0, 4, 1, 5))               # (n, i, ph, j, pw, c)
    return y.reshape(N, 2 * H, 2 * W, C)


def interleave_phases_nchw(y, N, H, W, C):
    """y:(4, N*H*W, C) -> (N, C, 2H, 2W)  (final PyTorch NCHW output)."""
    y = y.reshape(2, 2, N, H, W, C)                        # (ph, pw, n, i, j, c)
    y = jnp.transpose(y, (2, 5, 3, 0, 4, 1))               # (n, c, i, ph, j, pw)
    return y.reshape(N, C, 2 * H, 2 * W)


def fc_nhwc_perm(c8):
    """Column permutation so fc output reshapes directly to NHWC (N,4,4,C8)."""
    h = jnp.arange(4).reshape(4, 1, 1)
    w = jnp.arange(4).reshape(1, 4, 1)
    c = jnp.arange(c8).reshape(1, 1, c8)
    return (c * 16 + h * 4 + w).reshape(-1)


# ----------------------------------------------------------------------------
# Parameters (PyTorch layouts) + full generator forward
# ----------------------------------------------------------------------------
def init_params(key, z_size, conv_dim):
    chans = [conv_dim * 8, conv_dim * 4, conv_dim * 2, conv_dim, 3]
    keys = jax.random.split(key, 2 + 4)
    params = {
        "fc_w": 0.02 * jax.random.normal(keys[0], (z_size, conv_dim * 8 * 4 * 4),
                                         jnp.float32),
        "fc_b": 0.02 * jax.random.normal(keys[1], (1, conv_dim * 8 * 4 * 4),
                                         jnp.float32),
    }
    for li in range(4):
        cin, cout = chans[li], chans[li + 1]
        params[f"w{li}"] = 0.02 * jax.random.normal(keys[2 + li],
                                                    (cin, cout, K, K), jnp.float32)
        if li < 3:
            params[f"gamma{li}"] = jnp.ones((cout,), jnp.float32)
            params[f"beta{li}"] = jnp.zeros((cout,), jnp.float32)
    return params


def svhn_generator_forward(z, params, conv_dim, use_pallas=True):
    if not use_pallas:
        return _reference_forward(z, params, conv_dim)

    N = z.shape[0]
    chans = [conv_dim * 8, conv_dim * 4, conv_dim * 2, conv_dim, 3]
    C8 = conv_dim * 8

    # fc with the NCHW->NHWC permutation baked into the weight columns
    # (one-time host packing; removes the transpose HBM round trip).
    perm = fc_nhwc_perm(C8)
    h = linear_pallas(z, params["fc_w"][:, perm], params["fc_b"][:, perm])
    x = h.reshape(N, 4, 4, C8)                              # already NHWC

    Hcur = 4
    out = None
    for li in range(4):
        Cin, Cout = chans[li], chans[li + 1]
        M = N * Hcur * Hcur
        tm = _pick_tile(M)
        taps = phase_taps(x)                                # (4, M, 4*Cin)
        w_ph = phase_weights(params[f"w{li}"])              # (4, 4*Cin, Cout)

        if li < 3:
            pre, psum, psq = deconv_phase_matmul_pallas(taps, w_ph, tm)
            # fold global (training-mode, biased) batch stats into scale/shift
            cnt = float(4 * M)                              # N * (2H) * (2W)
            mean = jnp.sum(psum[:, 0, :], axis=0) / cnt
            var = jnp.maximum(jnp.sum(psq[:, 0, :], axis=0) / cnt - mean * mean, 0.0)
            inv = jax.lax.rsqrt(var + BN_EPS)
            gamma, beta = params[f"gamma{li}"], params[f"beta{li}"]
            scale = (gamma * inv).reshape(1, 1, Cout)
            shift = (beta - mean * gamma * inv).reshape(1, 1, Cout)
            y = affine_relu_pallas(pre, scale, shift, tm)   # (4, M, Cout)
            x = interleave_phases_nhwc(y, N, Hcur, Hcur, Cout)
            Hcur *= 2
        else:
            y = deconv_tanh_pallas(taps, w_ph, tm)          # (4, M, 3)
            out = interleave_phases_nchw(y, N, Hcur, Hcur, Cout)

    return out                                              # (N, 3, 64, 64) NCHW


# ----------------------------------------------------------------------------
# Pure-jnp reference (PyTorch-faithful, independent formulation:
# dilate + pad + full 4x4 im2col + centered biased batch-norm)
# ----------------------------------------------------------------------------
def _dilate_and_pad(x_nhwc, stride, pad_each_side):
    N, H, W, C = x_nhwc.shape
    y = jnp.zeros((N, (H - 1) * stride + 1, (W - 1) * stride + 1, C), x_nhwc.dtype)
    y = y.at[:, ::stride, ::stride, :].set(x_nhwc)
    p = pad_each_side
    return jnp.pad(y, ((0, 0), (p, p), (p, p), (0, 0)))


def _im2col_taps(x_pad, Ho, Wo):
    Cin = x_pad.shape[-1]
    taps = []
    for kh in range(K):
        for kw in range(K):
            taps.append(x_pad[:, kh:kh + Ho, kw:kw + Wo, :].reshape(-1, Cin))
    return jnp.stack(taps, axis=0)


def _convtranspose_weight_to_taps(w_pt):
    w = jnp.transpose(w_pt, (2, 3, 0, 1))     # (K, K, Cin, Cout)
    w = w[::-1, ::-1]                         # spatial flip
    return w.reshape(K * K, w.shape[2], w.shape[3])


def _reference_forward(z, params, conv_dim):
    N = z.shape[0]
    chans = [conv_dim * 8, conv_dim * 4, conv_dim * 2, conv_dim, 3]
    h = z @ params["fc_w"] + params["fc_b"]
    x = h.reshape(N, conv_dim * 8, 4, 4)
    x = jnp.transpose(x, (0, 2, 3, 1))        # NHWC
    Hcur = 4
    for li in range(4):
        cout = chans[li + 1]
        Ho = Hcur * STRIDE
        x_pad = _dilate_and_pad(x, STRIDE, K - 1 - PAD)
        taps = _im2col_taps(x_pad, Ho, Ho)
        w_taps = _convtranspose_weight_to_taps(params[f"w{li}"])
        acc = jnp.einsum("kmc,kcd->md", taps, w_taps)
        if li < 3:
            mean = jnp.mean(acc, axis=0, keepdims=True)
            var = jnp.mean(jnp.square(acc - mean), axis=0, keepdims=True)
            acc = (acc - mean) * jax.lax.rsqrt(var + BN_EPS)
            acc = acc * params[f"gamma{li}"] + params[f"beta{li}"]
            acc = jnp.maximum(acc, 0.0)
        else:
            acc = jnp.tanh(acc)
        x = acc.reshape(N, Ho, Ho, cout)
        Hcur = Ho
    return jnp.transpose(x, (0, 3, 1, 2))     # NCHW


# ----------------------------------------------------------------------------
if __name__ == "__main__":
    BATCH = 2
    Z_SIZE = 16
    CONV_DIM = 4   # small conv_dim for the demo

    key = jax.random.PRNGKey(0)
    pkey, zkey = jax.random.split(key)
    params = init_params(pkey, Z_SIZE, CONV_DIM)
    z = jax.random.normal(zkey, (BATCH, Z_SIZE), jnp.float32)

    fwd = jax.jit(svhn_generator_forward, static_argnums=(2, 3))
    out = jax.block_until_ready(fwd(z, params, CONV_DIM, True))
    assert out.shape == (BATCH, 3, 64, 64), out.shape

    # check against an independent PyTorch-faithful formulation
    ref = jax.block_until_ready(
        svhn_generator_forward(z, params, CONV_DIM, use_pallas=False))
    err = float(jnp.max(jnp.abs(out - ref)))
    assert err < 2e-3, err

    print("KERNEL_OK")
</pallas_src>

<mosaic_0001>
module attributes {stable_mosaic.version = 11 : i64} {
  func.func @_linear_kernel(%arg0: i32, %arg1: memref<2x16xf32, #tpu.memory_space<vmem>>, %arg2: memref<16x512xf32, #tpu.memory_space<vmem>>, %arg3: memref<1x512xf32, #tpu.memory_space<vmem>>, %arg4: memref<2x512xf32, #tpu.memory_space<vmem>>) attributes {dimension_semantics = [#tpu.dimension_semantics<parallel>], iteration_bounds = array<i64: 1>, scalar_prefetch = 0 : i64, scratch_operands = 0 : i64, tpu.core_type = #tpu.core_type<tc>, window_params = [{pipeline_mode = #tpu.pipeline_mode<synchronous>, transform_indices = @transform_0, window_bounds = array<i64: 2, 16>}, {transform_indices = @transform_1, window_bounds = array<i64: 16, 512>}, {transform_indices = @transform_2, window_bounds = array<i64: 1, 512>}, {transform_indices = @transform_3, window_bounds = array<i64: 2, 512>}]} {
    %c0 = arith.constant 0 : index
    %c0_0 = arith.constant 0 : index
    %0 = vector.load %arg1[%c0, %c0_0] : memref<2x16xf32, #tpu.memory_space<vmem>>, vector<2x16xf32>
    %c0_1 = arith.constant 0 : index
    %c0_2 = arith.constant 0 : index
    %1 = vector.load %arg2[%c0_1, %c0_2] : memref<16x512xf32, #tpu.memory_space<vmem>>, vector<16x512xf32>
    %cst = arith.constant dense<0.000000e+00> : vector<2x512xf32>
    %2 = tpu.matmul %0, %1, %cst {dimension_numbers = #tpu.dot_dimension_numbers<[1], [0], [0], [1], [0, 0, 1, 1], [], []>} : vector<2x16xf32>, vector<16x512xf32>, vector<2x512xf32> -> vector<2x512xf32>
    %c0_3 = arith.constant 0 : index
    %c0_4 = arith.constant 0 : index
    %3 = vector.load %arg3[%c0_3, %c0_4] : memref<1x512xf32, #tpu.memory_space<vmem>>, vector<1x512xf32>
    %4 = vector.broadcast %3 : vector<1x512xf32> to vector<2x512xf32>
    %5 = arith.addf %2, %4 : vector<2x512xf32>
    %c0_5 = arith.constant 0 : index
    %c0_6 = arith.constant 0 : index
    %6 = vector.load %arg4[%c0_5, %c0_6] : memref<2x512xf32, #tpu.memory_space<vmem>>, vector<2x512xf32>
    tpu.vector_store %arg4[%c0_5, %c0_6], %5 {strides = array<i32>} : memref<2x512xf32, #tpu.memory_space<vmem>>, vector<2x512xf32>,
    return
  }
  func.func @transform_0(%arg0: i32) -> (i32, i32) {
    %c0_i32 = arith.constant 0 : i32
    %c0_i32_0 = arith.constant 0 : i32
    %c0_i32_1 = arith.constant 0 : i32
    return %c0_i32, %c0_i32_0 : i32, i32
  }
  func.func @transform_1(%arg0: i32) -> (i32, i32) {
    %c0_i32 = arith.constant 0 : i32
    %c0_i32_0 = arith.constant 0 : i32
    return %c0_i32, %arg0 : i32, i32
  }
  func.func @transform_2(%arg0: i32) -> (i32, i32) {
    %c0_i32 = arith.constant 0 : i32
    %c0_i32_0 = arith.constant 0 : i32
    return %c0_i32, %arg0 : i32, i32
  }
  func.func @transform_3(%arg0: i32) -> (i32, i32) {
    %c0_i32 = arith.constant 0 : i32
    %c0_i32_0 = arith.constant 0 : i32
    return %c0_i32, %arg0 : i32, i32
  }
}

module attributes {stable_mosaic.version = 11 : i64} {
  func.func @_deconv_stats_kernel(%arg0: i32, %arg1: i32, %arg2: memref<1x32x128xf32, #tpu.memory_space<vmem>>, %arg3: memref<1x128x16xf32, #tpu.memory_space<vmem>>, %arg4: memref<1x32x16xf32, #tpu.memory_space<vmem>>, %arg5: memref<1x1x16xf32, #tpu.memory_space<vmem>>, %arg6: memref<1x1x16xf32, #tpu.memory_space<vmem>>) attributes {dimension_semantics = [#tpu.dimension_semantics<parallel>, #tpu.dimension_semantics<arbitrary>], iteration_bounds = array<i64: 4, 1>, scalar_prefetch = 0 : i64, scratch_operands = 0 : i64, tpu.core_type = #tpu.core_type<tc>, window_params = [{transform_indices = @transform_0, window_bounds = array<i64: 1, 32, 128>}, {transform_indices = @transform_1, window_bounds = array<i64: 1, 128, 16>}, {transform_indices = @transform_2, window_bounds = array<i64: 1, 32, 16>}, {transform_indices = @transform_3, window_bounds = array<i64: 1, 1, 16>}, {transform_indices = @transform_4, window_bounds = array<i64: 1, 1, 16>}]} {
    %c0 = arith.constant 0 : index
    %c0_0 = arith.constant 0 : index
    %c0_1 = arith.constant 0 : index
    %0 = vector.load %arg2[%c0, %c0_0, %c0_1] : memref<1x32x128xf32, #tpu.memory_space<vmem>>, vector<1x32x128xf32>
    %1 = vector.shape_cast %0 : vector<1x32x128xf32> to vector<32x128xf32>
    %c0_2 = arith.constant 0 : index
    %c0_3 = arith.constant 0 : index
    %c0_4 = arith.constant 0 : index
    %2 = vector.load %arg3[%c0_2, %c0_3, %c0_4] : memref<1x128x16xf32, #tpu.memory_space<vmem>>, vector<1x128x16xf32>
    %3 = vector.shape_cast %2 : vector<1x128x16xf32> to vector<128x16xf32>
    %cst = arith.constant dense<0.000000e+00> : vector<32x16xf32>
    %4 = tpu.matmul %1, %3, %cst {dimension_numbers = #tpu.dot_dimension_numbers<[1], [0], [0], [1], [0, 0, 1, 1], [], []>} : vector<32x128xf32>, vector<128x16xf32>, vector<32x16xf32> -> vector<32x16xf32>
    %5 = vector.shape_cast %4 : vector<32x16xf32> to vector<1x32x16xf32>
    %c0_5 = arith.constant 0 : index
    %c0_6 = arith.constant 0 : index
    %c0_7 = arith.constant 0 : index
    %6 = vector.load %arg4[%c0_5, %c0_6, %c0_7] : memref<1x32x16xf32, #tpu.memory_space<vmem>>, vector<1x32x16xf32>
    tpu.vector_store %arg4[%c0_5, %c0_6, %c0_7], %5 {strides = array<i32>} : memref<1x32x16xf32, #tpu.memory_space<vmem>>, vector<1x32x16xf32>,
    %c0_i32 = arith.constant 0 : i32
    %7 = arith.cmpi eq, %arg1, %c0_i32 : i32
    %8 = arith.extui %7 : i1 to i32
    %c0_i32_8 = arith.constant 0 : i32
    %9 = arith.cmpi ne, %8, %c0_i32_8 : i32
    scf.if %9 {
      %cst_23 = arith.constant 0.000000e+00 : f32
      %23 = vector.broadcast %cst_23 : f32 to vector<1x1x16xf32>
      %c0_24 = arith.constant 0 : index
      %c0_25 = arith.constant 0 : index
      %c0_26 = arith.constant 0 : index
      %24 = vector.load %arg5[%c0_24, %c0_25, %c0_26] : memref<1x1x16xf32, #tpu.memory_space<vmem>>, vector<1x1x16xf32>
      tpu.vector_store %arg5[%c0_24, %c0_25, %c0_26], %23 {strides = array<i32>} : memref<1x1x16xf32, #tpu.memory_space<vmem>>, vector<1x1x16xf32>,
      %cst_27 = arith.constant 0.000000e+00 : f32
      %25 = vector.broadcast %cst_27 : f32 to vector<1x1x16xf32>
      %c0_28 = arith.constant 0 : index
      %c0_29 = arith.constant 0 : index
      %c0_30 = arith.constant 0 : index
      %26 = vector.load %arg6[%c0_28, %c0_29, %c0_30] : memref<1x1x16xf32, #tpu.memory_space<vmem>>, vector<1x1x16xf32>
      tpu.vector_store %arg6[%c0_28, %c0_29, %c0_30], %25 {strides = array<i32>} : memref<1x1x16xf32, #tpu.memory_space<vmem>>, vector<1x1x16xf32>,
    } else {
    }
    %c0_9 = arith.constant 0 : index
    %c0_10 = arith.constant 0 : index
    %c0_11 = arith.constant 0 : index
    %10 = vector.load %arg5[%c0_9, %c0_10, %c0_11] : memref<1x1x16xf32, #tpu.memory_space<vmem>>, vector<1x1x16xf32>
    %cst_12 = arith.constant dense<0.000000e+00> : vector<16xf32>
    %11 = vector.multi_reduction <add>, %4, %cst_12 [0] : vector<32x16xf32> to vector<16xf32>
    %12 = vector.shape_cast %11 : vector<16xf32> to vector<1x16xf32>
    %13 = vector.shape_cast %12 : vector<1x16xf32> to vector<1x1x16xf32>
    %14 = arith.addf %10, %13 : vector<1x1x16xf32>
    %c0_13 = arith.constant 0 : index
    %c0_14 = arith.constant 0 : index
    %c0_15 = arith.constant 0 : index
    %15 = vector.load %arg5[%c0_13, %c0_14, %c0_15] : memref<1x1x16xf32, #tpu.memory_space<vmem>>, vector<1x1x16xf32>
    tpu.vector_store %arg5[%c0_13, %c0_14, %c0_15], %14 {strides = array<i32>} : memref<1x1x16xf32, #tpu.memory_space<vmem>>, vector<1x1x16xf32>,
    %c0_16 = arith.constant 0 : index
    %c0_17 = arith.constant 0 : index
    %c0_18 = arith.constant 0 : index
    %16 = vector.load %arg6[%c0_16, %c0_17, %c0_18] : memref<1x1x16xf32, #tpu.memory_space<vmem>>, vector<1x1x16xf32>
    %17 = arith.mulf %4, %4 : vector<32x16xf32>
    %cst_19 = arith.constant dense<0.000000e+00> : vector<16xf32>
    %18 = vector.multi_reduction <add>, %17, %cst_19 [0] : vector<32x16xf32> to vector<16xf32>
    %19 = vector.shape_cast %18 : vector<16xf32> to vector<1x16xf32>
    %20 = vector.shape_cast %19 : vector<1x16xf32> to vector<1x1x16xf32>
    %21 = arith.addf %16, %20 : vector<1x1x16xf32>
    %c0_20 = arith.constant 0 : index
    %c0_21 = arith.constant 0 : index
    %c0_22 = arith.constant 0 : index
    %22 = vector.load %arg6[%c0_20, %c0_21, %c0_22] : memref<1x1x16xf32, #tpu.memory_space<vmem>>, vector<1x1x16xf32>
    tpu.vector_store %arg6[%c0_20, %c0_21, %c0_22], %21 {strides = array<i32>} : memref<1x1x16xf32, #tpu.memory_space<vmem>>, vector<1x1x16xf32>,
    return
  }
  func.func @transform_0(%arg0: i32, %arg1: i32) -> (i32, i32, i32) {
    %c0_i32 = arith.constant 0 : i32
    %c0_i32_0 = arith.constant 0 : i32
    return %arg0, %arg1, %c0_i32 : i32, i32, i32
  }
  func.func @transform_1(%arg0: i32, %arg1: i32) -> (i32, i32, i32) {
    %c0_i32 = arith.constant 0 : i32
    %c0_i32_0 = arith.constant 0 : i32
    %c0_i32_1 = arith.constant 0 : i32
    return %arg0, %c0_i32, %c0_i32_0 : i32, i32, i32
  }
  func.func @transform_2(%arg0: i32, %arg1: i32) -> (i32, i32, i32) {
    %c0_i32 = arith.constant 0 : i32
    %c0_i32_0 = arith.constant 0 : i32
    return %arg0, %arg1, %c0_i32 : i32, i32, i32
  }
  func.func @transform_3(%arg0: i32, %arg1: i32) -> (i32, i32, i32) {
    %c0_i32 = arith.constant 0 : i32
    %c0_i32_0 = arith.constant 0 : i32
    %c0_i32_1 = arith.constant 0 : i32
    return %arg0, %c0_i32, %c0_i32_0 : i32, i32, i32
  }
  func.func @transform_4(%arg0: i32, %arg1: i32) -> (i32, i32, i32) {
    %c0_i32 = arith.constant 0 : i32
    %c0_i32_0 = arith.constant 0 : i32
    %c0_i32_1 = arith.constant 0 : i32
    return %arg0, %c0_i32, %c0_i32_0 : i32, i32, i32
  }
}

module attributes {stable_mosaic.version = 11 : i64} {
  func.func @_affine_relu_kernel(%arg0: i32, %arg1: i32, %arg2: memref<1x32x16xf32, #tpu.memory_space<vmem>>, %arg3: memref<1x1x16xf32, #tpu.memory_space<vmem>>, %arg4: memref<1x1x16xf32, #tpu.memory_space<vmem>>, %arg5: memref<1x32x16xf32, #tpu.memory_space<vmem>>) attributes {dimension_semantics = [#tpu.dimension_semantics<parallel>, #tpu.dimension_semantics<parallel>], iteration_bounds = array<i64: 4, 1>, scalar_prefetch = 0 : i64, scratch_operands = 0 : i64, tpu.core_type = #tpu.core_type<tc>, window_params = [{transform_indices = @transform_0, window_bounds = array<i64: 1, 32, 16>}, {pipeline_mode = #tpu.pipeline_mode<synchronous>, transform_indices = @transform_1, window_bounds = array<i64: 1, 1, 16>}, {pipeline_mode = #tpu.pipeline_mode<synchronous>, transform_indices = @transform_2, window_bounds = array<i64: 1, 1, 16>}, {transform_indices = @transform_3, window_bounds = array<i64: 1, 32, 16>}]} {
    %c0 = arith.constant 0 : index
    %c0_0 = arith.constant 0 : index
    %c0_1 = arith.constant 0 : index
    %0 = vector.load %arg2[%c0, %c0_0, %c0_1] : memref<1x32x16xf32, #tpu.memory_space<vmem>>, vector<1x32x16xf32>
    %c0_2 = arith.constant 0 : index
    %c0_3 = arith.constant 0 : index
    %c0_4 = arith.constant 0 : index
    %1 = vector.load %arg3[%c0_2, %c0_3, %c0_4] : memref<1x1x16xf32, #tpu.memory_space<vmem>>, vector<1x1x16xf32>
    %2 = vector.broadcast %1 : vector<1x1x16xf32> to vector<1x32x16xf32>
    %3 = arith.mulf %0, %2 : vector<1x32x16xf32>
    %c0_5 = arith.constant 0 : index
    %c0_6 = arith.constant 0 : index
    %c0_7 = arith.constant 0 : index
    %4 = vector.load %arg4[%c0_5, %c0_6, %c0_7] : memref<1x1x16xf32, #tpu.memory_space<vmem>>, vector<1x1x16xf32>
    %5 = vector.broadcast %4 : vector<1x1x16xf32> to vector<1x32x16xf32>
    %6 = arith.addf %3, %5 : vector<1x32x16xf32>
    %cst = arith.constant 0.000000e+00 : f32
    %7 = vector.broadcast %cst : f32 to vector<1x32x16xf32>
    %8 = arith.maximumf %6, %7 : vector<1x32x16xf32>
    %c0_8 = arith.constant 0 : index
    %c0_9 = arith.constant 0 : index
    %c0_10 = arith.constant 0 : index
    %9 = vector.load %arg5[%c0_8, %c0_9, %c0_10] : memref<1x32x16xf32, #tpu.memory_space<vmem>>, vector<1x32x16xf32>
    tpu.vector_store %arg5[%c0_8, %c0_9, %c0_10], %8 {strides = array<i32>} : memref<1x32x16xf32, #tpu.memory_space<vmem>>, vector<1x32x16xf32>,
    return
  }
  func.func @transform_0(%arg0: i32, %arg1: i32) -> (i32, i32, i32) {
    %c0_i32 = arith.constant 0 : i32
    %c0_i32_0 = arith.constant 0 : i32
    return %arg0, %arg1, %c0_i32 : i32, i32, i32
  }
  func.func @transform_1(%arg0: i32, %arg1: i32) -> (i32, i32, i32) {
    %c0_i32 = arith.constant 0 : i32
    %c0_i32_0 = arith.constant 0 : i32
    %c0_i32_1 = arith.constant 0 : i32
    %c0_i32_2 = arith.constant 0 : i32
    return %c0_i32, %c0_i32_0, %c0_i32_1 : i32, i32, i32
  }
  func.func @transform_2(%arg0: i32, %arg1: i32) -> (i32, i32, i32) {
    %c0_i32 = arith.constant 0 : i32
    %c0_i32_0 = arith.constant 0 : i32
    %c0_i32_1 = arith.constant 0 : i32
    %c0_i32_2 = arith.constant 0 : i32
    return %c0_i32, %c0_i32_0, %c0_i32_1 : i32, i32, i32
  }
  func.func @transform_3(%arg0: i32, %arg1: i32) -> (i32, i32, i32) {
    %c0_i32 = arith.constant 0 : i32
    %c0_i32_0 = arith.constant 0 : i32
    return %arg0, %arg1, %c0_i32 : i32, i32, i32
  }
}

module attributes {stable_mosaic.version = 11 : i64} {
  func.func @_deconv_stats_kernel(%arg0: i32, %arg1: i32, %arg2: memref<1x128x64xf32, #tpu.memory_space<vmem>>, %arg3: memref<1x64x8xf32, #tpu.memory_space<vmem>>, %arg4: memref<1x128x8xf32, #tpu.memory_space<vmem>>, %arg5: memref<1x1x8xf32, #tpu.memory_space<vmem>>, %arg6: memref<1x1x8xf32, #tpu.memory_space<vmem>>) attributes {dimension_semantics = [#tpu.dimension_semantics<parallel>, #tpu.dimension_semantics<arbitrary>], iteration_bounds = array<i64: 4, 1>, scalar_prefetch = 0 : i64, scratch_operands = 0 : i64, tpu.core_type = #tpu.core_type<tc>, window_params = [{transform_indices = @transform_0, window_bounds = array<i64: 1, 128, 64>}, {transform_indices = @transform_1, window_bounds = array<i64: 1, 64, 8>}, {transform_indices = @transform_2, window_bounds = array<i64: 1, 128, 8>}, {transform_indices = @transform_3, window_bounds = array<i64: 1, 1, 8>}, {transform_indices = @transform_4, window_bounds = array<i64: 1, 1, 8>}]} {
    %c0 = arith.constant 0 : index
    %c0_0 = arith.constant 0 : index
    %c0_1 = arith.constant 0 : index
    %0 = vector.load %arg2[%c0, %c0_0, %c0_1] : memref<1x128x64xf32, #tpu.memory_space<vmem>>, vector<1x128x64xf32>
    %1 = vector.shape_cast %0 : vector<1x128x64xf32> to vector<128x64xf32>
    %c0_2 = arith.constant 0 : index
    %c0_3 = arith.constant 0 : index
    %c0_4 = arith.constant 0 : index
    %2 = vector.load %arg3[%c0_2, %c0_3, %c0_4] : memref<1x64x8xf32, #tpu.memory_space<vmem>>, vector<1x64x8xf32>
    %3 = vector.shape_cast %2 : vector<1x64x8xf32> to vector<64x8xf32>
    %cst = arith.constant dense<0.000000e+00> : vector<128x8xf32>
    %4 = tpu.matmul %1, %3, %cst {dimension_numbers = #tpu.dot_dimension_numbers<[1], [0], [0], [1], [0, 0, 1, 1], [], []>} : vector<128x64xf32>, vector<64x8xf32>, vector<128x8xf32> -> vector<128x8xf32>
    %5 = vector.shape_cast %4 : vector<128x8xf32> to vector<1x128x8xf32>
    %c0_5 = arith.constant 0 : index
    %c0_6 = arith.constant 0 : index
    %c0_7 = arith.constant 0 : index
    %6 = vector.load %arg4[%c0_5, %c0_6, %c0_7] : memref<1x128x8xf32, #tpu.memory_space<vmem>>, vector<1x128x8xf32>
    tpu.vector_store %arg4[%c0_5, %c0_6, %c0_7], %5 {strides = array<i32>} : memref<1x128x8xf32, #tpu.memory_space<vmem>>, vector<1x128x8xf32>,
    %c0_i32 = arith.constant 0 : i32
    %7 = arith.cmpi eq, %arg1, %c0_i32 : i32
    %8 = arith.extui %7 : i1 to i32
    %c0_i32_8 = arith.constant 0 : i32
    %9 = arith.cmpi ne, %8, %c0_i32_8 : i32
    scf.if %9 {
      %cst_23 = arith.constant 0.000000e+00 : f32
      %23 = vector.broadcast %cst_23 : f32 to vector<1x1x8xf32>
      %c0_24 = arith.constant 0 : index
      %c0_25 = arith.constant 0 : index
      %c0_26 = arith.constant 0 : index
      %24 = vector.load %arg5[%c0_24, %c0_25, %c0_26] : memref<1x1x8xf32, #tpu.memory_space<vmem>>, vector<1x1x8xf32>
      tpu.vector_store %arg5[%c0_24, %c0_25, %c0_26], %23 {strides = array<i32>} : memref<1x1x8xf32, #tpu.memory_space<vmem>>, vector<1x1x8xf32>,
      %cst_27 = arith.constant 0.000000e+00 : f32
      %25 = vector.broadcast %cst_27 : f32 to vector<1x1x8xf32>
      %c0_28 = arith.constant 0 : index
      %c0_29 = arith.constant 0 : index
      %c0_30 = arith.constant 0 : index
      %26 = vector.load %arg6[%c0_28, %c0_29, %c0_30] : memref<1x1x8xf32, #tpu.memory_space<vmem>>, vector<1x1x8xf32>
      tpu.vector_store %arg6[%c0_28, %c0_29, %c0_30], %25 {strides = array<i32>} : memref<1x1x8xf32, #tpu.memory_space<vmem>>, vector<1x1x8xf32>,
    } else {
    }
    %c0_9 = arith.constant 0 : index
    %c0_10 = arith.constant 0 : index
    %c0_11 = arith.constant 0 : index
    %10 = vector.load %arg5[%c0_9, %c0_10, %c0_11] : memref<1x1x8xf32, #tpu.memory_space<vmem>>, vector<1x1x8xf32>
    %cst_12 = arith.constant dense<0.000000e+00> : vector<8xf32>
    %11 = vector.multi_reduction <add>, %4, %cst_12 [0] : vector<128x8xf32> to vector<8xf32>
    %12 = vector.shape_cast %11 : vector<8xf32> to vector<1x8xf32>
    %13 = vector.shape_cast %12 : vector<1x8xf32> to vector<1x1x8xf32>
    %14 = arith.addf %10, %13 : vector<1x1x8xf32>
    %c0_13 = arith.constant 0 : index
    %c0_14 = arith.constant 0 : index
    %c0_15 = arith.constant 0 : index
    %15 = vector.load %arg5[%c0_13, %c0_14, %c0_15] : memref<1x1x8xf32, #tpu.memory_space<vmem>>, vector<1x1x8xf32>
    tpu.vector_store %arg5[%c0_13, %c0_14, %c0_15], %14 {strides = array<i32>} : memref<1x1x8xf32, #tpu.memory_space<vmem>>, vector<1x1x8xf32>,
    %c0_16 = arith.constant 0 : index
    %c0_17 = arith.constant 0 : index
    %c0_18 = arith.constant 0 : index
    %16 = vector.load %arg6[%c0_16, %c0_17, %c0_18] : memref<1x1x8xf32, #tpu.memory_space<vmem>>, vector<1x1x8xf32>
    %17 = arith.mulf %4, %4 : vector<128x8xf32>
    %cst_19 = arith.constant dense<0.000000e+00> : vector<8xf32>
    %18 = vector.multi_reduction <add>, %17, %cst_19 [0] : vector<128x8xf32> to vector<8xf32>
    %19 = vector.shape_cast %18 : vector<8xf32> to vector<1x8xf32>
    %20 = vector.shape_cast %19 : vector<1x8xf32> to vector<1x1x8xf32>
    %21 = arith.addf %16, %20 : vector<1x1x8xf32>
    %c0_20 = arith.constant 0 : index
    %c0_21 = arith.constant 0 : index
    %c0_22 = arith.constant 0 : index
    %22 = vector.load %arg6[%c0_20, %c0_21, %c0_22] : memref<1x1x8xf32, #tpu.memory_space<vmem>>, vector<1x1x8xf32>
    tpu.vector_store %arg6[%c0_20, %c0_21, %c0_22], %21 {strides = array<i32>} : memref<1x1x8xf32, #tpu.memory_space<vmem>>, vector<1x1x8xf32>,
    return
  }
  func.func @transform_0(%arg0: i32, %arg1: i32) -> (i32, i32, i32) {
    %c0_i32 = arith.constant 0 : i32
    %c0_i32_0 = arith.constant 0 : i32
    return %arg0, %arg1, %c0_i32 : i32, i32, i32
  }
  func.func @transform_1(%arg0: i32, %arg1: i32) -> (i32, i32, i32) {
    %c0_i32 = arith.constant 0 : i32
    %c0_i32_0 = arith.constant 0 : i32
    %c0_i32_1 = arith.constant 0 : i32
    return %arg0, %c0_i32, %c0_i32_0 : i32, i32, i32
  }
  func.func @transform_2(%arg0: i32, %arg1: i32) -> (i32, i32, i32) {
    %c0_i32 = arith.constant 0 : i32
    %c0_i32_0 = arith.constant 0 : i32
    return %arg0, %arg1, %c0_i32 : i32, i32, i32
  }
  func.func @transform_3(%arg0: i32, %arg1: i32) -> (i32, i32, i32) {
    %c0_i32 = arith.constant 0 : i32
    %c0_i32_0 = arith.constant 0 : i32
    %c0_i32_1 = arith.constant 0 : i32
    return %arg0, %c0_i32, %c0_i32_0 : i32, i32, i32
  }
  func.func @transform_4(%arg0: i32, %arg1: i32) -> (i32, i32, i32) {
    %c0_i32 = arith.constant 0 : i32
    %c0_i32_0 = arith.constant 0 : i32
    %c0_i32_1 = arith.constant 0 : i32
    return %arg0, %c0_i32, %c0_i32_0 : i32, i32, i32
  }
}

module attributes {stable_mosaic.version = 11 : i64} {
  func.func @_affine_relu_kernel(%arg0: i32, %arg1: i32, %arg2: memref<1x128x8xf32, #tpu.memory_space<vmem>>, %arg3: memref<1x1x8xf32, #tpu.memory_space<vmem>>, %arg4: memref<1x1x8xf32, #tpu.memory_space<vmem>>, %arg5: memref<1x128x8xf32, #tpu.memory_space<vmem>>) attributes {dimension_semantics = [#tpu.dimension_semantics<parallel>, #tpu.dimension_semantics<parallel>], iteration_bounds = array<i64: 4, 1>, scalar_prefetch = 0 : i64, scratch_operands = 0 : i64, tpu.core_type = #tpu.core_type<tc>, window_params = [{transform_indices = @transform_0, window_bounds = array<i64: 1, 128, 8>}, {pipeline_mode = #tpu.pipeline_mode<synchronous>, transform_indices = @transform_1, window_bounds = array<i64: 1, 1, 8>}, {pipeline_mode = #tpu.pipeline_mode<synchronous>, transform_indices = @transform_2, window_bounds = array<i64: 1, 1, 8>}, {transform_indices = @transform_3, window_bounds = array<i64: 1, 128, 8>}]} {
    %c0 = arith.constant 0 : index
    %c0_0 = arith.constant 0 : index
    %c0_1 = arith.constant 0 : index
    %0 = vector.load %arg2[%c0, %c0_0, %c0_1] : memref<1x128x8xf32, #tpu.memory_space<vmem>>, vector<1x128x8xf32>
    %c0_2 = arith.constant 0 : index
    %c0_3 = arith.constant 0 : index
    %c0_4 = arith.constant 0 : index
    %1 = vector.load %arg3[%c0_2, %c0_3, %c0_4] : memref<1x1x8xf32, #tpu.memory_space<vmem>>, vector<1x1x8xf32>
    %2 = vector.broadcast %1 : vector<1x1x8xf32> to vector<1x128x8xf32>
    %3 = arith.mulf %0, %2 : vector<1x128x8xf32>
    %c0_5 = arith.constant 0 : index
    %c0_6 = arith.constant 0 : index
    %c0_7 = arith.constant 0 : index
    %4 = vector.load %arg4[%c0_5, %c0_6, %c0_7] : memref<1x1x8xf32, #tpu.memory_space<vmem>>, vector<1x1x8xf32>
    %5 = vector.broadcast %4 : vector<1x1x8xf32> to vector<1x128x8xf32>
    %6 = arith.addf %3, %5 : vector<1x128x8xf32>
    %cst = arith.constant 0.000000e+00 : f32
    %7 = vector.broadcast %cst : f32 to vector<1x128x8xf32>
    %8 = arith.maximumf %6, %7 : vector<1x128x8xf32>
    %c0_8 = arith.constant 0 : index
    %c0_9 = arith.constant 0 : index
    %c0_10 = arith.constant 0 : index
    %9 = vector.load %arg5[%c0_8, %c0_9, %c0_10] : memref<1x128x8xf32, #tpu.memory_space<vmem>>, vector<1x128x8xf32>
    tpu.vector_store %arg5[%c0_8, %c0_9, %c0_10], %8 {strides = array<i32>} : memref<1x128x8xf32, #tpu.memory_space<vmem>>, vector<1x128x8xf32>,
    return
  }
  func.func @transform_0(%arg0: i32, %arg1: i32) -> (i32, i32, i32) {
    %c0_i32 = arith.constant 0 : i32
    %c0_i32_0 = arith.constant 0 : i32
    return %arg0, %arg1, %c0_i32 : i32, i32, i32
  }
  func.func @transform_1(%arg0: i32, %arg1: i32) -> (i32, i32, i32) {
    %c0_i32 = arith.constant 0 : i32
    %c0_i32_0 = arith.constant 0 : i32
    %c0_i32_1 = arith.constant 0 : i32
    %c0_i32_2 = arith.constant 0 : i32
    return %c0_i32, %c0_i32_0, %c0_i32_1 : i32, i32, i32
  }
  func.func @transform_2(%arg0: i32, %arg1: i32) -> (i32, i32, i32) {
    %c0_i32 = arith.constant 0 : i32
    %c0_i32_0 = arith.constant 0 : i32
    %c0_i32_1 = arith.constant 0 : i32
    %c0_i32_2 = arith.constant 0 : i32
    return %c0_i32, %c0_i32_0, %c0_i32_1 : i32, i32, i32
  }
  func.func @transform_3(%arg0: i32, %arg1: i32) -> (i32, i32, i32) {
    %c0_i32 = arith.constant 0 : i32
    %c0_i32_0 = arith.constant 0 : i32
    return %arg0, %arg1, %c0_i32 : i32, i32, i32
  }
}

module attributes {stable_mosaic.version = 11 : i64} {
  func.func @_deconv_stats_kernel(%arg0: i32, %arg1: i32, %arg2: memref<1x512x32xf32, #tpu.memory_space<vmem>>, %arg3: memref<1x32x4xf32, #tpu.memory_space<vmem>>, %arg4: memref<1x512x4xf32, #tpu.memory_space<vmem>>, %arg5: memref<1x1x4xf32, #tpu.memory_space<vmem>>, %arg6: memref<1x1x4xf32, #tpu.memory_space<vmem>>) attributes {dimension_semantics = [#tpu.dimension_semantics<parallel>, #tpu.dimension_semantics<arbitrary>], iteration_bounds = array<i64: 4, 1>, scalar_prefetch = 0 : i64, scratch_operands = 0 : i64, tpu.core_type = #tpu.core_type<tc>, window_params = [{transform_indices = @transform_0, window_bounds = array<i64: 1, 512, 32>}, {transform_indices = @transform_1, window_bounds = array<i64: 1, 32, 4>}, {transform_indices = @transform_2, window_bounds = array<i64: 1, 512, 4>}, {transform_indices = @transform_3, window_bounds = array<i64: 1, 1, 4>}, {transform_indices = @transform_4, window_bounds = array<i64: 1, 1, 4>}]} {
    %c0 = arith.constant 0 : index
    %c0_0 = arith.constant 0 : index
    %c0_1 = arith.constant 0 : index
    %0 = vector.load %arg2[%c0, %c0_0, %c0_1] : memref<1x512x32xf32, #tpu.memory_space<vmem>>, vector<1x512x32xf32>
    %1 = vector.shape_cast %0 : vector<1x512x32xf32> to vector<512x32xf32>
    %c0_2 = arith.constant 0 : index
    %c0_3 = arith.constant 0 : index
    %c0_4 = arith.constant 0 : index
    %2 = vector.load %arg3[%c0_2, %c0_3, %c0_4] : memref<1x32x4xf32, #tpu.memory_space<vmem>>, vector<1x32x4xf32>
    %3 = vector.shape_cast %2 : vector<1x32x4xf32> to vector<32x4xf32>
    %cst = arith.constant dense<0.000000e+00> : vector<512x4xf32>
    %4 = tpu.matmul %1, %3, %cst {dimension_numbers = #tpu.dot_dimension_numbers<[1], [0], [0], [1], [0, 0, 1, 1], [], []>} : vector<512x32xf32>, vector<32x4xf32>, vector<512x4xf32> -> vector<512x4xf32>
    %5 = vector.shape_cast %4 : vector<512x4xf32> to vector<1x512x4xf32>
    %c0_5 = arith.constant 0 : index
    %c0_6 = arith.constant 0 : index
    %c0_7 = arith.constant 0 : index
    %6 = vector.load %arg4[%c0_5, %c0_6, %c0_7] : memref<1x512x4xf32, #tpu.memory_space<vmem>>, vector<1x512x4xf32>
    tpu.vector_store %arg4[%c0_5, %c0_6, %c0_7], %5 {strides = array<i32>} : memref<1x512x4xf32, #tpu.memory_space<vmem>>, vector<1x512x4xf32>,
    %c0_i32 = arith.constant 0 : i32
    %7 = arith.cmpi eq, %arg1, %c0_i32 : i32
    %8 = arith.extui %7 : i1 to i32
    %c0_i32_8 = arith.constant 0 : i32
    %9 = arith.cmpi ne, %8, %c0_i32_8 : i32
    scf.if %9 {
      %cst_23 = arith.constant 0.000000e+00 : f32
      %23 = vector.broadcast %cst_23 : f32 to vector<1x1x4xf32>
      %c0_24 = arith.constant 0 : index
      %c0_25 = arith.constant 0 : index
      %c0_26 = arith.constant 0 : index
      %24 = vector.load %arg5[%c0_24, %c0_25, %c0_26] : memref<1x1x4xf32, #tpu.memory_space<vmem>>, vector<1x1x4xf32>
      tpu.vector_store %arg5[%c0_24, %c0_25, %c0_26], %23 {strides = array<i32>} : memref<1x1x4xf32, #tpu.memory_space<vmem>>, vector<1x1x4xf32>,
      %cst_27 = arith.constant 0.000000e+00 : f32
      %25 = vector.broadcast %cst_27 : f32 to vector<1x1x4xf32>
      %c0_28 = arith.constant 0 : index
      %c0_29 = arith.constant 0 : index
      %c0_30 = arith.constant 0 : index
      %26 = vector.load %arg6[%c0_28, %c0_29, %c0_30] : memref<1x1x4xf32, #tpu.memory_space<vmem>>, vector<1x1x4xf32>
      tpu.vector_store %arg6[%c0_28, %c0_29, %c0_30], %25 {strides = array<i32>} : memref<1x1x4xf32, #tpu.memory_space<vmem>>, vector<1x1x4xf32>,
    } else {
    }
    %c0_9 = arith.constant 0 : index
    %c0_10 = arith.constant 0 : index
    %c0_11 = arith.constant 0 : index
    %10 = vector.load %arg5[%c0_9, %c0_10, %c0_11] : memref<1x1x4xf32, #tpu.memory_space<vmem>>, vector<1x1x4xf32>
    %cst_12 = arith.constant dense<0.000000e+00> : vector<4xf32>
    %11 = vector.multi_reduction <add>, %4, %cst_12 [0] : vector<512x4xf32> to vector<4xf32>
    %12 = vector.shape_cast %11 : vector<4xf32> to vector<1x4xf32>
    %13 = vector.shape_cast %12 : vector<1x4xf32> to vector<1x1x4xf32>
    %14 = arith.addf %10, %13 : vector<1x1x4xf32>
    %c0_13 = arith.constant 0 : index
    %c0_14 = arith.constant 0 : index
    %c0_15 = arith.constant 0 : index
    %15 = vector.load %arg5[%c0_13, %c0_14, %c0_15] : memref<1x1x4xf32, #tpu.memory_space<vmem>>, vector<1x1x4xf32>
    tpu.vector_store %arg5[%c0_13, %c0_14, %c0_15], %14 {strides = array<i32>} : memref<1x1x4xf32, #tpu.memory_space<vmem>>, vector<1x1x4xf32>,
    %c0_16 = arith.constant 0 : index
    %c0_17 = arith.constant 0 : index
    %c0_18 = arith.constant 0 : index
    %16 = vector.load %arg6[%c0_16, %c0_17, %c0_18] : memref<1x1x4xf32, #tpu.memory_space<vmem>>, vector<1x1x4xf32>
    %17 = arith.mulf %4, %4 : vector<512x4xf32>
    %cst_19 = arith.constant dense<0.000000e+00> : vector<4xf32>
    %18 = vector.multi_reduction <add>, %17, %cst_19 [0] : vector<512x4xf32> to vector<4xf32>
    %19 = vector.shape_cast %18 : vector<4xf32> to vector<1x4xf32>
    %20 = vector.shape_cast %19 : vector<1x4xf32> to vector<1x1x4xf32>
    %21 = arith.addf %16, %20 : vector<1x1x4xf32>
    %c0_20 = arith.constant 0 : index
    %c0_21 = arith.constant 0 : index
    %c0_22 = arith.constant 0 : index
    %22 = vector.load %arg6[%c0_20, %c0_21, %c0_22] : memref<1x1x4xf32, #tpu.memory_space<vmem>>, vector<1x1x4xf32>
    tpu.vector_store %arg6[%c0_20, %c0_21, %c0_22], %21 {strides = array<i32>} : memref<1x1x4xf32, #tpu.memory_space<vmem>>, vector<1x1x4xf32>,
    return
  }
  func.func @transform_0(%arg0: i32, %arg1: i32) -> (i32, i32, i32) {
    %c0_i32 = arith.constant 0 : i32
    %c0_i32_0 = arith.constant 0 : i32
    return %arg0, %arg1, %c0_i32 : i32, i32, i32
  }
  func.func @transform_1(%arg0: i32, %arg1: i32) -> (i32, i32, i32) {
    %c0_i32 = arith.constant 0 : i32
    %c0_i32_0 = arith.constant 0 : i32
    %c0_i32_1 = arith.constant 0 : i32
    return %arg0, %c0_i32, %c0_i32_0 : i32, i32, i32
  }
  func.func @transform_2(%arg0: i32, %arg1: i32) -> (i32, i32, i32) {
    %c0_i32 = arith.constant 0 : i32
    %c0_i32_0 = arith.constant 0 : i32
    return %arg0, %arg1, %c0_i32 : i32, i32, i32
  }
  func.func @transform_3(%arg0: i32, %arg1: i32) -> (i32, i32, i32) {
    %c0_i32 = arith.constant 0 : i32
    %c0_i32_0 = arith.constant 0 : i32
    %c0_i32_1 = arith.constant 0 : i32
    return %arg0, %c0_i32, %c0_i32_0 : i32, i32, i32
  }
  func.func @transform_4(%arg0: i32, %arg1: i32) -> (i32, i32, i32) {
    %c0_i32 = arith.constant 0 : i32
    %c0_i32_0 = arith.constant 0 : i32
    %c0_i32_1 = arith.constant 0 : i32
    return %arg0, %c0_i32, %c0_i32_0 : i32, i32, i32
  }
}

module attributes {stable_mosaic.version = 11 : i64} {
  func.func @_affine_relu_kernel(%arg0: i32, %arg1: i32, %arg2: memref<1x512x4xf32, #tpu.memory_space<vmem>>, %arg3: memref<1x1x4xf32, #tpu.memory_space<vmem>>, %arg4: memref<1x1x4xf32, #tpu.memory_space<vmem>>, %arg5: memref<1x512x4xf32, #tpu.memory_space<vmem>>) attributes {dimension_semantics = [#tpu.dimension_semantics<parallel>, #tpu.dimension_semantics<parallel>], iteration_bounds = array<i64: 4, 1>, scalar_prefetch = 0 : i64, scratch_operands = 0 : i64, tpu.core_type = #tpu.core_type<tc>, window_params = [{transform_indices = @transform_0, window_bounds = array<i64: 1, 512, 4>}, {pipeline_mode = #tpu.pipeline_mode<synchronous>, transform_indices = @transform_1, window_bounds = array<i64: 1, 1, 4>}, {pipeline_mode = #tpu.pipeline_mode<synchronous>, transform_indices = @transform_2, window_bounds = array<i64: 1, 1, 4>}, {transform_indices = @transform_3, window_bounds = array<i64: 1, 512, 4>}]} {
    %c0 = arith.constant 0 : index
    %c0_0 = arith.constant 0 : index
    %c0_1 = arith.constant 0 : index
    %0 = vector.load %arg2[%c0, %c0_0, %c0_1] : memref<1x512x4xf32, #tpu.memory_space<vmem>>, vector<1x512x4xf32>
    %c0_2 = arith.constant 0 : index
    %c0_3 = arith.constant 0 : index
    %c0_4 = arith.constant 0 : index
    %1 = vector.load %arg3[%c0_2, %c0_3, %c0_4] : memref<1x1x4xf32, #tpu.memory_space<vmem>>, vector<1x1x4xf32>
    %2 = vector.broadcast %1 : vector<1x1x4xf32> to vector<1x512x4xf32>
    %3 = arith.mulf %0, %2 : vector<1x512x4xf32>
    %c0_5 = arith.constant 0 : index
    %c0_6 = arith.constant 0 : index
    %c0_7 = arith.constant 0 : index
    %4 = vector.load %arg4[%c0_5, %c0_6, %c0_7] : memref<1x1x4xf32, #tpu.memory_space<vmem>>, vector<1x1x4xf32>
    %5 = vector.broadcast %4 : vector<1x1x4xf32> to vector<1x512x4xf32>
    %6 = arith.addf %3, %5 : vector<1x512x4xf32>
    %cst = arith.constant 0.000000e+00 : f32
    %7 = vector.broadcast %cst : f32 to vector<1x512x4xf32>
    %8 = arith.maximumf %6, %7 : vector<1x512x4xf32>
    %c0_8 = arith.constant 0 : index
    %c0_9 = arith.constant 0 : index
    %c0_10 = arith.constant 0 : index
    %9 = vector.load %arg5[%c0_8, %c0_9, %c0_10] : memref<1x512x4xf32, #tpu.memory_space<vmem>>, vector<1x512x4xf32>
    tpu.vector_store %arg5[%c0_8, %c0_9, %c0_10], %8 {strides = array<i32>} : memref<1x512x4xf32, #tpu.memory_space<vmem>>, vector<1x512x4xf32>,
    return
  }
  func.func @transform_0(%arg0: i32, %arg1: i32) -> (i32, i32, i32) {
    %c0_i32 = arith.constant 0 : i32
    %c0_i32_0 = arith.constant 0 : i32
    return %arg0, %arg1, %c0_i32 : i32, i32, i32
  }
  func.func @transform_1(%arg0: i32, %arg1: i32) -> (i32, i32, i32) {
    %c0_i32 = arith.constant 0 : i32
    %c0_i32_0 = arith.constant 0 : i32
    %c0_i32_1 = arith.constant 0 : i32
    %c0_i32_2 = arith.constant 0 : i32
    return %c0_i32, %c0_i32_0, %c0_i32_1 : i32, i32, i32
  }
  func.func @transform_2(%arg0: i32, %arg1: i32) -> (i32, i32, i32) {
    %c0_i32 = arith.constant 0 : i32
    %c0_i32_0 = arith.constant 0 : i32
    %c0_i32_1 = arith.constant 0 : i32
    %c0_i32_2 = arith.constant 0 : i32
    return %c0_i32, %c0_i32_0, %c0_i32_1 : i32, i32, i32
  }
  func.func @transform_3(%arg0: i32, %arg1: i32) -> (i32, i32, i32) {
    %c0_i32 = arith.constant 0 : i32
    %c0_i32_0 = arith.constant 0 : i32
    return %arg0, %arg1, %c0_i32 : i32, i32, i32
  }
}

module attributes {stable_mosaic.version = 11 : i64} {
  func.func @_deconv_tanh_kernel(%arg0: i32, %arg1: i32, %arg2: memref<1x1024x16xf32, #tpu.memory_space<vmem>>, %arg3: memref<1x16x3xf32, #tpu.memory_space<vmem>>, %arg4: memref<1x1024x3xf32, #tpu.memory_space<vmem>>) attributes {dimension_semantics = [#tpu.dimension_semantics<parallel>, #tpu.dimension_semantics<parallel>], iteration_bounds = array<i64: 4, 2>, scalar_prefetch = 0 : i64, scratch_operands = 0 : i64, tpu.core_type = #tpu.core_type<tc>, window_params = [{transform_indices = @transform_0, window_bounds = array<i64: 1, 1024, 16>}, {transform_indices = @transform_1, window_bounds = array<i64: 1, 16, 3>}, {transform_indices = @transform_2, window_bounds = array<i64: 1, 1024, 3>}]} {
    %c0 = arith.constant 0 : index
    %c0_0 = arith.constant 0 : index
    %c0_1 = arith.constant 0 : index
    %0 = vector.load %arg2[%c0, %c0_0, %c0_1] : memref<1x1024x16xf32, #tpu.memory_space<vmem>>, vector<1x1024x16xf32>
    %1 = vector.shape_cast %0 : vector<1x1024x16xf32> to vector<1024x16xf32>
    %c0_2 = arith.constant 0 : index
    %c0_3 = arith.constant 0 : index
    %c0_4 = arith.constant 0 : index
    %2 = vector.load %arg3[%c0_2, %c0_3, %c0_4] : memref<1x16x3xf32, #tpu.memory_space<vmem>>, vector<1x16x3xf32>
    %3 = vector.shape_cast %2 : vector<1x16x3xf32> to vector<16x3xf32>
    %cst = arith.constant dense<0.000000e+00> : vector<1024x3xf32>
    %4 = tpu.matmul %1, %3, %cst {dimension_numbers = #tpu.dot_dimension_numbers<[1], [0], [0], [1], [0, 0, 1, 1], [], []>} : vector<1024x16xf32>, vector<16x3xf32>, vector<1024x3xf32> -> vector<1024x3xf32>
    %5 = math.tanh %4 : vector<1024x3xf32>
    %6 = vector.shape_cast %5 : vector<1024x3xf32> to vector<1x1024x3xf32>
    %c0_5 = arith.constant 0 : index
    %c0_6 = arith.constant 0 : index
    %c0_7 = arith.constant 0 : index
    %7 = vector.load %arg4[%c0_5, %c0_6, %c0_7] : memref<1x1024x3xf32, #tpu.memory_space<vmem>>, vector<1x1024x3xf32>
    tpu.vector_store %arg4[%c0_5, %c0_6, %c0_7], %6 {strides = array<i32>} : memref<1x1024x3xf32, #tpu.memory_space<vmem>>, vector<1x1024x3xf32>,
    return
  }
  func.func @transform_0(%arg0: i32, %arg1: i32) -> (i32, i32, i32) {
    %c0_i32 = arith.constant 0 : i32
    %c0_i32_0 = arith.constant 0 : i32
    return %arg0, %arg1, %c0_i32 : i32, i32, i32
  }
  func.func @transform_1(%arg0: i32, %arg1: i32) -> (i32, i32, i32) {
    %c0_i32 = arith.constant 0 : i32
    %c0_i32_0 = arith.constant 0 : i32
    %c0_i32_1 = arith.constant 0 : i32
    return %arg0, %c0_i32, %c0_i32_0 : i32, i32, i32
  }
  func.func @transform_2(%arg0: i32, %arg1: i32) -> (i32, i32, i32) {
    %c0_i32 = arith.constant 0 : i32
    %c0_i32_0 = arith.constant 0 : i32
    return %arg0, %arg1, %c0_i32 : i32, i32, i32
  }
}

</mosaic_0001>

<bundles_post_ra>
// kernel: svhn_generator_forward.8
= control target key start
LH: loop header
LB: loop body
LE: loop exit
PB: predicated region body
PF: predicated region fallthrough
CT: control target
= control target key end

     0   :  { %v230_v3 = vmov 0.0   ;;  %vm45_vm0 = vcmask 130048   ;;  %v25_v14 = vlaneseq  ;;  %v231_v20 = vmov 1983009808   ;;  %s285_s1 = inlined_call_operand.vmem [shape: f32[16,512], index: 1, kind: input, shape index: {}]   ;;  %s286_s0 = inlined_call_operand.vmem [shape: f32[2,16], index: 0, kind: input, shape index: {}]   ;;  %s287_s2 = inlined_call_operand.vmem [shape: f32[1,512], index: 2, kind: input, shape index: {}]   ;;  %s288_s3 = inlined_call_operand.vmem [shape: f32[2,512], index: 3, kind: output, shape index: {}]  }
   0x1   :  { %v16_v0 = vld [vmem:[%s285_s1 + $0x8] sm:$0xff]  ;;  %v18_v2 = vld [vmem:[%s285_s1 + $0x18] sm:$0xff]  ;;  %113 = vmatprep.mubr.f32.mxu0 %v230_v3  ;;  %184 = vmatprep.mubr.f32.mxu1 %v230_v3  ;;  %v15_v6 = vld [vmem:[%s285_s1] sm:$0xff]  ;;  %v198_v21 = vunpack.c.l.s4 %v231_v20 }
   0x2   :  { %v20_v1 = vld [vmem:[%s285_s1 + $0x28] sm:$0xff]  ;;  %v22_v5 = vld [vmem:[%s285_s1 + $0x38] sm:$0xff]  ;;  %v19_v7 = vld [vmem:[%s285_s1 + $0x20] sm:$0xff]  ;;  %v26_v15 = vshrl.u32 %v25_v14, 7 }
   0x3   :  { %v220_v4 = vpack.c.bf16 %v20_v1, %v16_v0  ;;  %v224_v8 = vpack.c.bf16 %v22_v5, %v18_v2  ;;  %v222_v9 = vpack.c.bf16 %v19_v7, %v15_v6  ;;  %v17_v10 = vld [vmem:[%s285_s1 + $0x10] sm:$0xff]  ;;  %v14_v13 = vld [vmem:[%s286_s0] sm:$0x3]  ;;  %v199_v26 = vunpack.c.0.s8 %v198_v21 }
   0x4   :  { %v21_v11 = vld [vmem:[%s285_s1 + $0x30] sm:$0xff]  ;;  %v27_v16 = vsub.s32 0, %v26_v15  ;;  %v23_v17 = vld [vmem:[%s287_s2] sm:$0xf]  ;;  %v35_v18 = vsub.s32 2, %v26_v15  ;;  %v31_v19 = vsub.s32 1, %v26_v15 }
   0x5   :  { %221 = vmatprep.subr.bf16.mxu0 %v220_v4  ;;  %v226_v12 = vpack.c.bf16 %v21_v11, %v17_v10  ;;  %225 = vmatprep.subr.bf16.mxu1 %v224_v8  ;;  %v39_v22 = vsub.s32 3, %v26_v15  ;;  %v202_v34 = vsub.s32 %v199_v26, %v26_v15 }
   0x6   :  { %223 = vmatpush1.bf16.msra.mxu0 %v222_v9  ;;  %v28_v23 = vrot.slane %v23_v17, %v27_v16  ;;  %v36_v24 = vrot.slane %v23_v17, %v35_v18  ;;  %v32_v25 = vrot.slane %v23_v17, %v31_v19 }
   0x7   :  { %227 = vmatpush1.bf16.msra.mxu1 %v226_v12  ;;  %v40_v27 = vrot.slane %v23_v17, %v39_v22 }
   0x9   :  { %218 = vmatmul.mubr.msk.f32.vlgmr.msra.gmra.mrb[0].mxu0 %vm45_vm0, %v14_v13 }
   0xa   :  { %219 = vmatmul.mubr.msk.f32.vlgmr.msra.gmra.mrb[0].mxu1 %vm45_vm0, %v14_v13 }
  0xdc   :  { %v115_v28 = vpop.f32.mrb[0].mxu0 }
  0xdd   :  { %v116_v29 = vadd.f32 %v115_v28, %v28_v23  ;;  %v186_v30 = vpop.f32.mrb[0].mxu1  ;;  %v117_v31 = vpop.f32.mrb[1].mxu0 }
  0xde   :  { %v187_v32 = vadd.f32 %v186_v30, %v36_v24  ;;  %v118_v33 = vadd.f32 %v117_v31, %v32_v25  ;;  %v188_v35 = vpop.f32.mrb[1].mxu1 }
  0xdf   :  { %v189_v36 = vadd.f32 %v188_v35, %v40_v27 }
  0xe0   :  { %v195_v37 = vcombine.low %v116_v29, %v118_v33 }
  0xe1   :  { %v196_v38 = vcombine.low %v187_v32, %v189_v36 }
  0xe2   :  { %v203_v39 = vrot.slane %v195_v37, %v202_v34 }
  0xe3   :  { %v210_v40 = vrot.slane %v196_v38, %v202_v34 }
  0xe5   :  { %v211_v41 = vcombine.low %v203_v39, %v210_v40 }
  0xe7   :  { %213 = vst [vmem:[%s288_s3] sm:$0xff] %v211_v41 }

// kernel: svhn_generator_forward.10
= control target key start
LH: loop header
LB: loop body
LE: loop exit
PB: predicated region body
PF: predicated region fallthrough
CT: control target
= control target key end

     0   :  { %s415_s12 = smov 0   ;;  %s417_s13 = smov 0   ;;  %s454_s0 = inlined_call_operand.vmem [shape: f32[4,32,16], index: 0, kind: input, shape index: {}]   ;;  %s455_s1 = inlined_call_operand.vmem [shape: f32[1,1,16], index: 1, kind: input, shape index: {}]   ;;  %s456_s2 = inlined_call_operand.vmem [shape: f32[1,1,16], index: 2, kind: input, shape index: {}]   ;;  %s457_s3 = inlined_call_operand.vmem [shape: f32[4,32,16], index: 3, kind: output, shape index: {}]  }
   0x1   :  { %s419_s14 = smov 0  }
   0x2 LB: > { %s25_s15 = sadd.s32 1, %s389_s13  ;;  %p336_p0 = scmp.ge.s32.totalorder %s393_s14, 1  ;;  %s393_s14 = sphi %s419_s14, %s13_s14   ;;  %s389_s13 = sphi %s417_s13, %s459_s13   ;;  %s385_s12 = sphi %s415_s12, %s458_s12  }
   0x3   : > { %p27_p1 = scmp.ge.s32.totalorder %s25_s15, 4  ;;  %p158_p2 = scmp.lt.s32.totalorder %s393_s14, 5 }
   0x5   : > { %s461_s15 = smov (%p27_p1, %s25_s15), 0  ;;  %p159_p3 = pnand %p336_p0, %p158_p2 }
   0x6   : > { %p191_p4 = scmp.lt.s32.totalorder (!%p159_p3), %s385_s12, 3  ;;  %v341_v0 = vld [vmem:[%s455_s1] ss:$0 sm:$0xff] (!%p159_p3)  ;;  %vm240_vm0 = vcmask (!%p159_p3), 130048  }
   0x7   : > { %162 = sbr.rel (%p159_p3) target bundleno = 26 (0x1a), region = 32  ;;  %v342_v1 = vld [vmem:[%s456_s2] ss:$0 sm:$0xff] (!%p159_p3) }
   0xe   : > { %s463_s12 = smov (!%p191_p4, %s385_s12), 3 }
   0xf   : > { %s345_s16 = sshll.u32 %s463_s12, 5 }
  0x10   : > { %s198_s21 = scalar_lea.vmem %s454_s0, %s345_s16  ;;  %s208_s26 = scalar_lea.vmem %s457_s3, %s345_s16 }
  0x11   : > { %v210_v2 = vld [vmem:[%s198_s21] sm:$0xff]  ;;  %v211_v3 = vld [vmem:[%s198_s21 + $0x8] sm:$0xff]  ;;  %v212_v4 = vld [vmem:[%s198_s21 + $0x10] sm:$0xff] }
  0x12   : > { %v221_v5 = vmul.f32 %v341_v0, %v210_v2  ;;  %v222_v6 = vmul.f32 %v341_v0, %v211_v3  ;;  %v223_v7 = vmul.f32 %v341_v0, %v212_v4  ;;  %v213_v8 = vld [vmem:[%s198_s21 + $0x18] sm:$0xff] }
  0x13   : > { %v224_v9 = vmul.f32 %v341_v0, %v213_v8 }
  0x14   : > { %v232_v10 = vadd.f32 %v342_v1, %v221_v5  ;;  %v233_v11 = vadd.f32 %v342_v1, %v222_v6  ;;  %v234_v12 = vadd.f32 %v342_v1, %v223_v7 }
  0x15   : > { %v235_v13 = vadd.f32 %v342_v1, %v224_v9 }
  0x16   : > { %v236_v14 = vmax.f32 %v232_v10, 0.0  ;;  %v237_v15 = vmax.f32 %v233_v11, 0.0  ;;  %v238_v16 = vmax.f32 %v234_v12, 0.0 }
  0x17   : > { %v239_v17 = vmax.f32 %v235_v13, 0.0 }
  0x18   : > { %241 = vst.msk [vmem:[%s208_s26] sm:$0xff] %vm240_vm0, %v236_v14  ;;  %242 = vst.msk [vmem:[%s208_s26 + $0x8] sm:$0xff] %vm240_vm0, %v237_v15 }
  0x19   : > { %243 = vst.msk [vmem:[%s208_s26 + $0x10] sm:$0xff] %vm240_vm0, %v238_v16  ;;  %244 = vst.msk [vmem:[%s208_s26 + $0x18] sm:$0xff] %vm240_vm0, %v239_v17 }
  0x1a PF: > { %s13_s14 = sadd.s32 1, %s393_s14   ;;  %s458_s12 = smov %s389_s13 }
  0x1b   : > { %p10_p5 = scmp.ge.s32.totalorder %s13_s14, 6   ;;  %s459_s13 = smov %s461_s15 }
  0x1d   :  { %12 = sbr.rel (!%p10_p5) target bundleno = 2 (0x2), region = 62 }

// kernel: svhn_generator_forward.9
= control target key start
LH: loop header
LB: loop body
LE: loop exit
PB: predicated region body
PF: predicated region fallthrough
CT: control target
= control target key end

     0   :  { %s774_s15 = smov 0   ;;  %s776_s16 = smov 0   ;;  %s876_s0 = inlined_call_operand.vmem [shape: f32[4,32,128], index: 0, kind: input, shape index: {}]   ;;  %s877_s1 = inlined_call_operand.vmem [shape: f32[4,128,16], index: 1, kind: input, shape index: {}]   ;;  %s878_s2 = inlined_call_operand.vmem [shape: f32[4,32,16], index: 2, kind: output, shape index: {0}]   ;;  %s879_s3 = inlined_call_operand.vmem [shape: f32[4,1,16], index: 3, kind: output, shape index: {1}]   ;;  %s880_s4 = inlined_call_operand.vmem [shape: f32[4,1,16], index: 4, kind: output, shape index: {2}]  }
   0x1   :  { %s778_s17 = smov 0  }
   0x2 LB: > { %s27_s18 = sadd.s32 1, %s742_s16  ;;  %p581_p0 = scmp.ge.s32.totalorder %s746_s17, 1  ;;  %s746_s17 = sphi %s778_s17, %s15_s17   ;;  %s742_s16 = sphi %s776_s16, %s882_s16   ;;  %s738_s15 = sphi %s774_s15, %s881_s15  }
   0x3   : > { %p29_p1 = scmp.ge.s32.totalorder %s27_s18, 4  ;;  %p198_p2 = scmp.lt.s32.totalorder %s746_s17, 5 }
   0x5   : > { %s884_s18 = smov (%p29_p1, %s27_s18), 0  ;;  %p199_p3 = pnand %p581_p0, %p198_p2 }
   0x6   : > { %p244_p4 = scmp.lt.s32.totalorder (!%p199_p3), %s738_s15, 3  ;;  %vm388_vm0 = vcmask (!%p199_p3), 122880   ;;  %v748_v28 = vmov (!%p199_p3), 0.0   ;;  %vm379_vm1 = vcmask (!%p199_p3), 130048  }
   0x7   : > { %202 = sbr.rel (%p199_p3) target bundleno = 289 (0x121), region = 28 }
   0xe   : > { %s886_s15 = smov (!%p244_p4, %s738_s15), 3 }
   0xf   : > { %s591_s19 = sshll.u32 %s886_s15, 7  ;;  %s590_s23 = sshll.u32 %s886_s15, 5 }
  0x10   : > { %s798_s22 = scalar_lea.vmem %s877_s1, %s591_s19  ;;  %s812_s26 = scalar_lea.vmem %s876_s0, %s590_s23 }
  0x11   : > { %v278_v0 = vld [vmem:[%s798_s22] sm:$0xff]  ;;  %v279_v1 = vld [vmem:[%s798_s22 + $0x8] sm:$0xff]  ;;  %v280_v2 = vld [vmem:[%s798_s22 + $0x10] sm:$0xff]  ;;  %s832_s29 = scalar_lea.vmem %s879_s3, %s886_s15  ;;  %s838_s6 = scalar_lea.vmem %s880_s4, %s886_s15 }
  0x12   : > { %v651_v3 = vpack.c.bf16 %v279_v1, %v278_v0  ;;  %v281_v4 = vld [vmem:[%s798_s22 + $0x18] sm:$0xff]  ;;  %v282_v6 = vld [vmem:[%s798_s22 + $0x20] sm:$0xff]  ;;  %v283_v7 = vld [vmem:[%s798_s22 + $0x28] sm:$0xff]  ;;  %389 = vst.msk [vmem:[%s832_s29] sm:$0x1] %vm388_vm0, %v748_v28  ;;  %s266_s9 = scalar_lea.vmem %s878_s2, %s590_s23 }
  0x13   : > { %v655_v5 = vpack.c.bf16 %v281_v4, %v280_v2  ;;  %v659_v8 = vpack.c.bf16 %v283_v7, %v282_v6  ;;  %v274_v9 = vld [vmem:[%s812_s26] sm:$0xff]  ;;  %v284_v10 = vld [vmem:[%s798_s22 + $0x30] sm:$0xff]  ;;  %v285_v11 = vld [vmem:[%s798_s22 + $0x38] sm:$0xff]  ;;  %390 = vst.msk [vmem:[%s838_s6] sm:$0x1] %vm388_vm0, %v748_v28 }
  0x14   : > { %652 = vmatprep.subr.bf16.mxu0 %v651_v3  ;;  %683 = vmatprep.subr.bf16.mxu1 %v651_v3  ;;  %v276_v12 = vld [vmem:[%s812_s26 + $0x10] sm:$0xff]  ;;  %v663_v13 = vpack.c.bf16 %v285_v11, %v284_v10  ;;  %v286_v14 = vld [vmem:[%s798_s22 + $0x40] sm:$0xff]  ;;  %v287_v15 = vld [vmem:[%s798_s22 + $0x48] sm:$0xff] }
  0x15   : > { %654 = vmatpush3.bf16.msra.mxu0 %v651_v3  ;;  %691 = vmatpush3.bf16.msra.mxu1 %v651_v3  ;;  %v667_v16 = vpack.c.bf16 %v287_v15, %v286_v14  ;;  %v288_v17 = vld [vmem:[%s798_s22 + $0x50] sm:$0xff]  ;;  %v289_v18 = vld [vmem:[%s798_s22 + $0x58] sm:$0xff]  ;;  %v290_v20 = vld [vmem:[%s798_s22 + $0x60] sm:$0xff] }
  0x16   : > { %656 = vmatprep.subr.bf16.mxu0 %v655_v5  ;;  %684 = vmatprep.subr.bf16.mxu1 %v655_v5  ;;  %v671_v19 = vpack.c.bf16 %v289_v18, %v288_v17  ;;  %v291_v21 = vld [vmem:[%s798_s22 + $0x68] sm:$0xff]  ;;  %v292_v23 = vld [vmem:[%s798_s22 + $0x70] sm:$0xff]  ;;  %v293_v24 = vld [vmem:[%s798_s22 + $0x78] sm:$0xff] }
  0x17   : > { %645 = vmatprep.mubr.f32.mxu0 %v274_v9  ;;  %648 = vmatprep.mubr.f32.mxu1 %v276_v12  ;;  %v675_v22 = vpack.c.bf16 %v291_v21, %v290_v20  ;;  %v679_v25 = vpack.c.bf16 %v293_v24, %v292_v23  ;;  %v275_v26 = vld [vmem:[%s812_s26 + $0x8] sm:$0xff]  ;;  %v277_v27 = vld [vmem:[%s812_s26 + $0x18] sm:$0xff] }
  0x19   : > { %658 = vmatpush3.bf16.msra.mxu0 %v655_v5  ;;  %692 = vmatpush3.bf16.msra.mxu1 %v655_v5  ;;  %v391_v60 = vld [vmem:[%s832_s29] sm:$0x1] }
  0x1a   : > { %660 = vmatprep.subr.bf16.mxu0 %v659_v8  ;;  %685 = vmatprep.subr.bf16.mxu1 %v659_v8  ;;  %v408_v63 = vld [vmem:[%s838_s6] sm:$0x1] }
  0x1d   : > { %662 = vmatpush3.bf16.msra.mxu0 %v659_v8  ;;  %693 = vmatpush3.bf16.msra.mxu1 %v659_v8 }
  0x1e   : > { %664 = vmatprep.subr.bf16.mxu0 %v663_v13  ;;  %686 = vmatprep.subr.bf16.mxu1 %v663_v13 }
  0x21   : > { %666 = vmatpush3.bf16.msra.mxu0 %v663_v13  ;;  %694 = vmatpush3.bf16.msra.mxu1 %v663_v13 }
  0x22   : > { %668 = vmatprep.subr.bf16.mxu0 %v667_v16  ;;  %687 = vmatprep.subr.bf16.mxu1 %v667_v16 }
  0x25   : > { %670 = vmatpush3.bf16.msra.mxu0 %v667_v16  ;;  %695 = vmatpush3.bf16.msra.mxu1 %v667_v16 }
  0x26   : > { %672 = vmatprep.subr.bf16.mxu0 %v671_v19  ;;  %688 = vmatprep.subr.bf16.mxu1 %v671_v19 }
  0x29   : > { %674 = vmatpush3.bf16.msra.mxu0 %v671_v19  ;;  %696 = vmatpush3.bf16.msra.mxu1 %v671_v19 }
  0x2a   : > { %676 = vmatprep.subr.bf16.mxu0 %v675_v22  ;;  %689 = vmatprep.subr.bf16.mxu1 %v675_v22 }
  0x2d   : > { %678 = vmatpush3.bf16.msra.mxu0 %v675_v22  ;;  %697 = vmatpush3.bf16.msra.mxu1 %v675_v22 }
  0x2e   : > { %680 = vmatprep.subr.bf16.mxu0 %v679_v25  ;;  %690 = vmatprep.subr.bf16.mxu1 %v679_v25 }
  0x31   : > { %682 = vmatpush3.bf16.msra.mxu0 %v679_v25  ;;  %698 = vmatpush3.bf16.msra.mxu1 %v679_v25 }
  0x34   : > { %646 = vmatmul.mubr.f32.vlgmr.msra.gmra.mrb[0].mxu0 %v275_v26  ;;  %649 = vmatmul.mubr.f32.vlgmr.msra.gmra.mrb[0].mxu1 %v277_v27 }
 0x107   : > { %v647_v29 = vpop.f32.mrb[0].mxu0  ;;  %v650_v30 = vpop.f32.mrb[0].mxu1 }
 0x108   : > { %381 = vst.msk [vmem:[%s266_s9 + $0x8] sm:$0xff] %vm379_vm1, %v647_v29  ;;  %v393_v31 = vsel %vm379_vm1, %v647_v29, 0.0  ;;  %v410_v32 = vmul.f32 %v647_v29, %v647_v29  ;;  %v360_v33 = vpop.f32.mrb[1].mxu0  ;;  %383 = vst.msk [vmem:[%s266_s9 + $0x18] sm:$0xff] %vm379_vm1, %v650_v30  ;;  %v370_v34 = vpop.f32.mrb[1].mxu1  ;;  %v412_v42 = vmul.f32 %v650_v30, %v650_v30  ;;  %v397_v46 = vsel %vm379_vm1, %v650_v30, 0.0 }
 0x109   : > { %380 = vst.msk [vmem:[%s266_s9] sm:$0xff] %vm379_vm1, %v360_v33  ;;  %v392_v35 = vsel %vm379_vm1, %v360_v33, 0.0  ;;  %v409_v36 = vmul.f32 %v360_v33, %v360_v33  ;;  %382 = vst.msk [vmem:[%s266_s9 + $0x10] sm:$0xff] %vm379_vm1, %v370_v34  ;;  %v395_v37 = vsel %vm379_vm1, %v370_v34, 0.0  ;;  %v411_v38 = vmul.f32 %v370_v34, %v370_v34 }
 0x10a   : > { %v414_v39 = vsel %vm379_vm1, %v410_v32, 0.0  ;;  %v394_v40 = vadd.f32 %v393_v31, %v392_v35  ;;  %v418_v49 = vsel %vm379_vm1, %v412_v42, 0.0 }
 0x10b   : > { %v413_v41 = vsel %vm379_vm1, %v409_v36, 0.0  ;;  %v416_v43 = vsel %vm379_vm1, %v411_v38, 0.0 }
 0x10c   : > { %v415_v44 = vadd.f32 %v414_v39, %v413_v41  ;;  %v396_v45 = vadd.f32 %v395_v37, %v394_v40 }
 0x10e   : > { %v398_v47 = vadd.f32 %v397_v46, %v396_v45  ;;  %v417_v48 = vadd.f32 %v416_v43, %v415_v44 }
 0x110   : > { %v399_v50 = vrot.slane %v398_v47, 4  ;;  %v419_v51 = vadd.f32 %v418_v49, %v417_v48 }
 0x112   : > { %v400_v52 = vadd.f32 %v399_v50, %v398_v47  ;;  %v420_v53 = vrot.slane %v419_v51, 4 }
 0x114   : > { %v401_v54 = vrot.slane %v400_v52, 2  ;;  %v421_v55 = vadd.f32 %v420_v53, %v419_v51 }
 0x116   : > { %v402_v56 = vadd.f32 %v401_v54, %v400_v52  ;;  %v422_v57 = vrot.slane %v421_v55, 2 }
 0x118   : > { %v403_v58 = vrot.slane %v402_v56, 1  ;;  %v423_v59 = vadd.f32 %v422_v57, %v421_v55 }
 0x11a   : > { %v404_v61 = vadd.f32 %v403_v58, %v402_v56  ;;  %v424_v62 = vrot.slane %v423_v59, 1 }
 0x11c   : > { %v405_v0 = vadd.f32 %v404_v61, %v391_v60  ;;  %v425_v1 = vadd.f32 %v424_v62, %v423_v59 }
 0x11e   : > { %407 = vst.msk [vmem:[%s832_s29] sm:$0x1] %vm388_vm0, %v405_v0  ;;  %v426_v2 = vadd.f32 %v425_v1, %v408_v63 }
 0x120   : > { %427 = vst.msk [vmem:[%s838_s6] sm:$0x1] %vm388_vm0, %v426_v2 }
 0x121 PF: > { %s15_s17 = sadd.s32 1, %s746_s17   ;;  %s881_s15 = smov %s742_s16 }
 0x122   : > { %p12_p5 = scmp.ge.s32.totalorder %s15_s17, 6   ;;  %s882_s16 = smov %s884_s18 }
 0x124   :  { %14 = sbr.rel (!%p12_p5) target bundleno = 2 (0x2), region = 89 }

// kernel: svhn_generator_forward.11
= control target key start
LH: loop header
LB: loop body
LE: loop exit
PB: predicated region body
PF: predicated region fallthrough
CT: control target
= control target key end

     0   :  { %s957_s15 = smov 0   ;;  %s959_s16 = smov 0   ;;  %s1135_s0 = inlined_call_operand.vmem [shape: f32[4,128,64], index: 0, kind: input, shape index: {}]   ;;  %s1136_s1 = inlined_call_operand.vmem [shape: f32[4,64,8], index: 1, kind: input, shape index: {}]   ;;  %s1137_s2 = inlined_call_operand.vmem [shape: f32[4,128,8], index: 2, kind: output, shape index: {0}]   ;;  %s1138_s3 = inlined_call_operand.vmem [shape: f32[4,1,8], index: 3, kind: output, shape index: {1}]   ;;  %s1139_s4 = inlined_call_operand.vmem [shape: f32[4,1,8], index: 4, kind: output, shape index: {2}]  }
   0x1   :  { %s961_s17 = smov 0  }
   0x2 LB: > { %s27_s18 = sadd.s32 1, %s925_s16  ;;  %p766_p0 = scmp.ge.s32.totalorder %s929_s17, 1  ;;  %s929_s17 = sphi %s961_s17, %s15_s17   ;;  %s925_s16 = sphi %s959_s16, %s1141_s16   ;;  %s921_s15 = sphi %s957_s15, %s1140_s15  }
   0x3   : > { %p29_p1 = scmp.ge.s32.totalorder %s27_s18, 4  ;;  %p198_p2 = scmp.lt.s32.totalorder %s929_s17, 5 }
   0x5   : > { %s1143_s18 = smov (%p29_p1, %s27_s18), 0  ;;  %p199_p3 = pnand %p766_p0, %p198_p2 }
   0x6   : > { %p244_p4 = scmp.lt.s32.totalorder (!%p199_p3), %s921_s15, 3  ;;  %vm298_vm0 = vcmask (!%p199_p3), 523264   ;;  %vm513_vm1 = vcmask (!%p199_p3), 57344   ;;  %v931_v28 = vmov (!%p199_p3), 0.0   ;;  %vm492_vm2 = vcmask (!%p199_p3), 64512  }
   0x7   : > { %202 = sbr.rel (%p199_p3) target bundleno = 299 (0x12b), region = 28 }
   0xe   : > { %s1145_s15 = smov (!%p244_p4, %s921_s15), 3 }
   0xf   : > { %s791_s19 = sshll.u32 %s1145_s15, 7  ;;  %s792_s20 = sshll.u32 %s1145_s15, 6 }
  0x10   : > { %s984_s23 = scalar_lea.vmem %s1135_s0, %s791_s19  ;;  %s257_s26 = scalar_lea.vmem %s1136_s1, %s792_s20 }
  0x11   : > { %v290_v0 = vld [vmem:[%s257_s26] sm:$0xff]  ;;  %v291_v1 = vld [vmem:[%s257_s26 + $0x8] sm:$0xff]  ;;  %v292_v2 = vld [vmem:[%s257_s26 + $0x10] sm:$0xff]  ;;  %s1025_s29 = scalar_lea.vmem %s1138_s3, %s1145_s15  ;;  %s1031_s6 = scalar_lea.vmem %s1139_s4, %s1145_s15 }
  0x12   : > { %v858_v3 = vpack.c.bf16 %v291_v1, %v290_v0  ;;  %v293_v4 = vld [vmem:[%s257_s26 + $0x18] sm:$0xff]  ;;  %v294_v6 = vld [vmem:[%s257_s26 + $0x20] sm:$0xff]  ;;  %v295_v7 = vld [vmem:[%s257_s26 + $0x28] sm:$0xff]  ;;  %514 = vst.msk [vmem:[%s1025_s29] sm:$0x1] %vm513_vm1, %v931_v28  ;;  %s1042_s9 = scalar_lea.vmem %s1137_s2, %s791_s19 }
  0x13   : > { %v862_v5 = vpack.c.bf16 %v293_v4, %v292_v2  ;;  %v274_v8 = vld [vmem:[%s984_s23] sm:$0xff]  ;;  %v866_v9 = vpack.c.bf16 %v295_v7, %v294_v6  ;;  %v296_v11 = vld [vmem:[%s257_s26 + $0x30] sm:$0xff]  ;;  %v297_v12 = vld [vmem:[%s257_s26 + $0x38] sm:$0xff]  ;;  %515 = vst.msk [vmem:[%s1031_s6] sm:$0x1] %vm513_vm1, %v931_v28 }
  0x14   : > { %859 = vmatprep.subr.bf16.mxu0 %v858_v3  ;;  %874 = vmatprep.subr.bf16.mxu1 %v858_v3  ;;  %v282_v10 = vld [vmem:[%s984_s23 + $0x40] sm:$0xff]  ;;  %v870_v13 = vpack.c.bf16 %v297_v12, %v296_v11  ;;  %v275_v14 = vld [vmem:[%s984_s23 + $0x8] sm:$0xff]  ;;  %v276_v15 = vld [vmem:[%s984_s23 + $0x10] sm:$0xff] }
  0x15   : > { %861 = vmatpush3.bf16.msra.mxu0 %v858_v3  ;;  %834 = vmatprep.mubr.msk.f32.mxu0 %vm298_vm0, %v274_v8  ;;  %v283_v16 = vld [vmem:[%s984_s23 + $0x48] sm:$0xff]  ;;  %v284_v17 = vld [vmem:[%s984_s23 + $0x50] sm:$0xff]  ;;  %v277_v18 = vld [vmem:[%s984_s23 + $0x18] sm:$0xff] }
  0x16   : > { %863 = vmatprep.subr.bf16.mxu0 %v862_v5  ;;  %878 = vmatpush3.bf16.msra.mxu1 %v858_v3  ;;  %v278_v19 = vld [vmem:[%s984_s23 + $0x20] sm:$0xff]  ;;  %v285_v20 = vld [vmem:[%s984_s23 + $0x58] sm:$0xff]  ;;  %v279_v22 = vld [vmem:[%s984_s23 + $0x28] sm:$0xff] }
  0x17   : > { %875 = vmatprep.subr.bf16.mxu1 %v862_v5  ;;  %846 = vmatprep.mubr.msk.f32.mxu1 %vm298_vm0, %v282_v10  ;;  %v286_v21 = vld [vmem:[%s984_s23 + $0x60] sm:$0xff]  ;;  %v280_v23 = vld [vmem:[%s984_s23 + $0x30] sm:$0xff]  ;;  %v287_v24 = vld [vmem:[%s984_s23 + $0x68] sm:$0xff] }
  0x18   : > { %v288_v25 = vld [vmem:[%s984_s23 + $0x70] sm:$0xff]  ;;  %v281_v26 = vld [vmem:[%s984_s23 + $0x38] sm:$0xff] }
  0x19   : > { %865 = vmatpush3.bf16.msra.mxu0 %v862_v5  ;;  %v289_v27 = vld [vmem:[%s984_s23 + $0x78] sm:$0xff] }
  0x1a   : > { %867 = vmatprep.subr.bf16.mxu0 %v866_v9  ;;  %879 = vmatpush3.bf16.msra.mxu1 %v862_v5 }
  0x1b   : > { %876 = vmatprep.subr.bf16.mxu1 %v866_v9 }
  0x1d   : > { %869 = vmatpush3.bf16.msra.mxu0 %v866_v9 }
  0x1e   : > { %871 = vmatprep.subr.bf16.mxu0 %v870_v13  ;;  %880 = vmatpush3.bf16.msra.mxu1 %v866_v9 }
  0x1f   : > { %877 = vmatprep.subr.bf16.mxu1 %v870_v13 }
  0x21   : > { %873 = vmatpush3.bf16.msra.mxu0 %v870_v13 }
  0x22   : > { %881 = vmatpush3.bf16.msra.mxu1 %v870_v13 }
  0x24   : > { %835 = vmatmul.mubr.msk.f32.vlgmr.msra.gmra.mrb[0].mxu0 %vm298_vm0, %v275_v14 }
  0x25   : > { %837 = vmatprep.mubr.msk.f32.mxu0 %vm298_vm0, %v276_v15  ;;  %847 = vmatmul.mubr.msk.f32.vlgmr.msra.gmra.mrb[0].mxu1 %vm298_vm0, %v283_v16 }
  0x26   : > { %849 = vmatprep.mubr.msk.f32.mxu1 %vm298_vm0, %v284_v17 }
  0x28   : > { %838 = vmatmul.mubr.msk.f32.gmra.mrb[2].mxu0 %vm298_vm0, %v277_v18 }
  0x29   : > { %840 = vmatprep.mubr.msk.f32.mxu0 %vm298_vm0, %v278_v19  ;;  %850 = vmatmul.mubr.msk.f32.gmra.mrb[2].mxu1 %vm298_vm0, %v285_v20 }
  0x2a   : > { %852 = vmatprep.mubr.msk.f32.mxu1 %vm298_vm0, %v286_v21 }
  0x2c   : > { %841 = vmatmul.mubr.msk.f32.gmra.mrb[4].mxu0 %vm298_vm0, %v279_v22 }
  0x2d   : > { %843 = vmatprep.mubr.msk.f32.mxu0 %vm298_vm0, %v280_v23  ;;  %853 = vmatmul.mubr.msk.f32.gmra.mrb[4].mxu1 %vm298_vm0, %v287_v24 }
  0x2e   : > { %855 = vmatprep.mubr.msk.f32.mxu1 %vm298_vm0, %v288_v25 }
  0x30   : > { %844 = vmatmul.mubr.msk.f32.gmra.mrb[6].mxu0 %vm298_vm0, %v281_v26 }
  0x31   : > { %856 = vmatmul.mubr.msk.f32.gmra.mrb[6].mxu1 %vm298_vm0, %v289_v27 }
  0xf7   : > { %v836_v29 = vpop.f32.mrb[0].mxu0 }
  0xf8   : > { %494 = vst.msk [vmem:[%s1042_s9 + $0x8] sm:$0xff] %vm492_vm2, %v836_v29  ;;  %v518_v30 = vsel %vm492_vm2, %v836_v29, 0.0  ;;  %v559_v31 = vmul.f32 %v836_v29, %v836_v29  ;;  %v413_v32 = vpop.f32.mrb[1].mxu0  ;;  %v1047_v33 = vpop.f32.mrb[0].mxu1 }
  0xf9   : > { %493 = vst.msk [vmem:[%s1042_s9] sm:$0xff] %vm492_vm2, %v413_v32  ;;  %v517_v34 = vsel %vm492_vm2, %v413_v32, 0.0  ;;  %v558_v35 = vmul.f32 %v413_v32, %v413_v32  ;;  %502 = vst.msk [vmem:[%s1042_s9 + $0x48] sm:$0xff] %vm492_vm2, %v1047_v33  ;;  %v453_v36 = vpop.f32.mrb[1].mxu1  ;;  %v567_v20 = vmul.f32 %v1047_v33, %v1047_v33  ;;  %v534_v25 = vsel %vm492_vm2, %v1047_v33, 0.0 }
  0xfa   : > { %v575_v37 = vsel %vm492_vm2, %v559_v31, 0.0  ;;  %v519_v38 = vadd.f32 %v518_v30, %v517_v34  ;;  %501 = vst.msk [vmem:[%s1042_s9 + $0x40] sm:$0xff] %vm492_vm2, %v453_v36  ;;  %v566_v5 = vmul.f32 %v453_v36, %v453_v36  ;;  %v532_v16 = vsel %vm492_vm2, %v453_v36, 0.0 }
  0xfb   : > { %v574_v39 = vsel %vm492_vm2, %v558_v35, 0.0  ;;  %v839_v40 = vpop.f32.mrb[2].mxu0  ;;  %v591_v29 = vsel %vm492_vm2, %v567_v20, 0.0 }
  0xfc   : > { %v576_v41 = vadd.f32 %v575_v37, %v574_v39  ;;  %496 = vst.msk [vmem:[%s1042_s9 + $0x18] sm:$0xff] %vm492_vm2, %v839_v40  ;;  %v423_v42 = vpop.f32.mrb[3].mxu0  ;;  %v1061_v43 = vpop.f32.mrb[2].mxu1  ;;  %v561_v44 = vmul.f32 %v839_v40, %v839_v40  ;;  %v522_v49 = vsel %vm492_vm2, %v839_v40, 0.0  ;;  %v589_v21 = vsel %vm492_vm2, %v566_v5, 0.0 }
  0xfd   : > { %495 = vst.msk [vmem:[%s1042_s9 + $0x10] sm:$0xff] %vm492_vm2, %v423_v42  ;;  %v520_v45 = vsel %vm492_vm2, %v423_v42, 0.0  ;;  %v560_v46 = vmul.f32 %v423_v42, %v423_v42  ;;  %504 = vst.msk [vmem:[%s1042_s9 + $0x58] sm:$0xff] %vm492_vm2, %v1061_v43  ;;  %v463_v47 = vpop.f32.mrb[3].mxu1  ;;  %v569_v30 = vmul.f32 %v1061_v43, %v1061_v43  ;;  %v538_v36 = vsel %vm492_vm2, %v1061_v43, 0.0 }
  0xfe   : > { %v521_v48 = vadd.f32 %v520_v45, %v519_v38  ;;  %503 = vst.msk [vmem:[%s1042_s9 + $0x50] sm:$0xff] %vm492_vm2, %v463_v47  ;;  %v579_v56 = vsel %vm492_vm2, %v561_v44, 0.0  ;;  %v568_v22 = vmul.f32 %v463_v47, %v463_v47  ;;  %v536_v26 = vsel %vm492_vm2, %v463_v47, 0.0 }
  0xff   : > { %v577_v50 = vsel %vm492_vm2, %v560_v46, 0.0  ;;  %v842_v51 = vpop.f32.mrb[4].mxu0  ;;  %v595_v39 = vsel %vm492_vm2, %v569_v30, 0.0 }
 0x100   : > { %v578_v52 = vadd.f32 %v577_v50, %v576_v41  ;;  %498 = vst.msk [vmem:[%s1042_s9 + $0x28] sm:$0xff] %vm492_vm2, %v842_v51  ;;  %v433_v53 = vpop.f32.mrb[5].mxu0  ;;  %v523_v54 = vadd.f32 %v522_v49, %v521_v48  ;;  %v854_v55 = vpop.f32.mrb[4].mxu1  ;;  %v563_v57 = vmul.f32 %v842_v51, %v842_v51  ;;  %v526_v63 = vsel %vm492_vm2, %v842_v51, 0.0 }
 0x101   : > { %497 = vst.msk [vmem:[%s1042_s9 + $0x20] sm:$0xff] %vm492_vm2, %v433_v53  ;;  %v524_v58 = vsel %vm492_vm2, %v433_v53, 0.0  ;;  %v562_v59 = vmul.f32 %v433_v53, %v433_v53  ;;  %506 = vst.msk [vmem:[%s1042_s9 + $0x68] sm:$0xff] %vm492_vm2, %v854_v55  ;;  %v473_v60 = vpop.f32.mrb[5].mxu1  ;;  %v593_v31 = vsel %vm492_vm2, %v568_v22, 0.0  ;;  %v571_v40 = vmul.f32 %v854_v55, %v854_v55 }
 0x102   : > { %v525_v61 = vadd.f32 %v524_v58, %v523_v54  ;;  %v580_v62 = vadd.f32 %v579_v56, %v578_v52  ;;  %505 = vst.msk [vmem:[%s1042_s9 + $0x60] sm:$0xff] %vm492_vm2, %v473_v60  ;;  %v583_v7 = vsel %vm492_vm2, %v563_v57, 0.0  ;;  %v570_v32 = vmul.f32 %v473_v60, %v473_v60 }
 0x103   : > { %v581_v0 = vsel %vm492_vm2, %v562_v59, 0.0  ;;  %v845_v1 = vpop.f32.mrb[6].mxu0  ;;  %v540_v37 = vsel %vm492_vm2, %v473_v60, 0.0  ;;  %v542_v46 = vsel %vm492_vm2, %v854_v55, 0.0  ;;  %v599_v43 = vsel %vm492_vm2, %v571_v40, 0.0 }
 0x104   : > { %v582_v2 = vadd.f32 %v581_v0, %v580_v62  ;;  %500 = vst.msk [vmem:[%s1042_s9 + $0x38] sm:$0xff] %vm492_vm2, %v845_v1  ;;  %v443_v3 = vpop.f32.mrb[7].mxu0  ;;  %v527_v4 = vadd.f32 %v526_v63, %v525_v61  ;;  %v857_v6 = vpop.f32.mrb[6].mxu1  ;;  %v565_v8 = vmul.f32 %v845_v1, %v845_v1  ;;  %v530_v14 = vsel %vm492_vm2, %v845_v1, 0.0 }
 0x105   : > { %499 = vst.msk [vmem:[%s1042_s9 + $0x30] sm:$0xff] %vm492_vm2, %v443_v3  ;;  %v528_v9 = vsel %vm492_vm2, %v443_v3, 0.0  ;;  %v564_v10 = vmul.f32 %v443_v3, %v443_v3  ;;  %508 = vst.msk [vmem:[%s1042_s9 + $0x78] sm:$0xff] %vm492_vm2, %v857_v6  ;;  %v483_v11 = vpop.f32.mrb[7].mxu1  ;;  %v597_v41 = vsel %vm492_vm2, %v570_v32, 0.0  ;;  %v573_v50 = vmul.f32 %v857_v6, %v857_v6 }
 0x106   : > { %v529_v12 = vadd.f32 %v528_v9, %v527_v4  ;;  %v584_v13 = vadd.f32 %v583_v7, %v582_v2  ;;  %507 = vst.msk [vmem:[%s1042_s9 + $0x70] sm:$0xff] %vm492_vm2, %v483_v11  ;;  %v587_v19 = vsel %vm492_vm2, %v565_v8, 0.0  ;;  %v572_v42 = vmul.f32 %v483_v11, %v483_v11  ;;  %v516_v4 = vld [vmem:[%s1025_s29] sm:$0x1] }
 0x107   : > { %v585_v15 = vsel %vm492_vm2, %v564_v10, 0.0  ;;  %v544_v47 = vsel %vm492_vm2, %v483_v11, 0.0  ;;  %v546_v54 = vsel %vm492_vm2, %v857_v6, 0.0  ;;  %v603_v58 = vsel %vm492_vm2, %v573_v50, 0.0  ;;  %v557_v7 = vld [vmem:[%s1031_s6] sm:$0x1] }
 0x108   : > { %v531_v17 = vadd.f32 %v530_v14, %v529_v12  ;;  %v586_v18 = vadd.f32 %v585_v15, %v584_v13  ;;  %v601_v51 = vsel %vm492_vm2, %v572_v42, 0.0 }
 0x10a   : > { %v588_v23 = vadd.f32 %v587_v19, %v586_v18  ;;  %v533_v24 = vadd.f32 %v532_v16, %v531_v17 }
 0x10c   : > { %v590_v27 = vadd.f32 %v589_v21, %v588_v23  ;;  %v535_v28 = vadd.f32 %v534_v25, %v533_v24 }
 0x10e   : > { %v537_v34 = vadd.f32 %v536_v26, %v535_v28  ;;  %v592_v35 = vadd.f32 %v591_v29, %v590_v27 }
 0x110   : > { %v594_v33 = vadd.f32 %v593_v31, %v592_v35  ;;  %v539_v38 = vadd.f32 %v538_v36, %v537_v34 }
 0x112   : > { %v541_v44 = vadd.f32 %v540_v37, %v539_v38  ;;  %v596_v45 = vadd.f32 %v595_v39, %v594_v33 }
 0x114   : > { %v598_v48 = vadd.f32 %v597_v41, %v596_v45  ;;  %v543_v49 = vadd.f32 %v542_v46, %v541_v44 }
 0x116   : > { %v545_v52 = vadd.f32 %v544_v47, %v543_v49  ;;  %v600_v53 = vadd.f32 %v599_v43, %v598_v48 }
 0x118   : > { %v547_v56 = vadd.f32 %v546_v54, %v545_v52  ;;  %v602_v57 = vadd.f32 %v601_v51, %v600_v53 }
 0x11a   : > { %v548_v55 = vrot.slane %v547_v56, 4  ;;  %v604_v59 = vadd.f32 %v603_v58, %v602_v57 }
 0x11c   : > { %v549_v60 = vadd.f32 %v548_v55, %v547_v56  ;;  %v605_v61 = vrot.slane %v604_v59, 4 }
 0x11e   : > { %v550_v62 = vrot.slane %v549_v60, 2  ;;  %v606_v63 = vadd.f32 %v605_v61, %v604_v59 }
 0x120   : > { %v551_v0 = vadd.f32 %v550_v62, %v549_v60  ;;  %v607_v1 = vrot.slane %v606_v63, 2 }
 0x122   : > { %v552_v2 = vrot.slane %v551_v0, 1  ;;  %v608_v3 = vadd.f32 %v607_v1, %v606_v63 }
 0x124   : > { %v553_v5 = vadd.f32 %v552_v2, %v551_v0  ;;  %v609_v6 = vrot.slane %v608_v3, 1 }
 0x126   : > { %v554_v8 = vadd.f32 %v553_v5, %v516_v4  ;;  %v610_v9 = vadd.f32 %v609_v6, %v608_v3 }
 0x128   : > { %556 = vst.msk [vmem:[%s1025_s29] sm:$0x1] %vm513_vm1, %v554_v8  ;;  %v611_v10 = vadd.f32 %v610_v9, %v557_v7 }
 0x12a   : > { %612 = vst.msk [vmem:[%s1031_s6] sm:$0x1] %vm513_vm1, %v611_v10 }
 0x12b PF: > { %s15_s17 = sadd.s32 1, %s929_s17   ;;  %s1140_s15 = smov %s925_s16 }
 0x12c   : > { %p12_p5 = scmp.ge.s32.totalorder %s15_s17, 6   ;;  %s1141_s16 = smov %s1143_s18 }
 0x12e   :  { %14 = sbr.rel (!%p12_p5) target bundleno = 2 (0x2), region = 89 }

// kernel: svhn_generator_forward.12
= control target key start
LH: loop header
LB: loop body
LE: loop exit
PB: predicated region body
PF: predicated region fallthrough
CT: control target
= control target key end

     0   :  { %s475_s12 = smov 0   ;;  %s477_s13 = smov 0   ;;  %s602_s0 = inlined_call_operand.vmem [shape: f32[4,128,8], index: 0, kind: input, shape index: {}]   ;;  %s603_s1 = inlined_call_operand.vmem [shape: f32[1,1,8], index: 1, kind: input, shape index: {}]   ;;  %s604_s2 = inlined_call_operand.vmem [shape: f32[1,1,8], index: 2, kind: input, shape index: {}]   ;;  %s605_s3 = inlined_call_operand.vmem [shape: f32[4,128,8], index: 3, kind: output, shape index: {}]  }
   0x1   :  { %s479_s14 = smov 0  }
   0x2 LB: > { %s25_s15 = sadd.s32 1, %s449_s13  ;;  %p396_p0 = scmp.ge.s32.totalorder %s453_s14, 1  ;;  %s453_s14 = sphi %s479_s14, %s13_s14   ;;  %s449_s13 = sphi %s477_s13, %s607_s13   ;;  %s445_s12 = sphi %s475_s12, %s606_s12  }
   0x3   : > { %p27_p1 = scmp.ge.s32.totalorder %s25_s15, 4  ;;  %p158_p2 = scmp.lt.s32.totalorder %s453_s14, 5 }
   0x5   : > { %s609_s15 = smov (%p27_p1, %s25_s15), 0  ;;  %p159_p3 = pnand %p396_p0, %p158_p2 }
   0x6   : > { %p191_p4 = scmp.lt.s32.totalorder (!%p159_p3), %s445_s12, 3  ;;  %v496_v0 = vld [vmem:[%s603_s1] ss:$0 sm:$0xff] (!%p159_p3)  ;;  %vm288_vm0 = vcmask (!%p159_p3), 64512  }
   0x7   : > { %162 = sbr.rel (%p159_p3) target bundleno = 35 (0x23), region = 32  ;;  %v506_v1 = vld [vmem:[%s604_s2] ss:$0 sm:$0xff] (!%p159_p3) }
   0xe   : > { %s611_s12 = smov (!%p191_p4, %s445_s12), 3 }
   0xf   : > { %s405_s16 = sshll.u32 %s611_s12, 7 }
  0x10   : > { %s501_s21 = scalar_lea.vmem %s602_s0, %s405_s16  ;;  %s529_s26 = scalar_lea.vmem %s605_s3, %s405_s16 }
  0x11   : > { %v210_v2 = vld [vmem:[%s501_s21] sm:$0xff]  ;;  %v211_v3 = vld [vmem:[%s501_s21 + $0x8] sm:$0xff]  ;;  %v212_v4 = vld [vmem:[%s501_s21 + $0x10] sm:$0xff] }
  0x12   : > { %v233_v5 = vmul.f32 %v496_v0, %v210_v2  ;;  %v234_v6 = vmul.f32 %v496_v0, %v211_v3  ;;  %v235_v7 = vmul.f32 %v496_v0, %v212_v4  ;;  %v213_v8 = vld [vmem:[%s501_s21 + $0x18] sm:$0xff]  ;;  %v214_v9 = vld [vmem:[%s501_s21 + $0x20] sm:$0xff]  ;;  %v215_v10 = vld [vmem:[%s501_s21 + $0x28] sm:$0xff] }
  0x13   : > { %v236_v11 = vmul.f32 %v496_v0, %v213_v8  ;;  %v237_v12 = vmul.f32 %v496_v0, %v214_v9  ;;  %v238_v13 = vmul.f32 %v496_v0, %v215_v10  ;;  %v216_v14 = vld [vmem:[%s501_s21 + $0x30] sm:$0xff]  ;;  %v217_v15 = vld [vmem:[%s501_s21 + $0x38] sm:$0xff]  ;;  %v218_v24 = vld [vmem:[%s501_s21 + $0x40] sm:$0xff] }
  0x14   : > { %v256_v16 = vadd.f32 %v506_v1, %v233_v5  ;;  %v257_v17 = vadd.f32 %v506_v1, %v234_v6  ;;  %v258_v18 = vadd.f32 %v506_v1, %v235_v7  ;;  %v239_v19 = vmul.f32 %v496_v0, %v216_v14  ;;  %v219_v25 = vld [vmem:[%s501_s21 + $0x48] sm:$0xff]  ;;  %v220_v26 = vld [vmem:[%s501_s21 + $0x50] sm:$0xff]  ;;  %v221_v31 = vld [vmem:[%s501_s21 + $0x58] sm:$0xff] }
  0x15   : > { %v259_v20 = vadd.f32 %v506_v1, %v236_v11  ;;  %v260_v21 = vadd.f32 %v506_v1, %v237_v12  ;;  %v261_v22 = vadd.f32 %v506_v1, %v238_v13  ;;  %v240_v23 = vmul.f32 %v496_v0, %v217_v15  ;;  %v222_v32 = vld [vmem:[%s501_s21 + $0x60] sm:$0xff]  ;;  %v223_v33 = vld [vmem:[%s501_s21 + $0x68] sm:$0xff]  ;;  %v224_v38 = vld [vmem:[%s501_s21 + $0x70] sm:$0xff] }
  0x16   : > { %v272_v27 = vmax.f32 %v256_v16, 0.0  ;;  %v273_v28 = vmax.f32 %v257_v17, 0.0  ;;  %v274_v29 = vmax.f32 %v258_v18, 0.0  ;;  %v262_v30 = vadd.f32 %v506_v1, %v239_v19  ;;  %v225_v43 = vld [vmem:[%s501_s21 + $0x78] sm:$0xff] }
  0x17   : > { %v275_v34 = vmax.f32 %v259_v20, 0.0  ;;  %v276_v35 = vmax.f32 %v260_v21, 0.0  ;;  %v277_v36 = vmax.f32 %v261_v22, 0.0  ;;  %v263_v37 = vadd.f32 %v506_v1, %v240_v23 }
  0x18   : > { %289 = vst.msk [vmem:[%s529_s26] sm:$0xff] %vm288_vm0, %v272_v27  ;;  %290 = vst.msk [vmem:[%s529_s26 + $0x8] sm:$0xff] %vm288_vm0, %v273_v28  ;;  %v278_v39 = vmax.f32 %v262_v30, 0.0  ;;  %v241_v40 = vmul.f32 %v496_v0, %v218_v24  ;;  %v242_v41 = vmul.f32 %v496_v0, %v219_v25  ;;  %v243_v42 = vmul.f32 %v496_v0, %v220_v26 }
  0x19   : > { %291 = vst.msk [vmem:[%s529_s26 + $0x10] sm:$0xff] %vm288_vm0, %v274_v29  ;;  %292 = vst.msk [vmem:[%s529_s26 + $0x18] sm:$0xff] %vm288_vm0, %v275_v34  ;;  %v279_v44 = vmax.f32 %v263_v37, 0.0  ;;  %v244_v45 = vmul.f32 %v496_v0, %v221_v31  ;;  %v245_v46 = vmul.f32 %v496_v0, %v222_v32  ;;  %v246_v47 = vmul.f32 %v496_v0, %v223_v33 }
  0x1a   : > { %293 = vst.msk [vmem:[%s529_s26 + $0x20] sm:$0xff] %vm288_vm0, %v276_v35  ;;  %294 = vst.msk [vmem:[%s529_s26 + $0x28] sm:$0xff] %vm288_vm0, %v277_v36  ;;  %v264_v48 = vadd.f32 %v506_v1, %v241_v40  ;;  %v265_v49 = vadd.f32 %v506_v1, %v242_v41  ;;  %v266_v50 = vadd.f32 %v506_v1, %v243_v42 }
  0x1b   : > { %295 = vst.msk [vmem:[%s529_s26 + $0x30] sm:$0xff] %vm288_vm0, %v278_v39  ;;  %v247_v51 = vmul.f32 %v496_v0, %v224_v38  ;;  %296 = vst.msk [vmem:[%s529_s26 + $0x38] sm:$0xff] %vm288_vm0, %v279_v44  ;;  %v267_v52 = vadd.f32 %v506_v1, %v244_v45  ;;  %v268_v53 = vadd.f32 %v506_v1, %v245_v46 }
  0x1c   : > { %v269_v54 = vadd.f32 %v506_v1, %v246_v47  ;;  %v248_v55 = vmul.f32 %v496_v0, %v225_v43  ;;  %v280_v56 = vmax.f32 %v264_v48, 0.0  ;;  %v281_v57 = vmax.f32 %v265_v49, 0.0 }
  0x1d   : > { %v282_v58 = vmax.f32 %v266_v50, 0.0  ;;  %v270_v59 = vadd.f32 %v506_v1, %v247_v51  ;;  %v283_v60 = vmax.f32 %v267_v52, 0.0  ;;  %v284_v61 = vmax.f32 %v268_v53, 0.0 }
  0x1e   : > { %v285_v62 = vmax.f32 %v269_v54, 0.0  ;;  %v271_v63 = vadd.f32 %v506_v1, %v248_v55  ;;  %297 = vst.msk [vmem:[%s529_s26 + $0x40] sm:$0xff] %vm288_vm0, %v280_v56  ;;  %298 = vst.msk [vmem:[%s529_s26 + $0x48] sm:$0xff] %vm288_vm0, %v281_v57 }
  0x1f   : > { %299 = vst.msk [vmem:[%s529_s26 + $0x50] sm:$0xff] %vm288_vm0, %v282_v58  ;;  %v286_v2 = vmax.f32 %v270_v59, 0.0  ;;  %300 = vst.msk [vmem:[%s529_s26 + $0x58] sm:$0xff] %vm288_vm0, %v283_v60 }
  0x20   : > { %301 = vst.msk [vmem:[%s529_s26 + $0x60] sm:$0xff] %vm288_vm0, %v284_v61  ;;  %302 = vst.msk [vmem:[%s529_s26 + $0x68] sm:$0xff] %vm288_vm0, %v285_v62  ;;  %v287_v0 = vmax.f32 %v271_v63, 0.0 }
  0x21   : > { %303 = vst.msk [vmem:[%s529_s26 + $0x70] sm:$0xff] %vm288_vm0, %v286_v2 }
  0x22   : > { %304 = vst.msk [vmem:[%s529_s26 + $0x78] sm:$0xff] %vm288_vm0, %v287_v0 }
  0x23 PF: > { %s13_s14 = sadd.s32 1, %s453_s14   ;;  %s606_s12 = smov %s449_s13 }
  0x24   : > { %p10_p5 = scmp.ge.s32.totalorder %s13_s14, 6   ;;  %s607_s13 = smov %s609_s15 }
  0x26   :  { %12 = sbr.rel (!%p10_p5) target bundleno = 2 (0x2), region = 62 }

// kernel: svhn_generator_forward.14
= control target key start
LH: loop header
LB: loop body
LE: loop exit
PB: predicated region body
PF: predicated region fallthrough
CT: control target
= control target key end

     0   :  { %s715_s12 = smov 0   ;;  %s717_s13 = smov 0   ;;  %s1082_s0 = inlined_call_operand.vmem [shape: f32[4,512,4], index: 0, kind: input, shape index: {}]   ;;  %s1083_s1 = inlined_call_operand.vmem [shape: f32[1,1,4], index: 1, kind: input, shape index: {}]   ;;  %s1084_s2 = inlined_call_operand.vmem [shape: f32[1,1,4], index: 2, kind: input, shape index: {}]   ;;  %s1085_s3 = inlined_call_operand.vmem [shape: f32[4,512,4], index: 3, kind: output, shape index: {}]  }
   0x1   :  { %s719_s14 = smov 0  }
   0x2 LB: > { %s25_s15 = sadd.s32 1, %s689_s13  ;;  %p636_p0 = scmp.ge.s32.totalorder %s693_s14, 1  ;;  %s693_s14 = sphi %s719_s14, %s13_s14   ;;  %s689_s13 = sphi %s717_s13, %s1087_s13   ;;  %s685_s12 = sphi %s715_s12, %s1086_s12  }
   0x3   : > { %p27_p1 = scmp.ge.s32.totalorder %s25_s15, 4  ;;  %p158_p2 = scmp.lt.s32.totalorder %s693_s14, 5 }
   0x5   : > { %s1089_s15 = smov (%p27_p1, %s25_s15), 0  ;;  %p159_p3 = pnand %p636_p0, %p158_p2 }
   0x6   : > { %p191_p4 = scmp.lt.s32.totalorder (!%p159_p3), %s685_s12, 3  ;;  %v736_v0 = vld [vmem:[%s1083_s1] ss:$0 sm:$0xff] (!%p159_p3)  ;;  %vm480_vm0 = vcmask (!%p159_p3), 31744  }
   0x7   : > { %162 = sbr.rel (%p159_p3) target bundleno = 71 (0x47), region = 32  ;;  %v746_v1 = vld [vmem:[%s1084_s2] ss:$0 sm:$0xff] (!%p159_p3) }
   0xe   : > { %s1091_s12 = smov (!%p191_p4, %s685_s12), 3 }
   0xf   : > { %s645_s16 = sshll.u32 %s1091_s12, 9 }
  0x10   : > { %s741_s21 = scalar_lea.vmem %s1082_s0, %s645_s16  ;;  %s769_s26 = scalar_lea.vmem %s1085_s3, %s645_s16 }
  0x11   : > { %v210_v2 = vld [vmem:[%s741_s21] sm:$0xff]  ;;  %v211_v3 = vld [vmem:[%s741_s21 + $0x8] sm:$0xff]  ;;  %v212_v4 = vld [vmem:[%s741_s21 + $0x10] sm:$0xff] }
  0x12   : > { %v281_v5 = vmul.f32 %v736_v0, %v210_v2  ;;  %v282_v6 = vmul.f32 %v736_v0, %v211_v3  ;;  %v283_v7 = vmul.f32 %v736_v0, %v212_v4  ;;  %v213_v8 = vld [vmem:[%s741_s21 + $0x18] sm:$0xff]  ;;  %v214_v9 = vld [vmem:[%s741_s21 + $0x20] sm:$0xff]  ;;  %v215_v10 = vld [vmem:[%s741_s21 + $0x28] sm:$0xff] }
  0x13   : > { %v284_v11 = vmul.f32 %v736_v0, %v213_v8  ;;  %v285_v12 = vmul.f32 %v736_v0, %v214_v9  ;;  %v286_v13 = vmul.f32 %v736_v0, %v215_v10  ;;  %v216_v14 = vld [vmem:[%s741_s21 + $0x30] sm:$0xff]  ;;  %v217_v15 = vld [vmem:[%s741_s21 + $0x38] sm:$0xff]  ;;  %v218_v24 = vld [vmem:[%s741_s21 + $0x40] sm:$0xff] }
  0x14   : > { %v352_v16 = vadd.f32 %v746_v1, %v281_v5  ;;  %v353_v17 = vadd.f32 %v746_v1, %v282_v6  ;;  %v354_v18 = vadd.f32 %v746_v1, %v283_v7  ;;  %v287_v19 = vmul.f32 %v736_v0, %v216_v14  ;;  %v219_v25 = vld [vmem:[%s741_s21 + $0x48] sm:$0xff]  ;;  %v220_v26 = vld [vmem:[%s741_s21 + $0x50] sm:$0xff]  ;;  %v221_v31 = vld [vmem:[%s741_s21 + $0x58] sm:$0xff] }
  0x15   : > { %v355_v20 = vadd.f32 %v746_v1, %v284_v11  ;;  %v356_v21 = vadd.f32 %v746_v1, %v285_v12  ;;  %v357_v22 = vadd.f32 %v746_v1, %v286_v13  ;;  %v288_v23 = vmul.f32 %v736_v0, %v217_v15  ;;  %v222_v32 = vld [vmem:[%s741_s21 + $0x60] sm:$0xff]  ;;  %v223_v33 = vld [vmem:[%s741_s21 + $0x68] sm:$0xff]  ;;  %v224_v38 = vld [vmem:[%s741_s21 + $0x70] sm:$0xff] }
  0x16   : > { %v416_v27 = vmax.f32 %v352_v16, 0.0  ;;  %v417_v28 = vmax.f32 %v353_v17, 0.0  ;;  %v418_v29 = vmax.f32 %v354_v18, 0.0  ;;  %v358_v30 = vadd.f32 %v746_v1, %v287_v19  ;;  %v225_v43 = vld [vmem:[%s741_s21 + $0x78] sm:$0xff]  ;;  %v226_v56 = vld [vmem:[%s741_s21 + $0x80] sm:$0xff]  ;;  %v227_v57 = vld [vmem:[%s741_s21 + $0x88] sm:$0xff] }
  0x17   : > { %v419_v34 = vmax.f32 %v355_v20, 0.0  ;;  %v420_v35 = vmax.f32 %v356_v21, 0.0  ;;  %v421_v36 = vmax.f32 %v357_v22, 0.0  ;;  %v359_v37 = vadd.f32 %v746_v1, %v288_v23  ;;  %v228_v58 = vld [vmem:[%s741_s21 + $0x90] sm:$0xff]  ;;  %v229_v63 = vld [vmem:[%s741_s21 + $0x98] sm:$0xff]  ;;  %v230_v2 = vld [vmem:[%s741_s21 + $0xa0] sm:$0xff] }
  0x18   : > { %481 = vst.msk [vmem:[%s769_s26] sm:$0xff] %vm480_vm0, %v416_v27  ;;  %482 = vst.msk [vmem:[%s769_s26 + $0x8] sm:$0xff] %vm480_vm0, %v417_v28  ;;  %v422_v39 = vmax.f32 %v358_v30, 0.0  ;;  %v289_v40 = vmul.f32 %v736_v0, %v218_v24  ;;  %v290_v41 = vmul.f32 %v736_v0, %v219_v25  ;;  %v291_v42 = vmul.f32 %v736_v0, %v220_v26  ;;  %v231_v3 = vld [vmem:[%s741_s21 + $0xa8] sm:$0xff]  ;;  %v232_v8 = vld [vmem:[%s741_s21 + $0xb0] sm:$0xff] }
  0x19   : > { %483 = vst.msk [vmem:[%s769_s26 + $0x10] sm:$0xff] %vm480_vm0, %v418_v29  ;;  %484 = vst.msk [vmem:[%s769_s26 + $0x18] sm:$0xff] %vm480_vm0, %v419_v34  ;;  %v423_v44 = vmax.f32 %v359_v37, 0.0  ;;  %v292_v45 = vmul.f32 %v736_v0, %v221_v31  ;;  %v293_v46 = vmul.f32 %v736_v0, %v222_v32  ;;  %v294_v47 = vmul.f32 %v736_v0, %v223_v33  ;;  %v233_v13 = vld [vmem:[%s741_s21 + $0xb8] sm:$0xff]  ;;  %v234_v26 = vld [vmem:[%s741_s21 + $0xc0] sm:$0xff] }
  0x1a   : > { %485 = vst.msk [vmem:[%s769_s26 + $0x20] sm:$0xff] %vm480_vm0, %v420_v35  ;;  %486 = vst.msk [vmem:[%s769_s26 + $0x28] sm:$0xff] %vm480_vm0, %v421_v36  ;;  %v360_v48 = vadd.f32 %v746_v1, %v289_v40  ;;  %v361_v49 = vadd.f32 %v746_v1, %v290_v41  ;;  %v362_v50 = vadd.f32 %v746_v1, %v291_v42  ;;  %v235_v27 = vld [vmem:[%s741_s21 + $0xc8] sm:$0xff]  ;;  %v236_v28 = vld [vmem:[%s741_s21 + $0xd0] sm:$0xff] }
  0x1b   : > { %487 = vst.msk [vmem:[%s769_s26 + $0x30] sm:$0xff] %vm480_vm0, %v422_v39  ;;  %v295_v51 = vmul.f32 %v736_v0, %v224_v38  ;;  %488 = vst.msk [vmem:[%s769_s26 + $0x38] sm:$0xff] %vm480_vm0, %v423_v44  ;;  %v363_v52 = vadd.f32 %v746_v1, %v292_v45  ;;  %v364_v53 = vadd.f32 %v746_v1, %v293_v46  ;;  %v237_v33 = vld [vmem:[%s741_s21 + $0xd8] sm:$0xff]  ;;  %v238_v34 = vld [vmem:[%s741_s21 + $0xe0] sm:$0xff] }
  0x1c   : > { %v365_v54 = vadd.f32 %v746_v1, %v294_v47  ;;  %v296_v55 = vmul.f32 %v736_v0, %v225_v43  ;;  %v424_v59 = vmax.f32 %v360_v48, 0.0  ;;  %v425_v60 = vmax.f32 %v361_v49, 0.0  ;;  %v239_v35 = vld [vmem:[%s741_s21 + $0xe8] sm:$0xff]  ;;  %v240_v40 = vld [vmem:[%s741_s21 + $0xf0] sm:$0xff]  ;;  %v241_v45 = vld [vmem:[%s741_s21 + $0xf8] sm:$0xff] }
  0x1d   : > { %v426_v61 = vmax.f32 %v362_v50, 0.0  ;;  %v366_v62 = vadd.f32 %v746_v1, %v295_v51  ;;  %v427_v4 = vmax.f32 %v363_v52, 0.0  ;;  %v428_v5 = vmax.f32 %v364_v53, 0.0 }
  0x1e   : > { %v429_v6 = vmax.f32 %v365_v54, 0.0  ;;  %v367_v7 = vadd.f32 %v746_v1, %v296_v55  ;;  %489 = vst.msk [vmem:[%s769_s26 + $0x40] sm:$0xff] %vm480_vm0, %v424_v59  ;;  %490 = vst.msk [vmem:[%s769_s26 + $0x48] sm:$0xff] %vm480_vm0, %v425_v60  ;;  %v297_v10 = vmul.f32 %v736_v0, %v226_v56  ;;  %v298_v11 = vmul.f32 %v736_v0, %v227_v57  ;;  %v243_v59 = vld [vmem:[%s741_s21 + $0x108] sm:$0xff]  ;;  %v244_v60 = vld [vmem:[%s741_s21 + $0x110] sm:$0xff] }
  0x1f   : > { %491 = vst.msk [vmem:[%s769_s26 + $0x50] sm:$0xff] %vm480_vm0, %v426_v61  ;;  %v430_v9 = vmax.f32 %v366_v62, 0.0  ;;  %v299_v12 = vmul.f32 %v736_v0, %v228_v58  ;;  %492 = vst.msk [vmem:[%s769_s26 + $0x58] sm:$0xff] %vm480_vm0, %v427_v4  ;;  %v300_v15 = vmul.f32 %v736_v0, %v229_v63  ;;  %v301_v16 = vmul.f32 %v736_v0, %v230_v2  ;;  %v242_v58 = vld [vmem:[%s741_s21 + $0x100] sm:$0xff] }
  0x20   : > { %493 = vst.msk [vmem:[%s769_s26 + $0x60] sm:$0xff] %vm480_vm0, %v428_v5  ;;  %494 = vst.msk [vmem:[%s769_s26 + $0x68] sm:$0xff] %vm480_vm0, %v429_v6  ;;  %v431_v14 = vmax.f32 %v367_v7, 0.0  ;;  %v302_v17 = vmul.f32 %v736_v0, %v231_v3  ;;  %v368_v18 = vadd.f32 %v746_v1, %v297_v10  ;;  %v369_v19 = vadd.f32 %v746_v1, %v298_v11  ;;  %v245_v3 = vld [vmem:[%s741_s21 + $0x118] sm:$0xff]  ;;  %v246_v4 = vld [vmem:[%s741_s21 + $0x120] sm:$0xff] }
  0x21   : > { %495 = vst.msk [vmem:[%s769_s26 + $0x70] sm:$0xff] %vm480_vm0, %v430_v9  ;;  %v370_v20 = vadd.f32 %v746_v1, %v299_v12  ;;  %v303_v21 = vmul.f32 %v736_v0, %v232_v8  ;;  %v371_v22 = vadd.f32 %v746_v1, %v300_v15  ;;  %v372_v23 = vadd.f32 %v746_v1, %v301_v16  ;;  %v247_v5 = vld [vmem:[%s741_s21 + $0x128] sm:$0xff]  ;;  %v248_v10 = vld [vmem:[%s741_s21 + $0x130] sm:$0xff]  ;;  %v249_v15 = vld [vmem:[%s741_s21 + $0x138] sm:$0xff] }
  0x22   : > { %496 = vst.msk [vmem:[%s769_s26 + $0x78] sm:$0xff] %vm480_vm0, %v431_v14  ;;  %v373_v24 = vadd.f32 %v746_v1, %v302_v17  ;;  %v304_v25 = vmul.f32 %v736_v0, %v233_v13  ;;  %v432_v29 = vmax.f32 %v368_v18, 0.0  ;;  %v433_v30 = vmax.f32 %v369_v19, 0.0 }
  0x23   : > { %v434_v31 = vmax.f32 %v370_v20, 0.0  ;;  %v374_v32 = vadd.f32 %v746_v1, %v303_v21  ;;  %v435_v36 = vmax.f32 %v371_v22, 0.0  ;;  %v436_v37 = vmax.f32 %v372_v23, 0.0 }
  0x24   : > { %v437_v38 = vmax.f32 %v373_v24, 0.0  ;;  %v375_v39 = vadd.f32 %v746_v1, %v304_v25  ;;  %497 = vst.msk [vmem:[%s769_s26 + $0x80] sm:$0xff] %vm480_vm0, %v432_v29  ;;  %498 = vst.msk [vmem:[%s769_s26 + $0x88] sm:$0xff] %vm480_vm0, %v433_v30  ;;  %v305_v42 = vmul.f32 %v736_v0, %v234_v26  ;;  %v306_v43 = vmul.f32 %v736_v0, %v235_v27  ;;  %v251_v29 = vld [vmem:[%s741_s21 + $0x148] sm:$0xff]  ;;  %v252_v30 = vld [vmem:[%s741_s21 + $0x150] sm:$0xff] }
  0x25   : > { %499 = vst.msk [vmem:[%s769_s26 + $0x90] sm:$0xff] %vm480_vm0, %v434_v31  ;;  %v438_v41 = vmax.f32 %v374_v32, 0.0  ;;  %v307_v44 = vmul.f32 %v736_v0, %v236_v28  ;;  %500 = vst.msk [vmem:[%s769_s26 + $0x98] sm:$0xff] %vm480_vm0, %v435_v36  ;;  %v308_v47 = vmul.f32 %v736_v0, %v237_v33  ;;  %v309_v48 = vmul.f32 %v736_v0, %v238_v34  ;;  %v250_v28 = vld [vmem:[%s741_s21 + $0x140] sm:$0xff] }
  0x26   : > { %501 = vst.msk [vmem:[%s769_s26 + $0xa0] sm:$0xff] %vm480_vm0, %v436_v37  ;;  %502 = vst.msk [vmem:[%s769_s26 + $0xa8] sm:$0xff] %vm480_vm0, %v437_v38  ;;  %v439_v46 = vmax.f32 %v375_v39, 0.0  ;;  %v310_v49 = vmul.f32 %v736_v0, %v239_v35  ;;  %v376_v50 = vadd.f32 %v746_v1, %v305_v42  ;;  %v377_v51 = vadd.f32 %v746_v1, %v306_v43  ;;  %v253_v35 = vld [vmem:[%s741_s21 + $0x158] sm:$0xff]  ;;  %v254_v36 = vld [vmem:[%s741_s21 + $0x160] sm:$0xff] }
  0x27   : > { %503 = vst.msk [vmem:[%s769_s26 + $0xb0] sm:$0xff] %vm480_vm0, %v438_v41  ;;  %v378_v52 = vadd.f32 %v746_v1, %v307_v44  ;;  %v311_v53 = vmul.f32 %v736_v0, %v240_v40  ;;  %v379_v54 = vadd.f32 %v746_v1, %v308_v47  ;;  %v380_v55 = vadd.f32 %v746_v1, %v309_v48  ;;  %v255_v37 = vld [vmem:[%s741_s21 + $0x168] sm:$0xff]  ;;  %v256_v42 = vld [vmem:[%s741_s21 + $0x170] sm:$0xff]  ;;  %v257_v47 = vld [vmem:[%s741_s21 + $0x178] sm:$0xff] }
  0x28   : > { %504 = vst.msk [vmem:[%s769_s26 + $0xb8] sm:$0xff] %vm480_vm0, %v439_v46  ;;  %v381_v56 = vadd.f32 %v746_v1, %v310_v49  ;;  %v312_v57 = vmul.f32 %v736_v0, %v241_v45  ;;  %v440_v61 = vmax.f32 %v376_v50, 0.0  ;;  %v441_v62 = vmax.f32 %v377_v51, 0.0 }
  0x29   : > { %v442_v63 = vmax.f32 %v378_v52, 0.0  ;;  %v382_v2 = vadd.f32 %v746_v1, %v311_v53  ;;  %v443_v6 = vmax.f32 %v379_v54, 0.0  ;;  %v444_v7 = vmax.f32 %v380_v55, 0.0 }
  0x2a   : > { %v445_v8 = vmax.f32 %v381_v56, 0.0  ;;  %v383_v9 = vadd.f32 %v746_v1, %v312_v57  ;;  %505 = vst.msk [vmem:[%s769_s26 + $0xc0] sm:$0xff] %vm480_vm0, %v440_v61  ;;  %506 = vst.msk [vmem:[%s769_s26 + $0xc8] sm:$0xff] %vm480_vm0, %v441_v62  ;;  %v313_v12 = vmul.f32 %v736_v0, %v242_v58  ;;  %v314_v13 = vmul.f32 %v736_v0, %v243_v59  ;;  %v259_v61 = vld [vmem:[%s741_s21 + $0x188] sm:$0xff]  ;;  %v260_v62 = vld [vmem:[%s741_s21 + $0x190] sm:$0xff] }
  0x2b   : > { %507 = vst.msk [vmem:[%s769_s26 + $0xd0] sm:$0xff] %vm480_vm0, %v442_v63  ;;  %v446_v11 = vmax.f32 %v382_v2, 0.0  ;;  %v315_v14 = vmul.f32 %v736_v0, %v244_v60  ;;  %508 = vst.msk [vmem:[%s769_s26 + $0xd8] sm:$0xff] %vm480_vm0, %v443_v6  ;;  %v316_v17 = vmul.f32 %v736_v0, %v245_v3  ;;  %v317_v18 = vmul.f32 %v736_v0, %v246_v4  ;;  %v258_v60 = vld [vmem:[%s741_s21 + $0x180] sm:$0xff] }
  0x2c   : > { %509 = vst.msk [vmem:[%s769_s26 + $0xe0] sm:$0xff] %vm480_vm0, %v444_v7  ;;  %510 = vst.msk [vmem:[%s769_s26 + $0xe8] sm:$0xff] %vm480_vm0, %v445_v8  ;;  %v447_v16 = vmax.f32 %v383_v9, 0.0  ;;  %v318_v19 = vmul.f32 %v736_v0, %v247_v5  ;;  %v384_v20 = vadd.f32 %v746_v1, %v313_v12  ;;  %v385_v21 = vadd.f32 %v746_v1, %v314_v13  ;;  %v261_v5 = vld [vmem:[%s741_s21 + $0x198] sm:$0xff]  ;;  %v262_v6 = vld [vmem:[%s741_s21 + $0x1a0] sm:$0xff] }
  0x2d   : > { %511 = vst.msk [vmem:[%s769_s26 + $0xf0] sm:$0xff] %vm480_vm0, %v446_v11  ;;  %v386_v22 = vadd.f32 %v746_v1, %v315_v14  ;;  %v319_v23 = vmul.f32 %v736_v0, %v248_v10  ;;  %v387_v24 = vadd.f32 %v746_v1, %v316_v17  ;;  %v388_v25 = vadd.f32 %v746_v1, %v317_v18  ;;  %v263_v7 = vld [vmem:[%s741_s21 + $0x1a8] sm:$0xff]  ;;  %v264_v12 = vld [vmem:[%s741_s21 + $0x1b0] sm:$0xff]  ;;  %v265_v17 = vld [vmem:[%s741_s21 + $0x1b8] sm:$0xff] }
  0x2e   : > { %512 = vst.msk [vmem:[%s769_s26 + $0xf8] sm:$0xff] %vm480_vm0, %v447_v16  ;;  %v389_v26 = vadd.f32 %v746_v1, %v318_v19  ;;  %v320_v27 = vmul.f32 %v736_v0, %v249_v15  ;;  %v448_v31 = vmax.f32 %v384_v20, 0.0  ;;  %v449_v32 = vmax.f32 %v385_v21, 0.0 }
  0x2f   : > { %v450_v33 = vmax.f32 %v386_v22, 0.0  ;;  %v390_v34 = vadd.f32 %v746_v1, %v319_v23  ;;  %v451_v38 = vmax.f32 %v387_v24, 0.0  ;;  %v452_v39 = vmax.f32 %v388_v25, 0.0 }
  0x30   : > { %v453_v40 = vmax.f32 %v389_v26, 0.0  ;;  %v391_v41 = vadd.f32 %v746_v1, %v320_v27  ;;  %513 = vst.msk [vmem:[%s769_s26 + $0x100] sm:$0xff] %vm480_vm0, %v448_v31  ;;  %514 = vst.msk [vmem:[%s769_s26 + $0x108] sm:$0xff] %vm480_vm0, %v449_v32  ;;  %v321_v44 = vmul.f32 %v736_v0, %v250_v28  ;;  %v322_v45 = vmul.f32 %v736_v0, %v251_v29  ;;  %v267_v31 = vld [vmem:[%s741_s21 + $0x1c8] sm:$0xff]  ;;  %v268_v32 = vld [vmem:[%s741_s21 + $0x1d0] sm:$0xff] }
  0x31   : > { %515 = vst.msk [vmem:[%s769_s26 + $0x110] sm:$0xff] %vm480_vm0, %v450_v33  ;;  %v454_v43 = vmax.f32 %v390_v34, 0.0  ;;  %v323_v46 = vmul.f32 %v736_v0, %v252_v30  ;;  %516 = vst.msk [vmem:[%s769_s26 + $0x118] sm:$0xff] %vm480_vm0, %v451_v38  ;;  %v324_v49 = vmul.f32 %v736_v0, %v253_v35  ;;  %v325_v50 = vmul.f32 %v736_v0, %v254_v36  ;;  %v266_v30 = vld [vmem:[%s741_s21 + $0x1c0] sm:$0xff] }
  0x32   : > { %517 = vst.msk [vmem:[%s769_s26 + $0x120] sm:$0xff] %vm480_vm0, %v452_v39  ;;  %518 = vst.msk [vmem:[%s769_s26 + $0x128] sm:$0xff] %vm480_vm0, %v453_v40  ;;  %v455_v48 = vmax.f32 %v391_v41, 0.0  ;;  %v326_v51 = vmul.f32 %v736_v0, %v255_v37  ;;  %v392_v52 = vadd.f32 %v746_v1, %v321_v44  ;;  %v393_v53 = vadd.f32 %v746_v1, %v322_v45  ;;  %v269_v37 = vld [vmem:[%s741_s21 + $0x1d8] sm:$0xff]  ;;  %v270_v38 = vld [vmem:[%s741_s21 + $0x1e0] sm:$0xff] }
  0x33   : > { %519 = vst.msk [vmem:[%s769_s26 + $0x130] sm:$0xff] %vm480_vm0, %v454_v43  ;;  %v394_v54 = vadd.f32 %v746_v1, %v323_v46  ;;  %v327_v55 = vmul.f32 %v736_v0, %v256_v42  ;;  %v395_v56 = vadd.f32 %v746_v1, %v324_v49  ;;  %v396_v57 = vadd.f32 %v746_v1, %v325_v50  ;;  %v271_v39 = vld [vmem:[%s741_s21 + $0x1e8] sm:$0xff]  ;;  %v272_v44 = vld [vmem:[%s741_s21 + $0x1f0] sm:$0xff]  ;;  %v273_v49 = vld [vmem:[%s741_s21 + $0x1f8] sm:$0xff] }
  0x34   : > { %520 = vst.msk [vmem:[%s769_s26 + $0x138] sm:$0xff] %vm480_vm0, %v455_v48  ;;  %v397_v58 = vadd.f32 %v746_v1, %v326_v51  ;;  %v328_v59 = vmul.f32 %v736_v0, %v257_v47  ;;  %v456_v63 = vmax.f32 %v392_v52, 0.0  ;;  %v457_v2 = vmax.f32 %v393_v53, 0.0 }
  0x35   : > { %v458_v3 = vmax.f32 %v394_v54, 0.0  ;;  %v398_v4 = vadd.f32 %v746_v1, %v327_v55  ;;  %v459_v8 = vmax.f32 %v395_v56, 0.0  ;;  %v460_v9 = vmax.f32 %v396_v57, 0.0 }
  0x36   : > { %v461_v10 = vmax.f32 %v397_v58, 0.0  ;;  %v399_v11 = vadd.f32 %v746_v1, %v328_v59  ;;  %521 = vst.msk [vmem:[%s769_s26 + $0x140] sm:$0xff] %vm480_vm0, %v456_v63  ;;  %522 = vst.msk [vmem:[%s769_s26 + $0x148] sm:$0xff] %vm480_vm0, %v457_v2  ;;  %v329_v14 = vmul.f32 %v736_v0, %v258_v60  ;;  %v330_v15 = vmul.f32 %v736_v0, %v259_v61 }
  0x37   : > { %523 = vst.msk [vmem:[%s769_s26 + $0x150] sm:$0xff] %vm480_vm0, %v458_v3  ;;  %v462_v13 = vmax.f32 %v398_v4, 0.0  ;;  %v331_v16 = vmul.f32 %v736_v0, %v260_v62  ;;  %524 = vst.msk [vmem:[%s769_s26 + $0x158] sm:$0xff] %vm480_vm0, %v459_v8  ;;  %v332_v19 = vmul.f32 %v736_v0, %v261_v5  ;;  %v333_v20 = vmul.f32 %v736_v0, %v262_v6 }
  0x38   : > { %525 = vst.msk [vmem:[%s769_s26 + $0x160] sm:$0xff] %vm480_vm0, %v460_v9  ;;  %526 = vst.msk [vmem:[%s769_s26 + $0x168] sm:$0xff] %vm480_vm0, %v461_v10  ;;  %v463_v18 = vmax.f32 %v399_v11, 0.0  ;;  %v334_v21 = vmul.f32 %v736_v0, %v263_v7  ;;  %v400_v22 = vadd.f32 %v746_v1, %v329_v14  ;;  %v401_v23 = vadd.f32 %v746_v1, %v330_v15 }
  0x39   : > { %527 = vst.msk [vmem:[%s769_s26 + $0x170] sm:$0xff] %vm480_vm0, %v462_v13  ;;  %v402_v24 = vadd.f32 %v746_v1, %v331_v16  ;;  %v335_v25 = vmul.f32 %v736_v0, %v264_v12  ;;  %v403_v26 = vadd.f32 %v746_v1, %v332_v19  ;;  %v404_v27 = vadd.f32 %v746_v1, %v333_v20 }
  0x3a   : > { %528 = vst.msk [vmem:[%s769_s26 + $0x178] sm:$0xff] %vm480_vm0, %v463_v18  ;;  %v405_v28 = vadd.f32 %v746_v1, %v334_v21  ;;  %v336_v29 = vmul.f32 %v736_v0, %v265_v17  ;;  %v464_v33 = vmax.f32 %v400_v22, 0.0  ;;  %v465_v34 = vmax.f32 %v401_v23, 0.0 }
  0x3b   : > { %v466_v35 = vmax.f32 %v402_v24, 0.0  ;;  %v406_v36 = vadd.f32 %v746_v1, %v335_v25  ;;  %v467_v40 = vmax.f32 %v403_v26, 0.0  ;;  %v468_v41 = vmax.f32 %v404_v27, 0.0 }
  0x3c   : > { %v469_v42 = vmax.f32 %v405_v28, 0.0  ;;  %v407_v43 = vadd.f32 %v746_v1, %v336_v29  ;;  %529 = vst.msk [vmem:[%s769_s26 + $0x180] sm:$0xff] %vm480_vm0, %v464_v33  ;;  %530 = vst.msk [vmem:[%s769_s26 + $0x188] sm:$0xff] %vm480_vm0, %v465_v34  ;;  %v337_v46 = vmul.f32 %v736_v0, %v266_v30  ;;  %v338_v47 = vmul.f32 %v736_v0, %v267_v31 }
  0x3d   : > { %531 = vst.msk [vmem:[%s769_s26 + $0x190] sm:$0xff] %vm480_vm0, %v466_v35  ;;  %v470_v45 = vmax.f32 %v406_v36, 0.0  ;;  %v339_v48 = vmul.f32 %v736_v0, %v268_v32  ;;  %532 = vst.msk [vmem:[%s769_s26 + $0x198] sm:$0xff] %vm480_vm0, %v467_v40  ;;  %v340_v51 = vmul.f32 %v736_v0, %v269_v37  ;;  %v341_v52 = vmul.f32 %v736_v0, %v270_v38 }
  0x3e   : > { %533 = vst.msk [vmem:[%s769_s26 + $0x1a0] sm:$0xff] %vm480_vm0, %v468_v41  ;;  %534 = vst.msk [vmem:[%s769_s26 + $0x1a8] sm:$0xff] %vm480_vm0, %v469_v42  ;;  %v471_v50 = vmax.f32 %v407_v43, 0.0  ;;  %v342_v53 = vmul.f32 %v736_v0, %v271_v39  ;;  %v408_v54 = vadd.f32 %v746_v1, %v337_v46  ;;  %v409_v55 = vadd.f32 %v746_v1, %v338_v47 }
  0x3f   : > { %535 = vst.msk [vmem:[%s769_s26 + $0x1b0] sm:$0xff] %vm480_vm0, %v470_v45  ;;  %v410_v56 = vadd.f32 %v746_v1, %v339_v48  ;;  %v343_v57 = vmul.f32 %v736_v0, %v272_v44  ;;  %v411_v58 = vadd.f32 %v746_v1, %v340_v51  ;;  %v412_v59 = vadd.f32 %v746_v1, %v341_v52 }
  0x40   : > { %536 = vst.msk [vmem:[%s769_s26 + $0x1b8] sm:$0xff] %vm480_vm0, %v471_v50  ;;  %v413_v60 = vadd.f32 %v746_v1, %v342_v53  ;;  %v344_v61 = vmul.f32 %v736_v0, %v273_v49  ;;  %v472_v62 = vmax.f32 %v408_v54, 0.0  ;;  %v473_v63 = vmax.f32 %v409_v55, 0.0 }
  0x41   : > { %v474_v2 = vmax.f32 %v410_v56, 0.0  ;;  %v414_v3 = vadd.f32 %v746_v1, %v343_v57  ;;  %v475_v4 = vmax.f32 %v411_v58, 0.0  ;;  %v476_v5 = vmax.f32 %v412_v59, 0.0 }
  0x42   : > { %v477_v6 = vmax.f32 %v413_v60, 0.0  ;;  %v415_v7 = vadd.f32 %v746_v1, %v344_v61  ;;  %537 = vst.msk [vmem:[%s769_s26 + $0x1c0] sm:$0xff] %vm480_vm0, %v472_v62  ;;  %538 = vst.msk [vmem:[%s769_s26 + $0x1c8] sm:$0xff] %vm480_vm0, %v473_v63 }
  0x43   : > { %539 = vst.msk [vmem:[%s769_s26 + $0x1d0] sm:$0xff] %vm480_vm0, %v474_v2  ;;  %v478_v8 = vmax.f32 %v414_v3, 0.0  ;;  %540 = vst.msk [vmem:[%s769_s26 + $0x1d8] sm:$0xff] %vm480_vm0, %v475_v4 }
  0x44   : > { %541 = vst.msk [vmem:[%s769_s26 + $0x1e0] sm:$0xff] %vm480_vm0, %v476_v5  ;;  %542 = vst.msk [vmem:[%s769_s26 + $0x1e8] sm:$0xff] %vm480_vm0, %v477_v6  ;;  %v479_v0 = vmax.f32 %v415_v7, 0.0 }
  0x45   : > { %543 = vst.msk [vmem:[%s769_s26 + $0x1f0] sm:$0xff] %vm480_vm0, %v478_v8 }
  0x46   : > { %544 = vst.msk [vmem:[%s769_s26 + $0x1f8] sm:$0xff] %vm480_vm0, %v479_v0 }
  0x47 PF: > { %s13_s14 = sadd.s32 1, %s693_s14   ;;  %s1086_s12 = smov %s689_s13 }
  0x48   : > { %p10_p5 = scmp.ge.s32.totalorder %s13_s14, 6   ;;  %s1087_s13 = smov %s1089_s15 }
  0x4a   :  { %12 = sbr.rel (!%p10_p5) target bundleno = 2 (0x2), region = 62 }

// kernel: svhn_generator_forward.13
= control target key start
LH: loop header
LB: loop body
LE: loop exit
PB: predicated region body
PF: predicated region fallthrough
CT: control target
= control target key end

     0   :  { %s1817_s15 = smov 0   ;;  %s1819_s16 = smov 0   ;;  %s2463_s0 = inlined_call_operand.vmem [shape: f32[4,512,32], index: 0, kind: input, shape index: {}]   ;;  %s2464_s1 = inlined_call_operand.vmem [shape: f32[4,32,4], index: 1, kind: input, shape index: {}]   ;;  %s2465_s2 = inlined_call_operand.vmem [shape: f32[4,512,4], index: 2, kind: output, shape index: {0}]   ;;  %s2466_s3 = inlined_call_operand.vmem [shape: f32[4,1,4], index: 3, kind: output, shape index: {1}]   ;;  %s2467_s4 = inlined_call_operand.vmem [shape: f32[4,1,4], index: 4, kind: output, shape index: {2}]  }
   0x1   :  { %s1821_s17 = smov 0  }
   0x2 LB: > { %s27_s18 = sadd.s32 1, %s1785_s16  ;;  %p1482_p0 = scmp.ge.s32.totalorder %s1789_s17, 1  ;;  %s1789_s17 = sphi %s1821_s17, %s15_s17   ;;  %s1785_s16 = sphi %s1819_s16, %s2469_s16   ;;  %s1781_s15 = sphi %s1817_s15, %s2468_s15  }
   0x3   : > { %p29_p1 = scmp.ge.s32.totalorder %s27_s18, 4  ;;  %p198_p2 = scmp.lt.s32.totalorder %s1789_s17, 5 }
   0x5   : > { %s2471_s18 = smov (%p29_p1, %s27_s18), 0  ;;  %p199_p3 = pnand %p1482_p0, %p198_p2 }
   0x6   : > { %p244_p4 = scmp.lt.s32.totalorder (!%p199_p3), %s1781_s15, 3  ;;  %vm342_vm0 = vcmask (!%p199_p3), 261120   ;;  %vm989_vm1 = vcmask (!%p199_p3), 24576   ;;  %vm920_vm2 = vcmask (!%p199_p3), 31744  }
   0x7   : > { %202 = sbr.rel (%p199_p3) target bundleno = 387 (0x183), region = 28 }
   0xe   : > { %s2473_s15 = smov (!%p244_p4, %s1781_s15), 3 }
   0xf   : > { %s1555_s19 = sshll.u32 %s2473_s15, 9  ;;  %s1556_s20 = sshll.u32 %s2473_s15, 5 }
  0x10   : > { %s1844_s23 = scalar_lea.vmem %s2463_s0, %s1555_s19  ;;  %s257_s26 = scalar_lea.vmem %s2464_s1, %s1556_s20 }
  0x11   : > { %v338_v0 = vld [vmem:[%s257_s26] sm:$0xff]  ;;  %v339_v1 = vld [vmem:[%s257_s26 + $0x8] sm:$0xff]  ;;  %v340_v2 = vld [vmem:[%s257_s26 + $0x10] sm:$0xff]  ;;  %s1981_s29 = scalar_lea.vmem %s2466_s3, %s2473_s15  ;;  %s1987_s6 = scalar_lea.vmem %s2467_s4, %s2473_s15 }
  0x12   : > { %v1730_v3 = vpack.c.bf16 %v339_v1, %v338_v0  ;;  %v341_v4 = vld [vmem:[%s257_s26 + $0x18] sm:$0xff]  ;;  %v274_v5 = vld [vmem:[%s1844_s23] sm:$0xff]  ;;  %v275_v7 = vld [vmem:[%s1844_s23 + $0x8] sm:$0xff]  ;;  %s1994_s9 = scalar_lea.vmem %s2465_s2, %s1555_s19 }
  0x13   : > { %v1734_v6 = vpack.c.bf16 %v341_v4, %v340_v2  ;;  %1634 = vmatprep.mubr.msk.f32.mxu0 %vm342_vm0, %v274_v5  ;;  %v276_v8 = vld [vmem:[%s1844_s23 + $0x10] sm:$0xff]  ;;  %v277_v9 = vld [vmem:[%s1844_s23 + $0x18] sm:$0xff]  ;;  %v306_v10 = vld [vmem:[%s1844_s23 + $0x100] sm:$0xff] }
  0x14   : > { %1731 = vmatprep.subr.bf16.mxu0 %v1730_v3  ;;  %1738 = vmatprep.subr.bf16.mxu1 %v1730_v3  ;;  %v307_v11 = vld [vmem:[%s1844_s23 + $0x108] sm:$0xff]  ;;  %v308_v12 = vld [vmem:[%s1844_s23 + $0x110] sm:$0xff]  ;;  %v278_v13 = vld [vmem:[%s1844_s23 + $0x20] sm:$0xff] }
  0x15   : > { %1733 = vmatpush3.bf16.msra.mxu0 %v1730_v3  ;;  %1740 = vmatpush3.bf16.msra.mxu1 %v1730_v3  ;;  %v309_v14 = vld [vmem:[%s1844_s23 + $0x118] sm:$0xff]  ;;  %v279_v15 = vld [vmem:[%s1844_s23 + $0x28] sm:$0xff]  ;;  %v310_v16 = vld [vmem:[%s1844_s23 + $0x120] sm:$0xff] }
  0x16   : > { %1735 = vmatprep.subr.bf16.mxu0 %v1734_v6  ;;  %1739 = vmatprep.subr.bf16.mxu1 %v1734_v6  ;;  %v280_v17 = vld [vmem:[%s1844_s23 + $0x30] sm:$0xff]  ;;  %v311_v18 = vld [vmem:[%s1844_s23 + $0x128] sm:$0xff]  ;;  %v281_v19 = vld [vmem:[%s1844_s23 + $0x38] sm:$0xff] }
  0x17   : > { %1682 = vmatprep.mubr.msk.f32.mxu1 %vm342_vm0, %v306_v10  ;;  %v312_v20 = vld [vmem:[%s1844_s23 + $0x130] sm:$0xff]  ;;  %v282_v21 = vld [vmem:[%s1844_s23 + $0x40] sm:$0xff]  ;;  %v313_v22 = vld [vmem:[%s1844_s23 + $0x138] sm:$0xff] }
  0x18   : > { %v283_v23 = vld [vmem:[%s1844_s23 + $0x48] sm:$0xff]  ;;  %v314_v24 = vld [vmem:[%s1844_s23 + $0x140] sm:$0xff]  ;;  %v284_v25 = vld [vmem:[%s1844_s23 + $0x50] sm:$0xff] }
  0x19   : > { %1737 = vmatpush3.bf16.msra.mxu0 %v1734_v6  ;;  %1741 = vmatpush3.bf16.msra.mxu1 %v1734_v6  ;;  %v315_v26 = vld [vmem:[%s1844_s23 + $0x148] sm:$0xff]  ;;  %v285_v27 = vld [vmem:[%s1844_s23 + $0x58] sm:$0xff]  ;;  %v316_v28 = vld [vmem:[%s1844_s23 + $0x150] sm:$0xff]  ;;  %v1791_v6 = vmov 0.0  }
  0x1a   : > { %v286_v29 = vld [vmem:[%s1844_s23 + $0x60] sm:$0xff]  ;;  %v317_v30 = vld [vmem:[%s1844_s23 + $0x158] sm:$0xff]  ;;  %v287_v31 = vld [vmem:[%s1844_s23 + $0x68] sm:$0xff]  ;;  %990 = vst.msk [vmem:[%s1981_s29] sm:$0x1] %vm989_vm1, %v1791_v6 }
  0x1b   : > { %v318_v32 = vld [vmem:[%s1844_s23 + $0x160] sm:$0xff]  ;;  %v288_v33 = vld [vmem:[%s1844_s23 + $0x70] sm:$0xff]  ;;  %v319_v34 = vld [vmem:[%s1844_s23 + $0x168] sm:$0xff]  ;;  %991 = vst.msk [vmem:[%s1987_s6] sm:$0x1] %vm989_vm1, %v1791_v6 }
  0x1c   : > { %1635 = vmatmul.mubr.msk.f32.vlgmr.msra.gmra.mrb[0].mxu0 %vm342_vm0, %v275_v7  ;;  %1683 = vmatmul.mubr.msk.f32.vlgmr.msra.gmra.mrb[0].mxu1 %vm342_vm0, %v307_v11  ;;  %v289_v35 = vld [vmem:[%s1844_s23 + $0x78] sm:$0xff]  ;;  %v320_v36 = vld [vmem:[%s1844_s23 + $0x170] sm:$0xff]  ;;  %v290_v37 = vld [vmem:[%s1844_s23 + $0x80] sm:$0xff] }
  0x1d   : > { %1637 = vmatprep.mubr.msk.f32.mxu0 %vm342_vm0, %v276_v8  ;;  %1685 = vmatprep.mubr.msk.f32.mxu1 %vm342_vm0, %v308_v12  ;;  %v321_v38 = vld [vmem:[%s1844_s23 + $0x178] sm:$0xff]  ;;  %v291_v39 = vld [vmem:[%s1844_s23 + $0x88] sm:$0xff]  ;;  %v322_v40 = vld [vmem:[%s1844_s23 + $0x180] sm:$0xff] }
  0x1e   : > { %v292_v41 = vld [vmem:[%s1844_s23 + $0x90] sm:$0xff]  ;;  %v323_v42 = vld [vmem:[%s1844_s23 + $0x188] sm:$0xff]  ;;  %v293_v43 = vld [vmem:[%s1844_s23 + $0x98] sm:$0xff] }
  0x1f   : > { %v324_v44 = vld [vmem:[%s1844_s23 + $0x190] sm:$0xff]  ;;  %v294_v45 = vld [vmem:[%s1844_s23 + $0xa0] sm:$0xff]  ;;  %v325_v46 = vld [vmem:[%s1844_s23 + $0x198] sm:$0xff] }
  0x20   : > { %1638 = vmatmul.mubr.msk.f32.gmra.mrb[2].mxu0 %vm342_vm0, %v277_v9  ;;  %1686 = vmatmul.mubr.msk.f32.gmra.mrb[2].mxu1 %vm342_vm0, %v309_v14  ;;  %v295_v47 = vld [vmem:[%s1844_s23 + $0xa8] sm:$0xff]  ;;  %v326_v48 = vld [vmem:[%s1844_s23 + $0x1a0] sm:$0xff]  ;;  %v296_v49 = vld [vmem:[%s1844_s23 + $0xb0] sm:$0xff] }
  0x21   : > { %1640 = vmatprep.mubr.msk.f32.mxu0 %vm342_vm0, %v278_v13  ;;  %1688 = vmatprep.mubr.msk.f32.mxu1 %vm342_vm0, %v310_v16  ;;  %v327_v50 = vld [vmem:[%s1844_s23 + $0x1a8] sm:$0xff]  ;;  %v297_v51 = vld [vmem:[%s1844_s23 + $0xb8] sm:$0xff]  ;;  %v328_v52 = vld [vmem:[%s1844_s23 + $0x1b0] sm:$0xff] }
  0x22   : > { %v298_v53 = vld [vmem:[%s1844_s23 + $0xc0] sm:$0xff]  ;;  %v329_v54 = vld [vmem:[%s1844_s23 + $0x1b8] sm:$0xff]  ;;  %v299_v55 = vld [vmem:[%s1844_s23 + $0xc8] sm:$0xff] }
  0x23   : > { %v330_v56 = vld [vmem:[%s1844_s23 + $0x1c0] sm:$0xff]  ;;  %v300_v57 = vld [vmem:[%s1844_s23 + $0xd0] sm:$0xff]  ;;  %v331_v58 = vld [vmem:[%s1844_s23 + $0x1c8] sm:$0xff] }
  0x24   : > { %1641 = vmatmul.mubr.msk.f32.gmra.mrb[4].mxu0 %vm342_vm0, %v279_v15  ;;  %1689 = vmatmul.mubr.msk.f32.gmra.mrb[4].mxu1 %vm342_vm0, %v311_v18  ;;  %v301_v59 = vld [vmem:[%s1844_s23 + $0xd8] sm:$0xff]  ;;  %v332_v60 = vld [vmem:[%s1844_s23 + $0x1d0] sm:$0xff]  ;;  %v302_v61 = vld [vmem:[%s1844_s23 + $0xe0] sm:$0xff] }
  0x25   : > { %1643 = vmatprep.mubr.msk.f32.mxu0 %vm342_vm0, %v280_v17  ;;  %1691 = vmatprep.mubr.msk.f32.mxu1 %vm342_vm0, %v312_v20  ;;  %v333_v62 = vld [vmem:[%s1844_s23 + $0x1d8] sm:$0xff]  ;;  %v303_v63 = vld [vmem:[%s1844_s23 + $0xe8] sm:$0xff]  ;;  %v334_v0 = vld [vmem:[%s1844_s23 + $0x1e0] sm:$0xff] }
  0x26   : > { %v304_v1 = vld [vmem:[%s1844_s23 + $0xf0] sm:$0xff]  ;;  %v335_v2 = vld [vmem:[%s1844_s23 + $0x1e8] sm:$0xff]  ;;  %v305_v3 = vld [vmem:[%s1844_s23 + $0xf8] sm:$0xff] }
  0x27   : > { %v336_v4 = vld [vmem:[%s1844_s23 + $0x1f0] sm:$0xff]  ;;  %v337_v5 = vld [vmem:[%s1844_s23 + $0x1f8] sm:$0xff] }
  0x28   : > { %1644 = vmatmul.mubr.msk.f32.gmra.mrb[6].mxu0 %vm342_vm0, %v281_v19  ;;  %1692 = vmatmul.mubr.msk.f32.gmra.mrb[6].mxu1 %vm342_vm0, %v313_v22 }
  0x29   : > { %1646 = vmatprep.mubr.msk.f32.mxu0 %vm342_vm0, %v282_v21  ;;  %1694 = vmatprep.mubr.msk.f32.mxu1 %vm342_vm0, %v314_v24 }
  0x2c   : > { %1647 = vmatmul.mubr.msk.f32.gmra.mrb[8].mxu0 %vm342_vm0, %v283_v23  ;;  %1695 = vmatmul.mubr.msk.f32.gmra.mrb[8].mxu1 %vm342_vm0, %v315_v26 }
  0x2d   : > { %1649 = vmatprep.mubr.msk.f32.mxu0 %vm342_vm0, %v284_v25  ;;  %1697 = vmatprep.mubr.msk.f32.mxu1 %vm342_vm0, %v316_v28 }
  0x30   : > { %1650 = vmatmul.mubr.msk.f32.gmra.mrb[10].mxu0 %vm342_vm0, %v285_v27  ;;  %1698 = vmatmul.mubr.msk.f32.gmra.mrb[10].mxu1 %vm342_vm0, %v317_v30 }
  0x31   : > { %1652 = vmatprep.mubr.msk.f32.mxu0 %vm342_vm0, %v286_v29  ;;  %1700 = vmatprep.mubr.msk.f32.mxu1 %vm342_vm0, %v318_v32 }
  0x34   : > { %1653 = vmatmul.mubr.msk.f32.gmra.mrb[12].mxu0 %vm342_vm0, %v287_v31  ;;  %1701 = vmatmul.mubr.msk.f32.gmra.mrb[12].mxu1 %vm342_vm0, %v319_v34 }
  0x35   : > { %1655 = vmatprep.mubr.msk.f32.mxu0 %vm342_vm0, %v288_v33  ;;  %1703 = vmatprep.mubr.msk.f32.mxu1 %vm342_vm0, %v320_v36 }
  0x38   : > { %1656 = vmatmul.mubr.msk.f32.gmra.mrb[14].mxu0 %vm342_vm0, %v289_v35  ;;  %1704 = vmatmul.mubr.msk.f32.gmra.mrb[14].mxu1 %vm342_vm0, %v321_v38 }
  0x39   : > { %1658 = vmatprep.mubr.msk.f32.mxu0 %vm342_vm0, %v290_v37  ;;  %1706 = vmatprep.mubr.msk.f32.mxu1 %vm342_vm0, %v322_v40 }
  0x3c   : > { %1659 = vmatmul.mubr.msk.f32.gmra.mrb[16].mxu0 %vm342_vm0, %v291_v39  ;;  %1707 = vmatmul.mubr.msk.f32.gmra.mrb[16].mxu1 %vm342_vm0, %v323_v42 }
  0x3d   : > { %1661 = vmatprep.mubr.msk.f32.mxu0 %vm342_vm0, %v292_v41  ;;  %1709 = vmatprep.mubr.msk.f32.mxu1 %vm342_vm0, %v324_v44 }
  0x40   : > { %1662 = vmatmul.mubr.msk.f32.gmra.mrb[18].mxu0 %vm342_vm0, %v293_v43  ;;  %1710 = vmatmul.mubr.msk.f32.gmra.mrb[18].mxu1 %vm342_vm0, %v325_v46 }
  0x41   : > { %1664 = vmatprep.mubr.msk.f32.mxu0 %vm342_vm0, %v294_v45  ;;  %1712 = vmatprep.mubr.msk.f32.mxu1 %vm342_vm0, %v326_v48 }
  0x44   : > { %1665 = vmatmul.mubr.msk.f32.gmra.mrb[20].mxu0 %vm342_vm0, %v295_v47  ;;  %1713 = vmatmul.mubr.msk.f32.gmra.mrb[20].mxu1 %vm342_vm0, %v327_v50 }
  0x45   : > { %1667 = vmatprep.mubr.msk.f32.mxu0 %vm342_vm0, %v296_v49  ;;  %1715 = vmatprep.mubr.msk.f32.mxu1 %vm342_vm0, %v328_v52 }
  0x48   : > { %1668 = vmatmul.mubr.msk.f32.gmra.mrb[22].mxu0 %vm342_vm0, %v297_v51  ;;  %1716 = vmatmul.mubr.msk.f32.gmra.mrb[22].mxu1 %vm342_vm0, %v329_v54 }
  0x49   : > { %1670 = vmatprep.mubr.msk.f32.mxu0 %vm342_vm0, %v298_v53  ;;  %1718 = vmatprep.mubr.msk.f32.mxu1 %vm342_vm0, %v330_v56 }
  0x4c   : > { %1671 = vmatmul.mubr.msk.f32.gmra.mrb[24].mxu0 %vm342_vm0, %v299_v55  ;;  %1719 = vmatmul.mubr.msk.f32.gmra.mrb[24].mxu1 %vm342_vm0, %v331_v58 }
  0x4d   : > { %1673 = vmatprep.mubr.msk.f32.mxu0 %vm342_vm0, %v300_v57  ;;  %1721 = vmatprep.mubr.msk.f32.mxu1 %vm342_vm0, %v332_v60 }
  0x50   : > { %1674 = vmatmul.mubr.msk.f32.gmra.mrb[26].mxu0 %vm342_vm0, %v301_v59  ;;  %1722 = vmatmul.mubr.msk.f32.gmra.mrb[26].mxu1 %vm342_vm0, %v333_v62 }
  0x51   : > { %1676 = vmatprep.mubr.msk.f32.mxu0 %vm342_vm0, %v302_v61  ;;  %1724 = vmatprep.mubr.msk.f32.mxu1 %vm342_vm0, %v334_v0 }
  0x54   : > { %1677 = vmatmul.mubr.msk.f32.gmra.mrb[28].mxu0 %vm342_vm0, %v303_v63  ;;  %1725 = vmatmul.mubr.msk.f32.gmra.mrb[28].mxu1 %vm342_vm0, %v335_v2 }
  0x55   : > { %1679 = vmatprep.mubr.msk.f32.mxu0 %vm342_vm0, %v304_v1  ;;  %1727 = vmatprep.mubr.msk.f32.mxu1 %vm342_vm0, %v336_v4 }
  0x58   : > { %1680 = vmatmul.mubr.msk.f32.gmra.mrb[30].mxu0 %vm342_vm0, %v305_v3  ;;  %1728 = vmatmul.mubr.msk.f32.gmra.mrb[30].mxu1 %vm342_vm0, %v337_v5 }
  0xef   : > { %v1636_v7 = vpop.f32.mrb[0].mxu0  ;;  %v2007_v15 = vpop.f32.mrb[0].mxu1 }
  0xf0   : > { %922 = vst.msk [vmem:[%s1994_s9 + $0x8] sm:$0xff] %vm920_vm2, %v1636_v7  ;;  %v994_v8 = vsel %vm920_vm2, %v1636_v7, 0.0  ;;  %v1131_v9 = vmul.f32 %v1636_v7, %v1636_v7  ;;  %v601_v10 = vpop.f32.mrb[1].mxu0  ;;  %954 = vst.msk [vmem:[%s1994_s9 + $0x108] sm:$0xff] %vm920_vm2, %v2007_v15  ;;  %v2013_v18 = vpop.f32.mrb[1].mxu1 }
  0xf1   : > { %921 = vst.msk [vmem:[%s1994_s9] sm:$0xff] %vm920_vm2, %v601_v10  ;;  %v993_v11 = vsel %vm920_vm2, %v601_v10, 0.0  ;;  %v1130_v12 = vmul.f32 %v601_v10, %v601_v10  ;;  %953 = vst.msk [vmem:[%s1994_s9 + $0x100] sm:$0xff] %vm920_vm2, %v2013_v18 }
  0xf2   : > { %v1195_v13 = vsel %vm920_vm2, %v1131_v9, 0.0  ;;  %v995_v14 = vadd.f32 %v994_v8, %v993_v11 }
  0xf3   : > { %v1194_v16 = vsel %vm920_vm2, %v1130_v12, 0.0  ;;  %v1639_v17 = vpop.f32.mrb[2].mxu0  ;;  %v2023_v25 = vpop.f32.mrb[2].mxu1 }
  0xf4   : > { %v1196_v19 = vadd.f32 %v1195_v13, %v1194_v16  ;;  %924 = vst.msk [vmem:[%s1994_s9 + $0x18] sm:$0xff] %vm920_vm2, %v1639_v17  ;;  %v611_v20 = vpop.f32.mrb[3].mxu0  ;;  %v1133_v21 = vmul.f32 %v1639_v17, %v1639_v17  ;;  %v998_v26 = vsel %vm920_vm2, %v1639_v17, 0.0  ;;  %956 = vst.msk [vmem:[%s1994_s9 + $0x118] sm:$0xff] %vm920_vm2, %v2023_v25  ;;  %v2030_v29 = vpop.f32.mrb[3].mxu1 }
  0xf5   : > { %923 = vst.msk [vmem:[%s1994_s9 + $0x10] sm:$0xff] %vm920_vm2, %v611_v20  ;;  %v996_v22 = vsel %vm920_vm2, %v611_v20, 0.0  ;;  %v1132_v23 = vmul.f32 %v611_v20, %v611_v20  ;;  %955 = vst.msk [vmem:[%s1994_s9 + $0x110] sm:$0xff] %vm920_vm2, %v2030_v29 }
  0xf6   : > { %v997_v24 = vadd.f32 %v996_v22, %v995_v14  ;;  %v1199_v33 = vsel %vm920_vm2, %v1133_v21, 0.0 }
  0xf7   : > { %v1197_v27 = vsel %vm920_vm2, %v1132_v23, 0.0  ;;  %v1642_v28 = vpop.f32.mrb[4].mxu0  ;;  %v2041_v39 = vpop.f32.mrb[4].mxu1 }
  0xf8   : > { %v1198_v30 = vadd.f32 %v1197_v27, %v1196_v19  ;;  %926 = vst.msk [vmem:[%s1994_s9 + $0x28] sm:$0xff] %vm920_vm2, %v1642_v28  ;;  %v621_v31 = vpop.f32.mrb[5].mxu0  ;;  %v999_v32 = vadd.f32 %v998_v26, %v997_v24  ;;  %v1135_v34 = vmul.f32 %v1642_v28, %v1642_v28  ;;  %v1002_v40 = vsel %vm920_vm2, %v1642_v28, 0.0  ;;  %958 = vst.msk [vmem:[%s1994_s9 + $0x128] sm:$0xff] %vm920_vm2, %v2041_v39  ;;  %v2048_v43 = vpop.f32.mrb[5].mxu1 }
  0xf9   : > { %925 = vst.msk [vmem:[%s1994_s9 + $0x20] sm:$0xff] %vm920_vm2, %v621_v31  ;;  %v1000_v35 = vsel %vm920_vm2, %v621_v31, 0.0  ;;  %v1134_v36 = vmul.f32 %v621_v31, %v621_v31  ;;  %957 = vst.msk [vmem:[%s1994_s9 + $0x120] sm:$0xff] %vm920_vm2, %v2048_v43 }
  0xfa   : > { %v1001_v37 = vadd.f32 %v1000_v35, %v999_v32  ;;  %v1200_v38 = vadd.f32 %v1199_v33, %v1198_v30  ;;  %v1203_v47 = vsel %vm920_vm2, %v1135_v34, 0.0 }
  0xfb   : > { %v1201_v41 = vsel %vm920_vm2, %v1134_v36, 0.0  ;;  %v1645_v42 = vpop.f32.mrb[6].mxu0  ;;  %v2059_v53 = vpop.f32.mrb[6].mxu1 }
  0xfc   : > { %v1202_v44 = vadd.f32 %v1201_v41, %v1200_v38  ;;  %928 = vst.msk [vmem:[%s1994_s9 + $0x38] sm:$0xff] %vm920_vm2, %v1645_v42  ;;  %v631_v45 = vpop.f32.mrb[7].mxu0  ;;  %v1003_v46 = vadd.f32 %v1002_v40, %v1001_v37  ;;  %v1137_v48 = vmul.f32 %v1645_v42, %v1645_v42  ;;  %v1006_v54 = vsel %vm920_vm2, %v1645_v42, 0.0  ;;  %960 = vst.msk [vmem:[%s1994_s9 + $0x138] sm:$0xff] %vm920_vm2, %v2059_v53  ;;  %v2066_v57 = vpop.f32.mrb[7].mxu1 }
  0xfd   : > { %927 = vst.msk [vmem:[%s1994_s9 + $0x30] sm:$0xff] %vm920_vm2, %v631_v45  ;;  %v1004_v49 = vsel %vm920_vm2, %v631_v45, 0.0  ;;  %v1136_v50 = vmul.f32 %v631_v45, %v631_v45  ;;  %959 = vst.msk [vmem:[%s1994_s9 + $0x130] sm:$0xff] %vm920_vm2, %v2066_v57 }
  0xfe   : > { %v1005_v51 = vadd.f32 %v1004_v49, %v1003_v46  ;;  %v1204_v52 = vadd.f32 %v1203_v47, %v1202_v44  ;;  %v1207_v61 = vsel %vm920_vm2, %v1137_v48, 0.0 }
  0xff   : > { %v1205_v55 = vsel %vm920_vm2, %v1136_v50, 0.0  ;;  %v1648_v56 = vpop.f32.mrb[8].mxu0  ;;  %v2077_v3 = vpop.f32.mrb[8].mxu1 }
 0x100   : > { %v1206_v58 = vadd.f32 %v1205_v55, %v1204_v52  ;;  %930 = vst.msk [vmem:[%s1994_s9 + $0x48] sm:$0xff] %vm920_vm2, %v1648_v56  ;;  %v641_v59 = vpop.f32.mrb[9].mxu0  ;;  %v1007_v60 = vadd.f32 %v1006_v54, %v1005_v51  ;;  %v1139_v62 = vmul.f32 %v1648_v56, %v1648_v56  ;;  %v1010_v4 = vsel %vm920_vm2, %v1648_v56, 0.0  ;;  %962 = vst.msk [vmem:[%s1994_s9 + $0x148] sm:$0xff] %vm920_vm2, %v2077_v3  ;;  %v2084_v7 = vpop.f32.mrb[9].mxu1 }
 0x101   : > { %929 = vst.msk [vmem:[%s1994_s9 + $0x40] sm:$0xff] %vm920_vm2, %v641_v59  ;;  %v1008_v63 = vsel %vm920_vm2, %v641_v59, 0.0  ;;  %v1138_v0 = vmul.f32 %v641_v59, %v641_v59  ;;  %961 = vst.msk [vmem:[%s1994_s9 + $0x140] sm:$0xff] %vm920_vm2, %v2084_v7 }
 0x102   : > { %v1009_v1 = vadd.f32 %v1008_v63, %v1007_v60  ;;  %v1208_v2 = vadd.f32 %v1207_v61, %v1206_v58  ;;  %v1211_v11 = vsel %vm920_vm2, %v1139_v62, 0.0 }
 0x103   : > { %v1209_v5 = vsel %vm920_vm2, %v1138_v0, 0.0  ;;  %v1651_v6 = vpop.f32.mrb[10].mxu0  ;;  %v2095_v19 = vpop.f32.mrb[10].mxu1 }
 0x104   : > { %v1210_v8 = vadd.f32 %v1209_v5, %v1208_v2  ;;  %932 = vst.msk [vmem:[%s1994_s9 + $0x58] sm:$0xff] %vm920_vm2, %v1651_v6  ;;  %v651_v9 = vpop.f32.mrb[11].mxu0  ;;  %v1011_v10 = vadd.f32 %v1010_v4, %v1009_v1  ;;  %v1141_v12 = vmul.f32 %v1651_v6, %v1651_v6  ;;  %v1014_v20 = vsel %vm920_vm2, %v1651_v6, 0.0  ;;  %964 = vst.msk [vmem:[%s1994_s9 + $0x158] sm:$0xff] %vm920_vm2, %v2095_v19  ;;  %v2102_v23 = vpop.f32.mrb[11].mxu1 }
 0x105   : > { %931 = vst.msk [vmem:[%s1994_s9 + $0x50] sm:$0xff] %vm920_vm2, %v651_v9  ;;  %v1012_v13 = vsel %vm920_vm2, %v651_v9, 0.0  ;;  %v1140_v14 = vmul.f32 %v651_v9, %v651_v9  ;;  %963 = vst.msk [vmem:[%s1994_s9 + $0x150] sm:$0xff] %vm920_vm2, %v2102_v23 }
 0x106   : > { %v1013_v16 = vadd.f32 %v1012_v13, %v1011_v10  ;;  %v1212_v17 = vadd.f32 %v1211_v11, %v1210_v8  ;;  %v1215_v28 = vsel %vm920_vm2, %v1141_v12, 0.0 }
 0x107   : > { %v1213_v21 = vsel %vm920_vm2, %v1140_v14, 0.0  ;;  %v1654_v22 = vpop.f32.mrb[12].mxu0  ;;  %v2113_v35 = vpop.f32.mrb[12].mxu1 }
 0x108   : > { %v1214_v24 = vadd.f32 %v1213_v21, %v1212_v17  ;;  %934 = vst.msk [vmem:[%s1994_s9 + $0x68] sm:$0xff] %vm920_vm2, %v1654_v22  ;;  %v661_v26 = vpop.f32.mrb[13].mxu0  ;;  %v1015_v27 = vadd.f32 %v1014_v20, %v1013_v16  ;;  %v1143_v30 = vmul.f32 %v1654_v22, %v1654_v22  ;;  %v1018_v36 = vsel %vm920_vm2, %v1654_v22, 0.0  ;;  %966 = vst.msk [vmem:[%s1994_s9 + $0x168] sm:$0xff] %vm920_vm2, %v2113_v35  ;;  %v2120_v40 = vpop.f32.mrb[13].mxu1 }
 0x109   : > { %933 = vst.msk [vmem:[%s1994_s9 + $0x60] sm:$0xff] %vm920_vm2, %v661_v26  ;;  %v1016_v31 = vsel %vm920_vm2, %v661_v26, 0.0  ;;  %v1142_v32 = vmul.f32 %v661_v26, %v661_v26  ;;  %965 = vst.msk [vmem:[%s1994_s9 + $0x160] sm:$0xff] %vm920_vm2, %v2120_v40 }
 0x10a   : > { %v1017_v33 = vadd.f32 %v1016_v31, %v1015_v27  ;;  %v1216_v34 = vadd.f32 %v1215_v28, %v1214_v24  ;;  %v1219_v45 = vsel %vm920_vm2, %v1143_v30, 0.0 }
 0x10b   : > { %v1217_v37 = vsel %vm920_vm2, %v1142_v32, 0.0  ;;  %v1657_v38 = vpop.f32.mrb[14].mxu0  ;;  %v2131_v51 = vpop.f32.mrb[14].mxu1 }
 0x10c   : > { %v1218_v41 = vadd.f32 %v1217_v37, %v1216_v34  ;;  %936 = vst.msk [vmem:[%s1994_s9 + $0x78] sm:$0xff] %vm920_vm2, %v1657_v38  ;;  %v671_v42 = vpop.f32.mrb[15].mxu0  ;;  %v1019_v44 = vadd.f32 %v1018_v36, %v1017_v33  ;;  %v1145_v46 = vmul.f32 %v1657_v38, %v1657_v38  ;;  %v1022_v52 = vsel %vm920_vm2, %v1657_v38, 0.0  ;;  %968 = vst.msk [vmem:[%s1994_s9 + $0x178] sm:$0xff] %vm920_vm2, %v2131_v51  ;;  %v2138_v56 = vpop.f32.mrb[15].mxu1 }
 0x10d   : > { %935 = vst.msk [vmem:[%s1994_s9 + $0x70] sm:$0xff] %vm920_vm2, %v671_v42  ;;  %v1020_v47 = vsel %vm920_vm2, %v671_v42, 0.0  ;;  %v1144_v48 = vmul.f32 %v671_v42, %v671_v42  ;;  %967 = vst.msk [vmem:[%s1994_s9 + $0x170] sm:$0xff] %vm920_vm2, %v2138_v56 }
 0x10e   : > { %v1021_v49 = vadd.f32 %v1020_v47, %v1019_v44  ;;  %v1220_v50 = vadd.f32 %v1219_v45, %v1218_v41  ;;  %v1223_v61 = vsel %vm920_vm2, %v1145_v46, 0.0 }
 0x10f   : > { %v1221_v54 = vsel %vm920_vm2, %v1144_v48, 0.0  ;;  %v1660_v55 = vpop.f32.mrb[16].mxu0  ;;  %v2149_v4 = vpop.f32.mrb[16].mxu1 }
 0x110   : > { %v1222_v58 = vadd.f32 %v1221_v54, %v1220_v50  ;;  %938 = vst.msk [vmem:[%s1994_s9 + $0x88] sm:$0xff] %vm920_vm2, %v1660_v55  ;;  %v681_v59 = vpop.f32.mrb[17].mxu0  ;;  %v1023_v60 = vadd.f32 %v1022_v52, %v1021_v49  ;;  %v1147_v62 = vmul.f32 %v1660_v55, %v1660_v55  ;;  %v1026_v5 = vsel %vm920_vm2, %v1660_v55, 0.0  ;;  %970 = vst.msk [vmem:[%s1994_s9 + $0x188] sm:$0xff] %vm920_vm2, %v2149_v4  ;;  %v2156_v9 = vpop.f32.mrb[17].mxu1 }
 0x111   : > { %937 = vst.msk [vmem:[%s1994_s9 + $0x80] sm:$0xff] %vm920_vm2, %v681_v59  ;;  %v1024_v63 = vsel %vm920_vm2, %v681_v59, 0.0  ;;  %v1146_v0 = vmul.f32 %v681_v59, %v681_v59  ;;  %969 = vst.msk [vmem:[%s1994_s9 + $0x180] sm:$0xff] %vm920_vm2, %v2156_v9 }
 0x112   : > { %v1025_v1 = vadd.f32 %v1024_v63, %v1023_v60  ;;  %v1224_v2 = vadd.f32 %v1223_v61, %v1222_v58  ;;  %v1227_v13 = vsel %vm920_vm2, %v1147_v62, 0.0 }
 0x113   : > { %v1225_v6 = vsel %vm920_vm2, %v1146_v0, 0.0  ;;  %v1663_v8 = vpop.f32.mrb[18].mxu0  ;;  %v2167_v22 = vpop.f32.mrb[18].mxu1 }
 0x114   : > { %v1226_v10 = vadd.f32 %v1225_v6, %v1224_v2  ;;  %940 = vst.msk [vmem:[%s1994_s9 + $0x98] sm:$0xff] %vm920_vm2, %v1663_v8  ;;  %v691_v11 = vpop.f32.mrb[19].mxu0  ;;  %v1027_v12 = vadd.f32 %v1026_v5, %v1025_v1  ;;  %v1149_v14 = vmul.f32 %v1663_v8, %v1663_v8  ;;  %v1030_v24 = vsel %vm920_vm2, %v1663_v8, 0.0  ;;  %972 = vst.msk [vmem:[%s1994_s9 + $0x198] sm:$0xff] %vm920_vm2, %v2167_v22  ;;  %v2174_v28 = vpop.f32.mrb[19].mxu1 }
 0x115   : > { %939 = vst.msk [vmem:[%s1994_s9 + $0x90] sm:$0xff] %vm920_vm2, %v691_v11  ;;  %v1028_v16 = vsel %vm920_vm2, %v691_v11, 0.0  ;;  %v1148_v17 = vmul.f32 %v691_v11, %v691_v11  ;;  %971 = vst.msk [vmem:[%s1994_s9 + $0x190] sm:$0xff] %vm920_vm2, %v2174_v28 }
 0x116   : > { %v1029_v20 = vadd.f32 %v1028_v16, %v1027_v12  ;;  %v1228_v21 = vadd.f32 %v1227_v13, %v1226_v10  ;;  %v1231_v33 = vsel %vm920_vm2, %v1149_v14, 0.0 }
 0x117   : > { %v1229_v26 = vsel %vm920_vm2, %v1148_v17, 0.0  ;;  %v1666_v27 = vpop.f32.mrb[20].mxu0  ;;  %v2185_v42 = vpop.f32.mrb[20].mxu1 }
 0x118   : > { %v1230_v30 = vadd.f32 %v1229_v26, %v1228_v21  ;;  %942 = vst.msk [vmem:[%s1994_s9 + $0xa8] sm:$0xff] %vm920_vm2, %v1666_v27  ;;  %v701_v31 = vpop.f32.mrb[21].mxu0  ;;  %v1031_v32 = vadd.f32 %v1030_v24, %v1029_v20  ;;  %v1151_v34 = vmul.f32 %v1666_v27, %v1666_v27  ;;  %v1034_v44 = vsel %vm920_vm2, %v1666_v27, 0.0  ;;  %974 = vst.msk [vmem:[%s1994_s9 + $0x1a8] sm:$0xff] %vm920_vm2, %v2185_v42  ;;  %v2192_v47 = vpop.f32.mrb[21].mxu1 }
 0x119   : > { %941 = vst.msk [vmem:[%s1994_s9 + $0xa0] sm:$0xff] %vm920_vm2, %v701_v31  ;;  %v1032_v36 = vsel %vm920_vm2, %v701_v31, 0.0  ;;  %v1150_v37 = vmul.f32 %v701_v31, %v701_v31  ;;  %973 = vst.msk [vmem:[%s1994_s9 + $0x1a0] sm:$0xff] %vm920_vm2, %v2192_v47 }
 0x11a   : > { %v1033_v38 = vadd.f32 %v1032_v36, %v1031_v32  ;;  %v1232_v41 = vadd.f32 %v1231_v33, %v1230_v30  ;;  %v1235_v52 = vsel %vm920_vm2, %v1151_v34, 0.0 }
 0x11b   : > { %v1233_v45 = vsel %vm920_vm2, %v1150_v37, 0.0  ;;  %v1669_v46 = vpop.f32.mrb[22].mxu0  ;;  %v2203_v61 = vpop.f32.mrb[22].mxu1 }
 0x11c   : > { %v1234_v48 = vadd.f32 %v1233_v45, %v1232_v41  ;;  %944 = vst.msk [vmem:[%s1994_s9 + $0xb8] sm:$0xff] %vm920_vm2, %v1669_v46  ;;  %v711_v49 = vpop.f32.mrb[23].mxu0  ;;  %v1035_v50 = vadd.f32 %v1034_v44, %v1033_v38  ;;  %v1153_v54 = vmul.f32 %v1669_v46, %v1669_v46  ;;  %v1038_v62 = vsel %vm920_vm2, %v1669_v46, 0.0  ;;  %976 = vst.msk [vmem:[%s1994_s9 + $0x1b8] sm:$0xff] %vm920_vm2, %v2203_v61  ;;  %v2210_v1 = vpop.f32.mrb[23].mxu1 }
 0x11d   : > { %943 = vst.msk [vmem:[%s1994_s9 + $0xb0] sm:$0xff] %vm920_vm2, %v711_v49  ;;  %v1036_v55 = vsel %vm920_vm2, %v711_v49, 0.0  ;;  %v1152_v58 = vmul.f32 %v711_v49, %v711_v49  ;;  %975 = vst.msk [vmem:[%s1994_s9 + $0x1b0] sm:$0xff] %vm920_vm2, %v2210_v1 }
 0x11e   : > { %v1037_v59 = vadd.f32 %v1036_v55, %v1035_v50  ;;  %v1236_v60 = vadd.f32 %v1235_v52, %v1234_v48  ;;  %v1239_v8 = vsel %vm920_vm2, %v1153_v54, 0.0 }
 0x11f   : > { %v1237_v63 = vsel %vm920_vm2, %v1152_v58, 0.0  ;;  %v1672_v0 = vpop.f32.mrb[24].mxu0  ;;  %v2221_v16 = vpop.f32.mrb[24].mxu1 }
 0x120   : > { %v1238_v2 = vadd.f32 %v1237_v63, %v1236_v60  ;;  %946 = vst.msk [vmem:[%s1994_s9 + $0xc8] sm:$0xff] %vm920_vm2, %v1672_v0  ;;  %v721_v5 = vpop.f32.mrb[25].mxu0  ;;  %v1039_v6 = vadd.f32 %v1038_v62, %v1037_v59  ;;  %v1155_v10 = vmul.f32 %v1672_v0, %v1672_v0  ;;  %v1042_v17 = vsel %vm920_vm2, %v1672_v0, 0.0  ;;  %978 = vst.msk [vmem:[%s1994_s9 + $0x1c8] sm:$0xff] %vm920_vm2, %v2221_v16  ;;  %v2228_v24 = vpop.f32.mrb[25].mxu1 }
 0x121   : > { %945 = vst.msk [vmem:[%s1994_s9 + $0xc0] sm:$0xff] %vm920_vm2, %v721_v5  ;;  %v1040_v11 = vsel %vm920_vm2, %v721_v5, 0.0  ;;  %v1154_v12 = vmul.f32 %v721_v5, %v721_v5  ;;  %977 = vst.msk [vmem:[%s1994_s9 + $0x1c0] sm:$0xff] %vm920_vm2, %v2228_v24 }
 0x122   : > { %v1041_v13 = vadd.f32 %v1040_v11, %v1039_v6  ;;  %v1240_v14 = vadd.f32 %v1239_v8, %v1238_v2  ;;  %v1243_v31 = vsel %vm920_vm2, %v1155_v10, 0.0  ;;  %v1162_v11 = vmul.f32 %v2013_v18, %v2013_v18 }
 0x123   : > { %v1241_v20 = vsel %vm920_vm2, %v1154_v12, 0.0  ;;  %v1675_v21 = vpop.f32.mrb[26].mxu0  ;;  %v2239_v38 = vpop.f32.mrb[26].mxu1 }
 0x124   : > { %v1242_v26 = vadd.f32 %v1241_v20, %v1240_v14  ;;  %948 = vst.msk [vmem:[%s1994_s9 + $0xd8] sm:$0xff] %vm920_vm2, %v1675_v21  ;;  %v731_v27 = vpop.f32.mrb[27].mxu0  ;;  %v1043_v30 = vadd.f32 %v1042_v17, %v1041_v13  ;;  %v1157_v32 = vmul.f32 %v1675_v21, %v1675_v21  ;;  %v1046_v41 = vsel %vm920_vm2, %v1675_v21, 0.0  ;;  %980 = vst.msk [vmem:[%s1994_s9 + $0x1d8] sm:$0xff] %vm920_vm2, %v2239_v38  ;;  %v2246_v46 = vpop.f32.mrb[27].mxu1 }
 0x125   : > { %947 = vst.msk [vmem:[%s1994_s9 + $0xd0] sm:$0xff] %vm920_vm2, %v731_v27  ;;  %v1044_v33 = vsel %vm920_vm2, %v731_v27, 0.0  ;;  %v1156_v34 = vmul.f32 %v731_v27, %v731_v27  ;;  %979 = vst.msk [vmem:[%s1994_s9 + $0x1d0] sm:$0xff] %vm920_vm2, %v2246_v46 }
 0x126   : > { %v1045_v36 = vadd.f32 %v1044_v33, %v1043_v30  ;;  %v1244_v37 = vadd.f32 %v1243_v31, %v1242_v26  ;;  %v1247_v52 = vsel %vm920_vm2, %v1157_v32, 0.0  ;;  %v1056_v31 = vsel %vm920_vm2, %v2013_v18, 0.0 }
 0x127   : > { %v1245_v44 = vsel %vm920_vm2, %v1156_v34, 0.0  ;;  %v1678_v45 = vpop.f32.mrb[28].mxu0  ;;  %v2257_v62 = vpop.f32.mrb[28].mxu1  ;;  %v1164_v18 = vmul.f32 %v2030_v29, %v2030_v29 }
 0x128   : > { %v1246_v48 = vadd.f32 %v1245_v44, %v1244_v37  ;;  %950 = vst.msk [vmem:[%s1994_s9 + $0xe8] sm:$0xff] %vm920_vm2, %v1678_v45  ;;  %v741_v49 = vpop.f32.mrb[29].mxu0  ;;  %v1047_v50 = vadd.f32 %v1046_v41, %v1045_v36  ;;  %v1159_v54 = vmul.f32 %v1678_v45, %v1678_v45  ;;  %v1050_v63 = vsel %vm920_vm2, %v1678_v45, 0.0  ;;  %982 = vst.msk [vmem:[%s1994_s9 + $0x1e8] sm:$0xff] %vm920_vm2, %v2257_v62  ;;  %v2264_v5 = vpop.f32.mrb[29].mxu1 }
 0x129   : > { %949 = vst.msk [vmem:[%s1994_s9 + $0xe0] sm:$0xff] %vm920_vm2, %v741_v49  ;;  %v1048_v55 = vsel %vm920_vm2, %v741_v49, 0.0  ;;  %v1158_v58 = vmul.f32 %v741_v49, %v741_v49  ;;  %981 = vst.msk [vmem:[%s1994_s9 + $0x1e0] sm:$0xff] %vm920_vm2, %v2264_v5  ;;  %v1163_v37 = vmul.f32 %v2007_v15, %v2007_v15  ;;  %v1257_v41 = vsel %vm920_vm2, %v1162_v11, 0.0 }
 0x12a   : > { %v1049_v59 = vadd.f32 %v1048_v55, %v1047_v50  ;;  %v1248_v60 = vadd.f32 %v1247_v52, %v1246_v48  ;;  %v1251_v12 = vsel %vm920_vm2, %v1159_v54, 0.0  ;;  %v1058_v48 = vsel %vm920_vm2, %v2007_v15, 0.0 }
 0x12b   : > { %v1249_v0 = vsel %vm920_vm2, %v1158_v58, 0.0  ;;  %v1681_v2 = vpop.f32.mrb[30].mxu0  ;;  %v2277_v26 = vpop.f32.mrb[30].mxu1  ;;  %v1060_v49 = vsel %vm920_vm2, %v2030_v29, 0.0  ;;  %v1259_v54 = vsel %vm920_vm2, %v1163_v37, 0.0  ;;  %v1165_v55 = vmul.f32 %v2023_v25, %v2023_v25 }
 0x12c   : > { %v1250_v6 = vadd.f32 %v1249_v0, %v1248_v60  ;;  %952 = vst.msk [vmem:[%s1994_s9 + $0xf8] sm:$0xff] %vm920_vm2, %v1681_v2  ;;  %v751_v8 = vpop.f32.mrb[31].mxu0  ;;  %v1051_v10 = vadd.f32 %v1050_v63, %v1049_v59  ;;  %v1161_v13 = vmul.f32 %v1681_v2, %v1681_v2  ;;  %v1054_v27 = vsel %vm920_vm2, %v1681_v2, 0.0  ;;  %984 = vst.msk [vmem:[%s1994_s9 + $0x1f8] sm:$0xff] %vm920_vm2, %v2277_v26  ;;  %v2286_v32 = vpop.f32.mrb[31].mxu1 }
 0x12d   : > { %951 = vst.msk [vmem:[%s1994_s9 + $0xf0] sm:$0xff] %vm920_vm2, %v751_v8  ;;  %v1052_v14 = vsel %vm920_vm2, %v751_v8, 0.0  ;;  %v1160_v17 = vmul.f32 %v751_v8, %v751_v8  ;;  %983 = vst.msk [vmem:[%s1994_s9 + $0x1f0] sm:$0xff] %vm920_vm2, %v2286_v32  ;;  %v1261_v58 = vsel %vm920_vm2, %v1164_v18, 0.0  ;;  %v1166_v59 = vmul.f32 %v2048_v43, %v2048_v43 }
 0x12e   : > { %v1053_v20 = vadd.f32 %v1052_v14, %v1051_v10  ;;  %v1252_v21 = vadd.f32 %v1251_v12, %v1250_v6  ;;  %v1255_v36 = vsel %vm920_vm2, %v1161_v13, 0.0  ;;  %v1062_v15 = vsel %vm920_vm2, %v2023_v25, 0.0 }
 0x12f   : > { %v1253_v30 = vsel %vm920_vm2, %v1160_v17, 0.0  ;;  %v1064_v29 = vsel %vm920_vm2, %v2048_v43, 0.0  ;;  %v1263_v6 = vsel %vm920_vm2, %v1165_v55, 0.0  ;;  %v1167_v8 = vmul.f32 %v2041_v39, %v2041_v39 }
 0x130   : > { %v1055_v33 = vadd.f32 %v1054_v27, %v1053_v20  ;;  %v1254_v34 = vadd.f32 %v1253_v30, %v1252_v21  ;;  %v1265_v10 = vsel %vm920_vm2, %v1166_v59, 0.0  ;;  %v1168_v11 = vmul.f32 %v2066_v57, %v2066_v57 }
 0x131   : > { %v1066_v25 = vsel %vm920_vm2, %v2041_v39, 0.0  ;;  %v1068_v43 = vsel %vm920_vm2, %v2066_v57, 0.0  ;;  %v1267_v20 = vsel %vm920_vm2, %v1167_v8, 0.0  ;;  %v1169_v21 = vmul.f32 %v2059_v53, %v2059_v53 }
 0x132   : > { %v1256_v44 = vadd.f32 %v1255_v36, %v1254_v34  ;;  %v1057_v45 = vadd.f32 %v1056_v31, %v1055_v33  ;;  %v1269_v27 = vsel %vm920_vm2, %v1168_v11, 0.0  ;;  %v1170_v30 = vmul.f32 %v2084_v7, %v2084_v7 }
 0x133   : > { %v1070_v39 = vsel %vm920_vm2, %v2059_v53, 0.0  ;;  %v1072_v57 = vsel %vm920_vm2, %v2084_v7, 0.0  ;;  %v1271_v37 = vsel %vm920_vm2, %v1169_v21, 0.0  ;;  %v1074_v53 = vsel %vm920_vm2, %v2077_v3, 0.0 }
 0x134   : > { %v1258_v50 = vadd.f32 %v1257_v41, %v1256_v44  ;;  %v1059_v52 = vadd.f32 %v1058_v48, %v1057_v45  ;;  %v1171_v41 = vmul.f32 %v2077_v3, %v2077_v3  ;;  %v1273_v18 = vsel %vm920_vm2, %v1170_v30, 0.0 }
 0x135   : > { %v1172_v44 = vmul.f32 %v2102_v23, %v2102_v23  ;;  %v1076_v7 = vsel %vm920_vm2, %v2102_v23, 0.0  ;;  %v1078_v3 = vsel %vm920_vm2, %v2095_v19, 0.0  ;;  %v1080_v23 = vsel %vm920_vm2, %v2120_v40, 0.0 }
 0x136   : > { %v1061_v60 = vadd.f32 %v1060_v49, %v1059_v52  ;;  %v1260_v63 = vadd.f32 %v1259_v54, %v1258_v50  ;;  %v1275_v52 = vsel %vm920_vm2, %v1171_v41, 0.0  ;;  %v1173_v54 = vmul.f32 %v2095_v19, %v2095_v19 }
 0x137   : > { %v1277_v55 = vsel %vm920_vm2, %v1172_v44, 0.0  ;;  %v1082_v19 = vsel %vm920_vm2, %v2113_v35, 0.0 }
 0x138   : > { %v1262_v0 = vadd.f32 %v1261_v58, %v1260_v63  ;;  %v1063_v2 = vadd.f32 %v1062_v15, %v1061_v60  ;;  %v1174_v58 = vmul.f32 %v2120_v40, %v2120_v40  ;;  %v1084_v40 = vsel %vm920_vm2, %v2138_v56, 0.0 }
 0x13a   : > { %v1065_v12 = vadd.f32 %v1064_v29, %v1063_v2  ;;  %v1264_v13 = vadd.f32 %v1263_v6, %v1262_v0  ;;  %v1279_v29 = vsel %vm920_vm2, %v1173_v54, 0.0  ;;  %v1175_v0 = vmul.f32 %v2113_v35, %v2113_v35 }
 0x13b   : > { %v1281_v2 = vsel %vm920_vm2, %v1174_v58, 0.0  ;;  %v1176_v6 = vmul.f32 %v2138_v56, %v2138_v56  ;;  %v1086_v35 = vsel %vm920_vm2, %v2131_v51, 0.0  ;;  %v1088_v56 = vsel %vm920_vm2, %v2156_v9, 0.0 }
 0x13c   : > { %v1266_v14 = vadd.f32 %v1265_v10, %v1264_v13  ;;  %v1067_v17 = vadd.f32 %v1066_v25, %v1065_v12  ;;  %v1283_v13 = vsel %vm920_vm2, %v1175_v0, 0.0  ;;  %v1177_v25 = vmul.f32 %v2131_v51, %v2131_v51 }
 0x13d   : > { %v1090_v51 = vsel %vm920_vm2, %v2149_v4, 0.0 }
 0x13e   : > { %v1069_v31 = vadd.f32 %v1068_v43, %v1067_v17  ;;  %v1268_v33 = vadd.f32 %v1267_v20, %v1266_v14  ;;  %v1285_v43 = vsel %vm920_vm2, %v1176_v6, 0.0  ;;  %v1178_v14 = vmul.f32 %v2156_v9, %v2156_v9 }
 0x13f   : > { %v1287_v30 = vsel %vm920_vm2, %v1177_v25, 0.0  ;;  %v1092_v9 = vsel %vm920_vm2, %v2174_v28, 0.0 }
 0x140   : > { %v1270_v34 = vadd.f32 %v1269_v27, %v1268_v33  ;;  %v1071_v36 = vadd.f32 %v1070_v39, %v1069_v31  ;;  %v1179_v31 = vmul.f32 %v2149_v4, %v2149_v4  ;;  %v1289_v33 = vsel %vm920_vm2, %v1178_v14, 0.0 }
 0x141   : > { %v1180_v39 = vmul.f32 %v2174_v28, %v2174_v28  ;;  %v1094_v4 = vsel %vm920_vm2, %v2167_v22, 0.0  ;;  %v1096_v28 = vsel %vm920_vm2, %v2192_v47, 0.0 }
 0x142   : > { %v1073_v45 = vadd.f32 %v1072_v57, %v1071_v36  ;;  %v1272_v48 = vadd.f32 %v1271_v37, %v1270_v34  ;;  %v1291_v41 = vsel %vm920_vm2, %v1179_v31, 0.0 }
 0x143   : > { %v1293_v44 = vsel %vm920_vm2, %v1180_v39, 0.0 }
 0x144   : > { %v1274_v49 = vadd.f32 %v1273_v18, %v1272_v48  ;;  %v1075_v50 = vadd.f32 %v1074_v53, %v1073_v45  ;;  %v1181_v18 = vmul.f32 %v2167_v22, %v2167_v22  ;;  %v1182_v45 = vmul.f32 %v2192_v47, %v2192_v47 }
 0x145   : > { %v1098_v22 = vsel %vm920_vm2, %v2185_v42, 0.0  ;;  %v1100_v47 = vsel %vm920_vm2, %v2210_v1, 0.0 }
 0x146   : > { %v1077_v59 = vadd.f32 %v1076_v7, %v1075_v50  ;;  %v1276_v60 = vadd.f32 %v1275_v52, %v1274_v49  ;;  %v1295_v50 = vsel %vm920_vm2, %v1181_v18, 0.0  ;;  %v1183_v52 = vmul.f32 %v2185_v42, %v2185_v42 }
 0x147   : > { %v1297_v54 = vsel %vm920_vm2, %v1182_v45, 0.0  ;;  %v1102_v42 = vsel %vm920_vm2, %v2203_v61, 0.0 }
 0x148   : > { %v1278_v63 = vadd.f32 %v1277_v55, %v1276_v60  ;;  %v1079_v15 = vadd.f32 %v1078_v3, %v1077_v59  ;;  %v1184_v55 = vmul.f32 %v2210_v1, %v2210_v1  ;;  %v1104_v1 = vsel %vm920_vm2, %v2228_v24, 0.0 }
 0x14a   : > { %v1081_v8 = vadd.f32 %v1080_v23, %v1079_v15  ;;  %v1280_v10 = vadd.f32 %v1279_v29, %v1278_v63  ;;  %v1299_v23 = vsel %vm920_vm2, %v1183_v52, 0.0  ;;  %v1185_v63 = vmul.f32 %v2203_v61, %v2203_v61 }
 0x14b   : > { %v1301_v15 = vsel %vm920_vm2, %v1184_v55, 0.0  ;;  %v1186_v29 = vmul.f32 %v2228_v24, %v2228_v24  ;;  %v1106_v61 = vsel %vm920_vm2, %v2221_v16, 0.0  ;;  %v1108_v24 = vsel %vm920_vm2, %v2246_v46, 0.0 }
 0x14c   : > { %v1282_v11 = vadd.f32 %v1281_v2, %v1280_v10  ;;  %v1083_v12 = vadd.f32 %v1082_v19, %v1081_v8  ;;  %v1303_v10 = vsel %vm920_vm2, %v1185_v63, 0.0  ;;  %v1187_v19 = vmul.f32 %v2221_v16, %v2221_v16 }
 0x14d   : > { %v1110_v16 = vsel %vm920_vm2, %v2239_v38, 0.0 }
 0x14e   : > { %v1085_v17 = vadd.f32 %v1084_v40, %v1083_v12  ;;  %v1284_v20 = vadd.f32 %v1283_v13, %v1282_v11  ;;  %v1305_v40 = vsel %vm920_vm2, %v1186_v29, 0.0  ;;  %v1188_v11 = vmul.f32 %v2246_v46, %v2246_v46 }
 0x14f   : > { %v1307_v14 = vsel %vm920_vm2, %v1187_v19, 0.0  ;;  %v1112_v46 = vsel %vm920_vm2, %v2264_v5, 0.0 }
 0x150   : > { %v1286_v21 = vadd.f32 %v1285_v43, %v1284_v20  ;;  %v1087_v27 = vadd.f32 %v1086_v35, %v1085_v17  ;;  %v1189_v17 = vmul.f32 %v2239_v38, %v2239_v38  ;;  %v1309_v20 = vsel %vm920_vm2, %v1188_v11, 0.0 }
 0x151   : > { %v1190_v35 = vmul.f32 %v2264_v5, %v2264_v5  ;;  %v1114_v38 = vsel %vm920_vm2, %v2257_v62, 0.0  ;;  %v1116_v5 = vsel %vm920_vm2, %v2286_v32, 0.0 }
 0x152   : > { %v1089_v57 = vadd.f32 %v1088_v56, %v1087_v27  ;;  %v1288_v34 = vadd.f32 %v1287_v30, %v1286_v21  ;;  %v1311_v31 = vsel %vm920_vm2, %v1189_v17, 0.0 }
 0x153   : > { %v1313_v39 = vsel %vm920_vm2, %v1190_v35, 0.0 }
 0x154   : > { %v1290_v36 = vadd.f32 %v1289_v33, %v1288_v34  ;;  %v1091_v37 = vadd.f32 %v1090_v51, %v1089_v57  ;;  %v1191_v33 = vmul.f32 %v2257_v62, %v2257_v62  ;;  %v1192_v57 = vmul.f32 %v2286_v32, %v2286_v32 }
 0x156   : > { %v1093_v48 = vadd.f32 %v1092_v9, %v1091_v37  ;;  %v1292_v53 = vadd.f32 %v1291_v41, %v1290_v36  ;;  %v1315_v37 = vsel %vm920_vm2, %v1191_v33, 0.0  ;;  %v1193_v41 = vmul.f32 %v2277_v26, %v2277_v26 }
 0x157   : > { %v1317_v18 = vsel %vm920_vm2, %v1192_v57, 0.0 }
 0x158   : > { %v1294_v7 = vadd.f32 %v1293_v44, %v1292_v53  ;;  %v1095_v49 = vadd.f32 %v1094_v4, %v1093_v48  ;;  %v1118_v48 = vsel %vm920_vm2, %v2277_v26, 0.0  ;;  %v1319_v32 = vsel %vm920_vm2, %v1193_v41, 0.0 }
 0x15a   : > { %v1097_v58 = vadd.f32 %v1096_v28, %v1095_v49  ;;  %v1296_v59 = vadd.f32 %v1295_v50, %v1294_v7 }
 0x15c   : > { %v1298_v60 = vadd.f32 %v1297_v54, %v1296_v59  ;;  %v1099_v3 = vadd.f32 %v1098_v22, %v1097_v58  ;;  %v992_v22 = vld [vmem:[%s1981_s29] sm:$0x1] }
 0x15e   : > { %v1101_v0 = vadd.f32 %v1100_v47, %v1099_v3  ;;  %v1300_v2 = vadd.f32 %v1299_v23, %v1298_v60  ;;  %v1129_v60 = vld [vmem:[%s1987_s6] sm:$0x1] }
 0x160   : > { %v1302_v6 = vadd.f32 %v1301_v15, %v1300_v2  ;;  %v1103_v8 = vadd.f32 %v1102_v42, %v1101_v0 }
 0x162   : > { %v1105_v12 = vadd.f32 %v1104_v1, %v1103_v8  ;;  %v1304_v13 = vadd.f32 %v1303_v10, %v1302_v6 }
 0x164   : > { %v1306_v25 = vadd.f32 %v1305_v40, %v1304_v13  ;;  %v1107_v43 = vadd.f32 %v1106_v61, %v1105_v12 }
 0x166   : > { %v1109_v56 = vadd.f32 %v1108_v24, %v1107_v43  ;;  %v1308_v21 = vadd.f32 %v1307_v14, %v1306_v25 }
 0x168   : > { %v1310_v27 = vadd.f32 %v1309_v20, %v1308_v21  ;;  %v1111_v30 = vadd.f32 %v1110_v16, %v1109_v56 }
 0x16a   : > { %v1113_v34 = vadd.f32 %v1112_v46, %v1111_v30  ;;  %v1312_v51 = vadd.f32 %v1311_v31, %v1310_v27 }
 0x16c   : > { %v1314_v9 = vadd.f32 %v1313_v39, %v1312_v51  ;;  %v1115_v36 = vadd.f32 %v1114_v38, %v1113_v34 }
 0x16e   : > { %v1117_v44 = vadd.f32 %v1116_v5, %v1115_v36  ;;  %v1316_v45 = vadd.f32 %v1315_v37, %v1314_v9 }
 0x170   : > { %v1119_v53 = vadd.f32 %v1118_v48, %v1117_v44  ;;  %v1318_v62 = vadd.f32 %v1317_v18, %v1316_v45 }
 0x172   : > { %v1120_v4 = vrot.slane %v1119_v53, 4  ;;  %v1320_v28 = vadd.f32 %v1319_v32, %v1318_v62 }
 0x174   : > { %v1121_v7 = vadd.f32 %v1120_v4, %v1119_v53  ;;  %v1321_v49 = vrot.slane %v1320_v28, 4 }
 0x176   : > { %v1122_v50 = vrot.slane %v1121_v7, 2  ;;  %v1322_v52 = vadd.f32 %v1321_v49, %v1320_v28 }
 0x178   : > { %v1123_v54 = vadd.f32 %v1122_v50, %v1121_v7  ;;  %v1323_v55 = vrot.slane %v1322_v52, 2 }
 0x17a   : > { %v1124_v58 = vrot.slane %v1123_v54, 1  ;;  %v1324_v59 = vadd.f32 %v1323_v55, %v1322_v52 }
 0x17c   : > { %v1125_v47 = vadd.f32 %v1124_v58, %v1123_v54  ;;  %v1325_v26 = vrot.slane %v1324_v59, 1 }
 0x17e   : > { %v1126_v3 = vadd.f32 %v1125_v47, %v992_v22  ;;  %v1326_v23 = vadd.f32 %v1325_v26, %v1324_v59 }
 0x180   : > { %1128 = vst.msk [vmem:[%s1981_s29] sm:$0x1] %vm989_vm1, %v1126_v3  ;;  %v1327_v63 = vadd.f32 %v1326_v23, %v1129_v60 }
 0x182   : > { %1328 = vst.msk [vmem:[%s1987_s6] sm:$0x1] %vm989_vm1, %v1327_v63 }
 0x183 PF: > { %s15_s17 = sadd.s32 1, %s1789_s17   ;;  %s2468_s15 = smov %s1785_s16 }
 0x184   : > { %p12_p5 = scmp.ge.s32.totalorder %s15_s17, 6   ;;  %s2469_s16 = smov %s2471_s18 }
 0x186   :  { %14 = sbr.rel (!%p12_p5) target bundleno = 2 (0x2), region = 89 }

// kernel: svhn_generator_forward.15
= control target key start
LH: loop header
LB: loop body
LE: loop exit
PB: predicated region body
PF: predicated region fallthrough
CT: control target
= control target key end

     0   :  { %s2609_s9 = smov 0   ;;  %s2611_s10 = smov 0   ;;  %s3186_s0 = inlined_call_operand.vmem [shape: f32[4,2048,16], index: 0, kind: input, shape index: {}]   ;;  %s3187_s1 = inlined_call_operand.vmem [shape: f32[4,16,3], index: 1, kind: input, shape index: {}]   ;;  %s3188_s2 = inlined_call_operand.vmem [shape: f32[4,2048,3], index: 2, kind: output, shape index: {}]  }
   0x1   :  { %s2613_s11 = smov 0   ;;  %s2615_s12 = smov 0  }
   0x2   :  { %s2617_s13 = smov 0  }
   0x3 LB: > { %s21_s14 = sadd.s32 1, %s2584_s11  ;;  %s24_s15 = sadd.s32 1, %s2588_s12  ;;  %s2592_s13 = sphi %s2617_s13, %s12_s13   ;;  %s2588_s12 = sphi %s2615_s12, %s3192_s12   ;;  %s2584_s11 = sphi %s2613_s11, %s3191_s11   ;;  %s2580_s10 = sphi %s2611_s10, %s3190_s10   ;;  %s2576_s9 = sphi %s2609_s9, %s3189_s9  }
   0x4   : > { %p22_p0 = scmp.ge.s32.totalorder %s21_s14, 2  ;;  %p1786_p1 = scmp.ge.s32.totalorder %s2592_s13, 1 }
   0x5   : > { %p143_p2 = scmp.lt.s32.totalorder %s2592_s13, 9 }
   0x6   : > { %s3194_s14 = smov (%p22_p0, %s21_s14), 0  ;;  %s3196_s15 = smov (!%p22_p0, %s24_s15), %s2588_s12 }
   0x7   : > { %p144_p3 = pnand %p1786_p1, %p143_p2  ;;  %p26_p4 = scmp.ge.s32.totalorder %s3196_s15, 4 }
   0x8   : > { %s1787_s16 = sshll.u32 (!%p144_p3), %s2576_s9, 7  ;;  %p179_p5 = scmp.lt.s32.totalorder (!%p144_p3), %s2580_s10, 3  ;;  %vm333_vm0 = vcmask (!%p144_p3), 130048   ;;  %vm1551_vm1 = vcmask (!%p144_p3), 23552  }
   0x9   : > { %s3198_s15 = smov (%p26_p4, %s3196_s15), 0  ;;  %147 = sbr.rel (%p144_p3) target bundleno = 378 (0x17a), region = 28 }
   0xa   : > { %p181_p6 = scmp.lt.s32.totalorder (!%p144_p3), %s1787_s16, 255 }
  0x10   : > { %s3200_s10 = smov (!%p179_p5, %s2580_s10), 3  ;;  %s3202_s16 = smov (!%p181_p6, %s1787_s16), 255 }
  0x11   : > { %s1788_s17 = sshll.u32 %s3200_s10, 8  ;;  %s1925_s18 = sshll.u32 %s3200_s10, 4 }
  0x12   : > { %s2639_s19 = sadd.s32 %s1788_s17, %s3202_s16  ;;  %s192_s22 = scalar_lea.vmem %s3187_s1, %s1925_s18 }
  0x13   : > { %s1789_s23 = sshll.u32 %s2639_s19, 3  ;;  %v331_v0 = vld [vmem:[%s192_s22] sm:$0xff]  ;;  %v332_v1 = vld [vmem:[%s192_s22 + $0x8] sm:$0xff] }
  0x14   : > { %s2650_s26 = scalar_lea.vmem %s3186_s0, %s1789_s23  ;;  %v2252_v2 = vpack.c.bf16 %v332_v1, %v331_v0  ;;  %s2913_s29 = scalar_lea.vmem %s3188_s2, %s1789_s23 }
  0x15   : > { %v203_v3 = vld [vmem:[%s2650_s26] sm:$0xff]  ;;  %v204_v5 = vld [vmem:[%s2650_s26 + $0x8] sm:$0xff]  ;;  %v205_v7 = vld [vmem:[%s2650_s26 + $0x10] sm:$0xff] }
  0x16   : > { %v267_v4 = vld [vmem:[%s2650_s26 + $0x200] sm:$0xff]  ;;  %2253 = vmatprep.subr.bf16.mxu0 %v2252_v2  ;;  %2256 = vmatprep.subr.bf16.mxu1 %v2252_v2  ;;  %v268_v6 = vld [vmem:[%s2650_s26 + $0x208] sm:$0xff]  ;;  %v269_v8 = vld [vmem:[%s2650_s26 + $0x210] sm:$0xff] }
  0x17   : > { %2255 = vmatpush3.bf16.msra.mxu0 %v2252_v2  ;;  %2257 = vmatpush3.bf16.msra.mxu1 %v2252_v2  ;;  %v206_v9 = vld [vmem:[%s2650_s26 + $0x18] sm:$0xff]  ;;  %v207_v11 = vld [vmem:[%s2650_s26 + $0x20] sm:$0xff]  ;;  %v208_v13 = vld [vmem:[%s2650_s26 + $0x28] sm:$0xff] }
  0x18   : > { %2060 = vmatprep.mubr.msk.f32.mxu0 %vm333_vm0, %v203_v3  ;;  %2156 = vmatprep.mubr.msk.f32.mxu1 %vm333_vm0, %v267_v4  ;;  %v270_v10 = vld [vmem:[%s2650_s26 + $0x218] sm:$0xff]  ;;  %v271_v12 = vld [vmem:[%s2650_s26 + $0x220] sm:$0xff]  ;;  %v272_v14 = vld [vmem:[%s2650_s26 + $0x228] sm:$0xff] }
  0x19   : > { %v209_v15 = vld [vmem:[%s2650_s26 + $0x30] sm:$0xff]  ;;  %v210_v17 = vld [vmem:[%s2650_s26 + $0x38] sm:$0xff]  ;;  %v211_v19 = vld [vmem:[%s2650_s26 + $0x40] sm:$0xff] }
  0x1a   : > { %2061 = vmatmul.mubr.msk.f32.vlgmr.msra.gmra.mrb[0].mxu0 %vm333_vm0, %v204_v5  ;;  %2157 = vmatmul.mubr.msk.f32.vlgmr.msra.gmra.mrb[0].mxu1 %vm333_vm0, %v268_v6  ;;  %v273_v16 = vld [vmem:[%s2650_s26 + $0x230] sm:$0xff]  ;;  %v274_v18 = vld [vmem:[%s2650_s26 + $0x238] sm:$0xff]  ;;  %v275_v20 = vld [vmem:[%s2650_s26 + $0x240] sm:$0xff] }
  0x1b   : > { %2063 = vmatprep.mubr.msk.f32.mxu0 %vm333_vm0, %v205_v7  ;;  %2159 = vmatprep.mubr.msk.f32.mxu1 %vm333_vm0, %v269_v8  ;;  %v212_v21 = vld [vmem:[%s2650_s26 + $0x48] sm:$0xff]  ;;  %v213_v23 = vld [vmem:[%s2650_s26 + $0x50] sm:$0xff]  ;;  %v214_v25 = vld [vmem:[%s2650_s26 + $0x58] sm:$0xff] }
  0x1c   : > { %v276_v22 = vld [vmem:[%s2650_s26 + $0x248] sm:$0xff]  ;;  %v277_v24 = vld [vmem:[%s2650_s26 + $0x250] sm:$0xff]  ;;  %v278_v26 = vld [vmem:[%s2650_s26 + $0x258] sm:$0xff] }
  0x1d   : > { %v215_v27 = vld [vmem:[%s2650_s26 + $0x60] sm:$0xff]  ;;  %v216_v29 = vld [vmem:[%s2650_s26 + $0x68] sm:$0xff]  ;;  %v217_v31 = vld [vmem:[%s2650_s26 + $0x70] sm:$0xff] }
  0x1e   : > { %2064 = vmatmul.mubr.msk.f32.gmra.mrb[2].mxu0 %vm333_vm0, %v206_v9  ;;  %2160 = vmatmul.mubr.msk.f32.gmra.mrb[2].mxu1 %vm333_vm0, %v270_v10  ;;  %v279_v28 = vld [vmem:[%s2650_s26 + $0x260] sm:$0xff]  ;;  %v280_v30 = vld [vmem:[%s2650_s26 + $0x268] sm:$0xff]  ;;  %v281_v32 = vld [vmem:[%s2650_s26 + $0x270] sm:$0xff] }
  0x1f   : > { %2066 = vmatprep.mubr.msk.f32.mxu0 %vm333_vm0, %v207_v11  ;;  %2162 = vmatprep.mubr.msk.f32.mxu1 %vm333_vm0, %v271_v12  ;;  %v218_v33 = vld [vmem:[%s2650_s26 + $0x78] sm:$0xff]  ;;  %v219_v35 = vld [vmem:[%s2650_s26 + $0x80] sm:$0xff]  ;;  %v220_v37 = vld [vmem:[%s2650_s26 + $0x88] sm:$0xff] }
  0x20   : > { %v282_v34 = vld [vmem:[%s2650_s26 + $0x278] sm:$0xff]  ;;  %v283_v36 = vld [vmem:[%s2650_s26 + $0x280] sm:$0xff]  ;;  %v284_v38 = vld [vmem:[%s2650_s26 + $0x288] sm:$0xff] }
  0x21   : > { %v221_v39 = vld [vmem:[%s2650_s26 + $0x90] sm:$0xff]  ;;  %v222_v41 = vld [vmem:[%s2650_s26 + $0x98] sm:$0xff]  ;;  %v223_v43 = vld [vmem:[%s2650_s26 + $0xa0] sm:$0xff] }
  0x22   : > { %2067 = vmatmul.mubr.msk.f32.gmra.mrb[4].mxu0 %vm333_vm0, %v208_v13  ;;  %2163 = vmatmul.mubr.msk.f32.gmra.mrb[4].mxu1 %vm333_vm0, %v272_v14  ;;  %v285_v40 = vld [vmem:[%s2650_s26 + $0x290] sm:$0xff]  ;;  %v286_v42 = vld [vmem:[%s2650_s26 + $0x298] sm:$0xff]  ;;  %v287_v44 = vld [vmem:[%s2650_s26 + $0x2a0] sm:$0xff] }
  0x23   : > { %2069 = vmatprep.mubr.msk.f32.mxu0 %vm333_vm0, %v209_v15  ;;  %2165 = vmatprep.mubr.msk.f32.mxu1 %vm333_vm0, %v273_v16  ;;  %v224_v45 = vld [vmem:[%s2650_s26 + $0xa8] sm:$0xff]  ;;  %v225_v47 = vld [vmem:[%s2650_s26 + $0xb0] sm:$0xff]  ;;  %v226_v49 = vld [vmem:[%s2650_s26 + $0xb8] sm:$0xff] }
  0x24   : > { %v288_v46 = vld [vmem:[%s2650_s26 + $0x2a8] sm:$0xff]  ;;  %v289_v48 = vld [vmem:[%s2650_s26 + $0x2b0] sm:$0xff]  ;;  %v290_v50 = vld [vmem:[%s2650_s26 + $0x2b8] sm:$0xff] }
  0x25   : > { %v227_v51 = vld [vmem:[%s2650_s26 + $0xc0] sm:$0xff]  ;;  %v228_v53 = vld [vmem:[%s2650_s26 + $0xc8] sm:$0xff]  ;;  %v229_v55 = vld [vmem:[%s2650_s26 + $0xd0] sm:$0xff] }
  0x26   : > { %2070 = vmatmul.mubr.msk.f32.gmra.mrb[6].mxu0 %vm333_vm0, %v210_v17  ;;  %2166 = vmatmul.mubr.msk.f32.gmra.mrb[6].mxu1 %vm333_vm0, %v274_v18  ;;  %v291_v52 = vld [vmem:[%s2650_s26 + $0x2c0] sm:$0xff]  ;;  %v292_v54 = vld [vmem:[%s2650_s26 + $0x2c8] sm:$0xff]  ;;  %v293_v56 = vld [vmem:[%s2650_s26 + $0x2d0] sm:$0xff] }
  0x27   : > { %2072 = vmatprep.mubr.msk.f32.mxu0 %vm333_vm0, %v211_v19  ;;  %2168 = vmatprep.mubr.msk.f32.mxu1 %vm333_vm0, %v275_v20  ;;  %v230_v57 = vld [vmem:[%s2650_s26 + $0xd8] sm:$0xff]  ;;  %v231_v59 = vld [vmem:[%s2650_s26 + $0xe0] sm:$0xff]  ;;  %v232_v61 = vld [vmem:[%s2650_s26 + $0xe8] sm:$0xff] }
  0x28   : > { %v294_v58 = vld [vmem:[%s2650_s26 + $0x2d8] sm:$0xff]  ;;  %v295_v60 = vld [vmem:[%s2650_s26 + $0x2e0] sm:$0xff]  ;;  %v296_v62 = vld [vmem:[%s2650_s26 + $0x2e8] sm:$0xff] }
  0x29   : > { %v233_v63 = vld [vmem:[%s2650_s26 + $0xf0] sm:$0xff]  ;;  %v234_v1 = vld [vmem:[%s2650_s26 + $0xf8] sm:$0xff]  ;;  %v235_v3 = vld [vmem:[%s2650_s26 + $0x100] sm:$0xff] }
  0x2a   : > { %2073 = vmatmul.mubr.msk.f32.gmra.mrb[8].mxu0 %vm333_vm0, %v212_v21  ;;  %2169 = vmatmul.mubr.msk.f32.gmra.mrb[8].mxu1 %vm333_vm0, %v276_v22  ;;  %v297_v0 = vld [vmem:[%s2650_s26 + $0x2f0] sm:$0xff]  ;;  %v298_v2 = vld [vmem:[%s2650_s26 + $0x2f8] sm:$0xff]  ;;  %v299_v4 = vld [vmem:[%s2650_s26 + $0x300] sm:$0xff] }
  0x2b   : > { %2075 = vmatprep.mubr.msk.f32.mxu0 %vm333_vm0, %v213_v23  ;;  %2171 = vmatprep.mubr.msk.f32.mxu1 %vm333_vm0, %v277_v24  ;;  %v236_v5 = vld [vmem:[%s2650_s26 + $0x108] sm:$0xff]  ;;  %v237_v7 = vld [vmem:[%s2650_s26 + $0x110] sm:$0xff]  ;;  %v238_v9 = vld [vmem:[%s2650_s26 + $0x118] sm:$0xff] }
  0x2c   : > { %v300_v6 = vld [vmem:[%s2650_s26 + $0x308] sm:$0xff]  ;;  %v301_v8 = vld [vmem:[%s2650_s26 + $0x310] sm:$0xff]  ;;  %v302_v10 = vld [vmem:[%s2650_s26 + $0x318] sm:$0xff] }
  0x2d   : > { %v239_v11 = vld [vmem:[%s2650_s26 + $0x120] sm:$0xff]  ;;  %v240_v13 = vld [vmem:[%s2650_s26 + $0x128] sm:$0xff]  ;;  %v241_v15 = vld [vmem:[%s2650_s26 + $0x130] sm:$0xff] }
  0x2e   : > { %2076 = vmatmul.mubr.msk.f32.gmra.mrb[10].mxu0 %vm333_vm0, %v214_v25  ;;  %2172 = vmatmul.mubr.msk.f32.gmra.mrb[10].mxu1 %vm333_vm0, %v278_v26  ;;  %v303_v12 = vld [vmem:[%s2650_s26 + $0x320] sm:$0xff]  ;;  %v304_v14 = vld [vmem:[%s2650_s26 + $0x328] sm:$0xff]  ;;  %v305_v16 = vld [vmem:[%s2650_s26 + $0x330] sm:$0xff] }
  0x2f   : > { %2078 = vmatprep.mubr.msk.f32.mxu0 %vm333_vm0, %v215_v27  ;;  %2174 = vmatprep.mubr.msk.f32.mxu1 %vm333_vm0, %v279_v28  ;;  %v242_v17 = vld [vmem:[%s2650_s26 + $0x138] sm:$0xff]  ;;  %v243_v19 = vld [vmem:[%s2650_s26 + $0x140] sm:$0xff]  ;;  %v244_v21 = vld [vmem:[%s2650_s26 + $0x148] sm:$0xff] }
  0x30   : > { %v306_v18 = vld [vmem:[%s2650_s26 + $0x338] sm:$0xff]  ;;  %v307_v20 = vld [vmem:[%s2650_s26 + $0x340] sm:$0xff]  ;;  %v308_v22 = vld [vmem:[%s2650_s26 + $0x348] sm:$0xff] }
  0x31   : > { %v245_v23 = vld [vmem:[%s2650_s26 + $0x150] sm:$0xff]  ;;  %v246_v25 = vld [vmem:[%s2650_s26 + $0x158] sm:$0xff]  ;;  %v247_v27 = vld [vmem:[%s2650_s26 + $0x160] sm:$0xff] }
  0x32   : > { %2079 = vmatmul.mubr.msk.f32.gmra.mrb[12].mxu0 %vm333_vm0, %v216_v29  ;;  %2175 = vmatmul.mubr.msk.f32.gmra.mrb[12].mxu1 %vm333_vm0, %v280_v30  ;;  %v309_v24 = vld [vmem:[%s2650_s26 + $0x350] sm:$0xff]  ;;  %v310_v26 = vld [vmem:[%s2650_s26 + $0x358] sm:$0xff]  ;;  %v311_v28 = vld [vmem:[%s2650_s26 + $0x360] sm:$0xff] }
  0x33   : > { %2081 = vmatprep.mubr.msk.f32.mxu0 %vm333_vm0, %v217_v31  ;;  %2177 = vmatprep.mubr.msk.f32.mxu1 %vm333_vm0, %v281_v32  ;;  %v248_v29 = vld [vmem:[%s2650_s26 + $0x168] sm:$0xff]  ;;  %v249_v31 = vld [vmem:[%s2650_s26 + $0x170] sm:$0xff] }
  0x34   : > { %v312_v30 = vld [vmem:[%s2650_s26 + $0x368] sm:$0xff]  ;;  %v313_v32 = vld [vmem:[%s2650_s26 + $0x370] sm:$0xff] }
  0x36   : > { %2082 = vmatmul.mubr.msk.f32.gmra.mrb[14].mxu0 %vm333_vm0, %v218_v33  ;;  %2178 = vmatmul.mubr.msk.f32.gmra.mrb[14].mxu1 %vm333_vm0, %v282_v34  ;;  %v250_v33 = vld [vmem:[%s2650_s26 + $0x178] sm:$0xff] }
  0x37   : > { %2084 = vmatprep.mubr.msk.f32.mxu0 %vm333_vm0, %v219_v35  ;;  %2180 = vmatprep.mubr.msk.f32.mxu1 %vm333_vm0, %v283_v36  ;;  %v314_v34 = vld [vmem:[%s2650_s26 + $0x378] sm:$0xff]  ;;  %v251_v35 = vld [vmem:[%s2650_s26 + $0x180] sm:$0xff] }
  0x38   : > { %v315_v36 = vld [vmem:[%s2650_s26 + $0x380] sm:$0xff] }
  0x3a   : > { %2085 = vmatmul.mubr.msk.f32.gmra.mrb[16].mxu0 %vm333_vm0, %v220_v37  ;;  %2181 = vmatmul.mubr.msk.f32.gmra.mrb[16].mxu1 %vm333_vm0, %v284_v38  ;;  %v252_v37 = vld [vmem:[%s2650_s26 + $0x188] sm:$0xff] }
  0x3b   : > { %2087 = vmatprep.mubr.msk.f32.mxu0 %vm333_vm0, %v221_v39  ;;  %2183 = vmatprep.mubr.msk.f32.mxu1 %vm333_vm0, %v285_v40  ;;  %v316_v38 = vld [vmem:[%s2650_s26 + $0x388] sm:$0xff]  ;;  %v253_v39 = vld [vmem:[%s2650_s26 + $0x190] sm:$0xff] }
  0x3c   : > { %v317_v40 = vld [vmem:[%s2650_s26 + $0x390] sm:$0xff] }
  0x3e   : > { %2088 = vmatmul.mubr.msk.f32.gmra.mrb[18].mxu0 %vm333_vm0, %v222_v41  ;;  %2184 = vmatmul.mubr.msk.f32.gmra.mrb[18].mxu1 %vm333_vm0, %v286_v42  ;;  %v254_v41 = vld [vmem:[%s2650_s26 + $0x198] sm:$0xff] }
  0x3f   : > { %2090 = vmatprep.mubr.msk.f32.mxu0 %vm333_vm0, %v223_v43  ;;  %2186 = vmatprep.mubr.msk.f32.mxu1 %vm333_vm0, %v287_v44  ;;  %v318_v42 = vld [vmem:[%s2650_s26 + $0x398] sm:$0xff]  ;;  %v255_v43 = vld [vmem:[%s2650_s26 + $0x1a0] sm:$0xff] }
  0x40   : > { %v319_v44 = vld [vmem:[%s2650_s26 + $0x3a0] sm:$0xff] }
  0x42   : > { %2091 = vmatmul.mubr.msk.f32.gmra.mrb[20].mxu0 %vm333_vm0, %v224_v45  ;;  %2187 = vmatmul.mubr.msk.f32.gmra.mrb[20].mxu1 %vm333_vm0, %v288_v46  ;;  %v256_v45 = vld [vmem:[%s2650_s26 + $0x1a8] sm:$0xff] }
  0x43   : > { %2093 = vmatprep.mubr.msk.f32.mxu0 %vm333_vm0, %v225_v47  ;;  %2189 = vmatprep.mubr.msk.f32.mxu1 %vm333_vm0, %v289_v48  ;;  %v320_v46 = vld [vmem:[%s2650_s26 + $0x3a8] sm:$0xff]  ;;  %v257_v47 = vld [vmem:[%s2650_s26 + $0x1b0] sm:$0xff] }
  0x44   : > { %v321_v48 = vld [vmem:[%s2650_s26 + $0x3b0] sm:$0xff] }
  0x46   : > { %2094 = vmatmul.mubr.msk.f32.gmra.mrb[22].mxu0 %vm333_vm0, %v226_v49  ;;  %2190 = vmatmul.mubr.msk.f32.gmra.mrb[22].mxu1 %vm333_vm0, %v290_v50  ;;  %v258_v49 = vld [vmem:[%s2650_s26 + $0x1b8] sm:$0xff] }
  0x47   : > { %2096 = vmatprep.mubr.msk.f32.mxu0 %vm333_vm0, %v227_v51  ;;  %2192 = vmatprep.mubr.msk.f32.mxu1 %vm333_vm0, %v291_v52  ;;  %v322_v50 = vld [vmem:[%s2650_s26 + $0x3b8] sm:$0xff]  ;;  %v259_v51 = vld [vmem:[%s2650_s26 + $0x1c0] sm:$0xff] }
  0x48   : > { %v323_v52 = vld [vmem:[%s2650_s26 + $0x3c0] sm:$0xff] }
  0x4a   : > { %2097 = vmatmul.mubr.msk.f32.gmra.mrb[24].mxu0 %vm333_vm0, %v228_v53  ;;  %2193 = vmatmul.mubr.msk.f32.gmra.mrb[24].mxu1 %vm333_vm0, %v292_v54  ;;  %v260_v53 = vld [vmem:[%s2650_s26 + $0x1c8] sm:$0xff] }
  0x4b   : > { %2099 = vmatprep.mubr.msk.f32.mxu0 %vm333_vm0, %v229_v55  ;;  %2195 = vmatprep.mubr.msk.f32.mxu1 %vm333_vm0, %v293_v56  ;;  %v324_v54 = vld [vmem:[%s2650_s26 + $0x3c8] sm:$0xff]  ;;  %v261_v55 = vld [vmem:[%s2650_s26 + $0x1d0] sm:$0xff] }
  0x4c   : > { %v325_v56 = vld [vmem:[%s2650_s26 + $0x3d0] sm:$0xff] }
  0x4e   : > { %2100 = vmatmul.mubr.msk.f32.gmra.mrb[26].mxu0 %vm333_vm0, %v230_v57  ;;  %2196 = vmatmul.mubr.msk.f32.gmra.mrb[26].mxu1 %vm333_vm0, %v294_v58  ;;  %v262_v57 = vld [vmem:[%s2650_s26 + $0x1d8] sm:$0xff] }
  0x4f   : > { %2102 = vmatprep.mubr.msk.f32.mxu0 %vm333_vm0, %v231_v59  ;;  %2198 = vmatprep.mubr.msk.f32.mxu1 %vm333_vm0, %v295_v60  ;;  %v326_v58 = vld [vmem:[%s2650_s26 + $0x3d8] sm:$0xff]  ;;  %v263_v59 = vld [vmem:[%s2650_s26 + $0x1e0] sm:$0xff] }
  0x50   : > { %v327_v60 = vld [vmem:[%s2650_s26 + $0x3e0] sm:$0xff] }
  0x52   : > { %2103 = vmatmul.mubr.msk.f32.gmra.mrb[28].mxu0 %vm333_vm0, %v232_v61  ;;  %2199 = vmatmul.mubr.msk.f32.gmra.mrb[28].mxu1 %vm333_vm0, %v296_v62  ;;  %v264_v61 = vld [vmem:[%s2650_s26 + $0x1e8] sm:$0xff] }
  0x53   : > { %2105 = vmatprep.mubr.msk.f32.mxu0 %vm333_vm0, %v233_v63  ;;  %2201 = vmatprep.mubr.msk.f32.mxu1 %vm333_vm0, %v297_v0  ;;  %v328_v62 = vld [vmem:[%s2650_s26 + $0x3e8] sm:$0xff]  ;;  %v265_v63 = vld [vmem:[%s2650_s26 + $0x1f0] sm:$0xff] }
  0x54   : > { %v329_v0 = vld [vmem:[%s2650_s26 + $0x3f0] sm:$0xff] }
  0x56   : > { %2106 = vmatmul.mubr.msk.f32.gmra.mrb[30].mxu0 %vm333_vm0, %v234_v1  ;;  %2202 = vmatmul.mubr.msk.f32.gmra.mrb[30].mxu1 %vm333_vm0, %v298_v2  ;;  %v266_v1 = vld [vmem:[%s2650_s26 + $0x1f8] sm:$0xff] }
  0x57   : > { %2108 = vmatprep.mubr.msk.f32.mxu0 %vm333_vm0, %v235_v3  ;;  %2204 = vmatprep.mubr.msk.f32.mxu1 %vm333_vm0, %v299_v4  ;;  %v330_v2 = vld [vmem:[%s2650_s26 + $0x3f8] sm:$0xff] }
  0x5a   : > { %2109 = vmatmul.mubr.msk.f32.gmra.mrb[32].mxu0 %vm333_vm0, %v236_v5  ;;  %2205 = vmatmul.mubr.msk.f32.gmra.mrb[32].mxu1 %vm333_vm0, %v300_v6 }
  0x5b   : > { %2111 = vmatprep.mubr.msk.f32.mxu0 %vm333_vm0, %v237_v7  ;;  %2207 = vmatprep.mubr.msk.f32.mxu1 %vm333_vm0, %v301_v8 }
  0x5e   : > { %2112 = vmatmul.mubr.msk.f32.gmra.mrb[34].mxu0 %vm333_vm0, %v238_v9  ;;  %2208 = vmatmul.mubr.msk.f32.gmra.mrb[34].mxu1 %vm333_vm0, %v302_v10 }
  0x5f   : > { %2114 = vmatprep.mubr.msk.f32.mxu0 %vm333_vm0, %v239_v11  ;;  %2210 = vmatprep.mubr.msk.f32.mxu1 %vm333_vm0, %v303_v12 }
  0x62   : > { %2115 = vmatmul.mubr.msk.f32.gmra.mrb[36].mxu0 %vm333_vm0, %v240_v13  ;;  %2211 = vmatmul.mubr.msk.f32.gmra.mrb[36].mxu1 %vm333_vm0, %v304_v14 }
  0x63   : > { %2117 = vmatprep.mubr.msk.f32.mxu0 %vm333_vm0, %v241_v15  ;;  %2213 = vmatprep.mubr.msk.f32.mxu1 %vm333_vm0, %v305_v16 }
  0x66   : > { %2118 = vmatmul.mubr.msk.f32.gmra.mrb[38].mxu0 %vm333_vm0, %v242_v17  ;;  %2214 = vmatmul.mubr.msk.f32.gmra.mrb[38].mxu1 %vm333_vm0, %v306_v18 }
  0x67   : > { %2120 = vmatprep.mubr.msk.f32.mxu0 %vm333_vm0, %v243_v19  ;;  %2216 = vmatprep.mubr.msk.f32.mxu1 %vm333_vm0, %v307_v20 }
  0x6a   : > { %2121 = vmatmul.mubr.msk.f32.gmra.mrb[40].mxu0 %vm333_vm0, %v244_v21  ;;  %2217 = vmatmul.mubr.msk.f32.gmra.mrb[40].mxu1 %vm333_vm0, %v308_v22 }
  0x6b   : > { %2123 = vmatprep.mubr.msk.f32.mxu0 %vm333_vm0, %v245_v23  ;;  %2219 = vmatprep.mubr.msk.f32.mxu1 %vm333_vm0, %v309_v24 }
  0x6e   : > { %2124 = vmatmul.mubr.msk.f32.gmra.mrb[42].mxu0 %vm333_vm0, %v246_v25  ;;  %2220 = vmatmul.mubr.msk.f32.gmra.mrb[42].mxu1 %vm333_vm0, %v310_v26 }
  0x6f   : > { %2126 = vmatprep.mubr.msk.f32.mxu0 %vm333_vm0, %v247_v27  ;;  %2222 = vmatprep.mubr.msk.f32.mxu1 %vm333_vm0, %v311_v28 }
  0x72   : > { %2127 = vmatmul.mubr.msk.f32.gmra.mrb[44].mxu0 %vm333_vm0, %v248_v29  ;;  %2223 = vmatmul.mubr.msk.f32.gmra.mrb[44].mxu1 %vm333_vm0, %v312_v30 }
  0x73   : > { %2129 = vmatprep.mubr.msk.f32.mxu0 %vm333_vm0, %v249_v31  ;;  %2225 = vmatprep.mubr.msk.f32.mxu1 %vm333_vm0, %v313_v32 }
  0x76   : > { %2130 = vmatmul.mubr.msk.f32.gmra.mrb[46].mxu0 %vm333_vm0, %v250_v33  ;;  %2226 = vmatmul.mubr.msk.f32.gmra.mrb[46].mxu1 %vm333_vm0, %v314_v34 }
  0x77   : > { %2132 = vmatprep.mubr.msk.f32.mxu0 %vm333_vm0, %v251_v35  ;;  %2228 = vmatprep.mubr.msk.f32.mxu1 %vm333_vm0, %v315_v36 }
  0x7a   : > { %2133 = vmatmul.mubr.msk.f32.gmra.mrb[48].mxu0 %vm333_vm0, %v252_v37  ;;  %2229 = vmatmul.mubr.msk.f32.gmra.mrb[48].mxu1 %vm333_vm0, %v316_v38 }
  0x7b   : > { %2135 = vmatprep.mubr.msk.f32.mxu0 %vm333_vm0, %v253_v39  ;;  %2231 = vmatprep.mubr.msk.f32.mxu1 %vm333_vm0, %v317_v40 }
  0x7e   : > { %2136 = vmatmul.mubr.msk.f32.gmra.mrb[50].mxu0 %vm333_vm0, %v254_v41  ;;  %2232 = vmatmul.mubr.msk.f32.gmra.mrb[50].mxu1 %vm333_vm0, %v318_v42 }
  0x7f   : > { %2138 = vmatprep.mubr.msk.f32.mxu0 %vm333_vm0, %v255_v43  ;;  %2234 = vmatprep.mubr.msk.f32.mxu1 %vm333_vm0, %v319_v44 }
  0x82   : > { %2139 = vmatmul.mubr.msk.f32.gmra.mrb[52].mxu0 %vm333_vm0, %v256_v45  ;;  %2235 = vmatmul.mubr.msk.f32.gmra.mrb[52].mxu1 %vm333_vm0, %v320_v46 }
  0x83   : > { %2141 = vmatprep.mubr.msk.f32.mxu0 %vm333_vm0, %v257_v47  ;;  %2237 = vmatprep.mubr.msk.f32.mxu1 %vm333_vm0, %v321_v48 }
  0x86   : > { %2142 = vmatmul.mubr.msk.f32.gmra.mrb[54].mxu0 %vm333_vm0, %v258_v49  ;;  %2238 = vmatmul.mubr.msk.f32.gmra.mrb[54].mxu1 %vm333_vm0, %v322_v50 }
  0x87   : > { %2144 = vmatprep.mubr.msk.f32.mxu0 %vm333_vm0, %v259_v51  ;;  %2240 = vmatprep.mubr.msk.f32.mxu1 %vm333_vm0, %v323_v52 }
  0x8a   : > { %2145 = vmatmul.mubr.msk.f32.gmra.mrb[56].mxu0 %vm333_vm0, %v260_v53  ;;  %2241 = vmatmul.mubr.msk.f32.gmra.mrb[56].mxu1 %vm333_vm0, %v324_v54 }
  0x8b   : > { %2147 = vmatprep.mubr.msk.f32.mxu0 %vm333_vm0, %v261_v55  ;;  %2243 = vmatprep.mubr.msk.f32.mxu1 %vm333_vm0, %v325_v56 }
  0x8e   : > { %2148 = vmatmul.mubr.msk.f32.gmra.mrb[58].mxu0 %vm333_vm0, %v262_v57  ;;  %2244 = vmatmul.mubr.msk.f32.gmra.mrb[58].mxu1 %vm333_vm0, %v326_v58 }
  0x8f   : > { %2150 = vmatprep.mubr.msk.f32.mxu0 %vm333_vm0, %v263_v59  ;;  %2246 = vmatprep.mubr.msk.f32.mxu1 %vm333_vm0, %v327_v60 }
  0x92   : > { %2151 = vmatmul.mubr.msk.f32.gmra.mrb[60].mxu0 %vm333_vm0, %v264_v61  ;;  %2247 = vmatmul.mubr.msk.f32.gmra.mrb[60].mxu1 %vm333_vm0, %v328_v62 }
  0x93   : > { %2153 = vmatprep.mubr.msk.f32.mxu0 %vm333_vm0, %v265_v63  ;;  %2249 = vmatprep.mubr.msk.f32.mxu1 %vm333_vm0, %v329_v0 }
  0x96   : > { %2154 = vmatmul.mubr.msk.f32.gmra.mrb[62].mxu0 %vm333_vm0, %v266_v1  ;;  %2250 = vmatmul.mubr.msk.f32.gmra.mrb[62].mxu1 %vm333_vm0, %v330_v2 }
  0xed   : > { %v2062_v3 = vpop.f32.mrb[0].mxu0  ;;  %v2158_v4 = vpop.f32.mrb[0].mxu1 }
  0xee   : > { %2298 = vtanh.f32 %v2062_v3  ;;  %v784_v5 = vpop.f32.mrb[1].mxu0  ;;  %v1104_v6 = vpop.f32.mrb[1].mxu1 }
  0xef   : > { %2300 = vtanh.f32 %v2158_v4 }
  0xf0   : > { %2302 = vtanh.f32 %v784_v5 }
  0xf1   : > { %2304 = vtanh.f32 %v1104_v6  ;;  %v2065_v7 = vpop.f32.mrb[2].mxu0  ;;  %v2161_v8 = vpop.f32.mrb[2].mxu1 }
  0xf2   : > { %2306 = vtanh.f32 %v2065_v7  ;;  %v794_v9 = vpop.f32.mrb[3].mxu0  ;;  %v1114_v10 = vpop.f32.mrb[3].mxu1 }
  0xf3   : > { %2308 = vtanh.f32 %v2161_v8 }
  0xf4   : > { %2310 = vtanh.f32 %v794_v9 }
  0xf5   : > { %2312 = vtanh.f32 %v1114_v10  ;;  %v2068_v11 = vpop.f32.mrb[4].mxu0  ;;  %v2164_v12 = vpop.f32.mrb[4].mxu1 }
  0xf6   : > { %2314 = vtanh.f32 %v2068_v11  ;;  %v804_v13 = vpop.f32.mrb[5].mxu0  ;;  %v1124_v14 = vpop.f32.mrb[5].mxu1 }
  0xf7   : > { %2316 = vtanh.f32 %v2164_v12 }
  0xf8   : > { %v2299_v15 = vpop.eup %2298  ;;  %2318 = vtanh.f32 %v804_v13 }
  0xf9   : > { %v2301_v16 = vpop.eup %2300  ;;  %1553 = vst.msk [vmem:[%s2913_s29 + $0x8] sm:$0xff] %vm1551_vm1, %v2299_v15  ;;  %2320 = vtanh.f32 %v1124_v14  ;;  %v2071_v17 = vpop.f32.mrb[6].mxu0 }
  0xfa   : > { %v2167_v18 = vpop.f32.mrb[6].mxu1  ;;  %v2303_v19 = vpop.eup %2302  ;;  %1617 = vst.msk [vmem:[%s2913_s29 + $0x208] sm:$0xff] %vm1551_vm1, %v2301_v16  ;;  %2322 = vtanh.f32 %v2071_v17 }
  0xfb   : > { %v814_v20 = vpop.f32.mrb[7].mxu0  ;;  %v1134_v21 = vpop.f32.mrb[7].mxu1  ;;  %1552 = vst.msk [vmem:[%s2913_s29] sm:$0xff] %vm1551_vm1, %v2303_v19  ;;  %2324 = vtanh.f32 %v2167_v18 }
  0xfc   : > { %v2305_v22 = vpop.eup %2304  ;;  %2326 = vtanh.f32 %v814_v20 }
  0xfd   : > { %v2307_v23 = vpop.eup %2306  ;;  %1616 = vst.msk [vmem:[%s2913_s29 + $0x200] sm:$0xff] %vm1551_vm1, %v2305_v22  ;;  %2328 = vtanh.f32 %v1134_v21  ;;  %v2074_v25 = vpop.f32.mrb[8].mxu0 }
  0xfe   : > { %v2309_v24 = vpop.eup %2308  ;;  %1555 = vst.msk [vmem:[%s2913_s29 + $0x18] sm:$0xff] %vm1551_vm1, %v2307_v23  ;;  %v2170_v26 = vpop.f32.mrb[8].mxu1  ;;  %2330 = vtanh.f32 %v2074_v25 }
  0xff   : > { %v2311_v27 = vpop.eup %2310  ;;  %1619 = vst.msk [vmem:[%s2913_s29 + $0x218] sm:$0xff] %vm1551_vm1, %v2309_v24  ;;  %v824_v28 = vpop.f32.mrb[9].mxu0  ;;  %2332 = vtanh.f32 %v2170_v26 }
 0x100   : > { %v1144_v29 = vpop.f32.mrb[9].mxu1  ;;  %v2313_v30 = vpop.eup %2312  ;;  %1554 = vst.msk [vmem:[%s2913_s29 + $0x10] sm:$0xff] %vm1551_vm1, %v2311_v27  ;;  %2334 = vtanh.f32 %v824_v28 }
 0x101   : > { %v2315_v31 = vpop.eup %2314  ;;  %1618 = vst.msk [vmem:[%s2913_s29 + $0x210] sm:$0xff] %vm1551_vm1, %v2313_v30  ;;  %2336 = vtanh.f32 %v1144_v29  ;;  %v2077_v33 = vpop.f32.mrb[10].mxu0 }
 0x102   : > { %v2317_v32 = vpop.eup %2316  ;;  %1557 = vst.msk [vmem:[%s2913_s29 + $0x28] sm:$0xff] %vm1551_vm1, %v2315_v31  ;;  %v2173_v34 = vpop.f32.mrb[10].mxu1  ;;  %2338 = vtanh.f32 %v2077_v33 }
 0x103   : > { %v2319_v35 = vpop.eup %2318  ;;  %1621 = vst.msk [vmem:[%s2913_s29 + $0x228] sm:$0xff] %vm1551_vm1, %v2317_v32  ;;  %v834_v36 = vpop.f32.mrb[11].mxu0  ;;  %2340 = vtanh.f32 %v2173_v34 }
 0x104   : > { %v1154_v37 = vpop.f32.mrb[11].mxu1  ;;  %v2321_v38 = vpop.eup %2320  ;;  %1556 = vst.msk [vmem:[%s2913_s29 + $0x20] sm:$0xff] %vm1551_vm1, %v2319_v35  ;;  %2342 = vtanh.f32 %v834_v36 }
 0x105   : > { %v2323_v39 = vpop.eup %2322  ;;  %1620 = vst.msk [vmem:[%s2913_s29 + $0x220] sm:$0xff] %vm1551_vm1, %v2321_v38  ;;  %2344 = vtanh.f32 %v1154_v37  ;;  %v2080_v41 = vpop.f32.mrb[12].mxu0 }
 0x106   : > { %v2325_v40 = vpop.eup %2324  ;;  %1559 = vst.msk [vmem:[%s2913_s29 + $0x38] sm:$0xff] %vm1551_vm1, %v2323_v39  ;;  %v2176_v42 = vpop.f32.mrb[12].mxu1  ;;  %2346 = vtanh.f32 %v2080_v41 }
 0x107   : > { %v2327_v43 = vpop.eup %2326  ;;  %1623 = vst.msk [vmem:[%s2913_s29 + $0x238] sm:$0xff] %vm1551_vm1, %v2325_v40  ;;  %v844_v44 = vpop.f32.mrb[13].mxu0  ;;  %2348 = vtanh.f32 %v2176_v42 }
 0x108   : > { %v1164_v45 = vpop.f32.mrb[13].mxu1  ;;  %v2329_v46 = vpop.eup %2328  ;;  %1558 = vst.msk [vmem:[%s2913_s29 + $0x30] sm:$0xff] %vm1551_vm1, %v2327_v43  ;;  %2350 = vtanh.f32 %v844_v44 }
 0x109   : > { %v2331_v47 = vpop.eup %2330  ;;  %1622 = vst.msk [vmem:[%s2913_s29 + $0x230] sm:$0xff] %vm1551_vm1, %v2329_v46  ;;  %2352 = vtanh.f32 %v1164_v45  ;;  %v2083_v49 = vpop.f32.mrb[14].mxu0 }
 0x10a   : > { %v2333_v48 = vpop.eup %2332  ;;  %1561 = vst.msk [vmem:[%s2913_s29 + $0x48] sm:$0xff] %vm1551_vm1, %v2331_v47  ;;  %v2179_v50 = vpop.f32.mrb[14].mxu1  ;;  %2354 = vtanh.f32 %v2083_v49 }
 0x10b   : > { %v2335_v51 = vpop.eup %2334  ;;  %1625 = vst.msk [vmem:[%s2913_s29 + $0x248] sm:$0xff] %vm1551_vm1, %v2333_v48  ;;  %v854_v52 = vpop.f32.mrb[15].mxu0  ;;  %2356 = vtanh.f32 %v2179_v50 }
 0x10c   : > { %v1174_v53 = vpop.f32.mrb[15].mxu1  ;;  %v2337_v54 = vpop.eup %2336  ;;  %1560 = vst.msk [vmem:[%s2913_s29 + $0x40] sm:$0xff] %vm1551_vm1, %v2335_v51  ;;  %2358 = vtanh.f32 %v854_v52 }
 0x10d   : > { %v2339_v55 = vpop.eup %2338  ;;  %1624 = vst.msk [vmem:[%s2913_s29 + $0x240] sm:$0xff] %vm1551_vm1, %v2337_v54  ;;  %2360 = vtanh.f32 %v1174_v53  ;;  %v2086_v57 = vpop.f32.mrb[16].mxu0 }
 0x10e   : > { %v2341_v56 = vpop.eup %2340  ;;  %1563 = vst.msk [vmem:[%s2913_s29 + $0x58] sm:$0xff] %vm1551_vm1, %v2339_v55  ;;  %v2182_v58 = vpop.f32.mrb[16].mxu1  ;;  %2362 = vtanh.f32 %v2086_v57 }
 0x10f   : > { %v2343_v59 = vpop.eup %2342  ;;  %1627 = vst.msk [vmem:[%s2913_s29 + $0x258] sm:$0xff] %vm1551_vm1, %v2341_v56  ;;  %v864_v60 = vpop.f32.mrb[17].mxu0  ;;  %2364 = vtanh.f32 %v2182_v58 }
 0x110   : > { %v1184_v61 = vpop.f32.mrb[17].mxu1  ;;  %v2345_v62 = vpop.eup %2344  ;;  %1562 = vst.msk [vmem:[%s2913_s29 + $0x50] sm:$0xff] %vm1551_vm1, %v2343_v59  ;;  %2366 = vtanh.f32 %v864_v60 }
 0x111   : > { %v2347_v63 = vpop.eup %2346  ;;  %1626 = vst.msk [vmem:[%s2913_s29 + $0x250] sm:$0xff] %vm1551_vm1, %v2345_v62  ;;  %2368 = vtanh.f32 %v1184_v61  ;;  %v2089_v1 = vpop.f32.mrb[18].mxu0 }
 0x112   : > { %v2349_v0 = vpop.eup %2348  ;;  %1565 = vst.msk [vmem:[%s2913_s29 + $0x68] sm:$0xff] %vm1551_vm1, %v2347_v63  ;;  %v2185_v2 = vpop.f32.mrb[18].mxu1  ;;  %2370 = vtanh.f32 %v2089_v1 }
 0x113   : > { %v2351_v3 = vpop.eup %2350  ;;  %1629 = vst.msk [vmem:[%s2913_s29 + $0x268] sm:$0xff] %vm1551_vm1, %v2349_v0  ;;  %v874_v4 = vpop.f32.mrb[19].mxu0  ;;  %2372 = vtanh.f32 %v2185_v2 }
 0x114   : > { %v1194_v5 = vpop.f32.mrb[19].mxu1  ;;  %v2353_v6 = vpop.eup %2352  ;;  %1564 = vst.msk [vmem:[%s2913_s29 + $0x60] sm:$0xff] %vm1551_vm1, %v2351_v3  ;;  %2374 = vtanh.f32 %v874_v4 }
 0x115   : > { %v2355_v7 = vpop.eup %2354  ;;  %1628 = vst.msk [vmem:[%s2913_s29 + $0x260] sm:$0xff] %vm1551_vm1, %v2353_v6  ;;  %2376 = vtanh.f32 %v1194_v5  ;;  %v2092_v9 = vpop.f32.mrb[20].mxu0 }
 0x116   : > { %v2357_v8 = vpop.eup %2356  ;;  %1567 = vst.msk [vmem:[%s2913_s29 + $0x78] sm:$0xff] %vm1551_vm1, %v2355_v7  ;;  %v2188_v10 = vpop.f32.mrb[20].mxu1  ;;  %2378 = vtanh.f32 %v2092_v9 }
 0x117   : > { %v2359_v11 = vpop.eup %2358  ;;  %1631 = vst.msk [vmem:[%s2913_s29 + $0x278] sm:$0xff] %vm1551_vm1, %v2357_v8  ;;  %v884_v12 = vpop.f32.mrb[21].mxu0  ;;  %2380 = vtanh.f32 %v2188_v10 }
 0x118   : > { %v1204_v13 = vpop.f32.mrb[21].mxu1  ;;  %v2361_v14 = vpop.eup %2360  ;;  %1566 = vst.msk [vmem:[%s2913_s29 + $0x70] sm:$0xff] %vm1551_vm1, %v2359_v11  ;;  %2382 = vtanh.f32 %v884_v12 }
 0x119   : > { %v2363_v15 = vpop.eup %2362  ;;  %1630 = vst.msk [vmem:[%s2913_s29 + $0x270] sm:$0xff] %vm1551_vm1, %v2361_v14  ;;  %2384 = vtanh.f32 %v1204_v13  ;;  %v2095_v17 = vpop.f32.mrb[22].mxu0 }
 0x11a   : > { %v2365_v16 = vpop.eup %2364  ;;  %1569 = vst.msk [vmem:[%s2913_s29 + $0x88] sm:$0xff] %vm1551_vm1, %v2363_v15  ;;  %v2191_v18 = vpop.f32.mrb[22].mxu1  ;;  %2386 = vtanh.f32 %v2095_v17 }
 0x11b   : > { %v2367_v19 = vpop.eup %2366  ;;  %1633 = vst.msk [vmem:[%s2913_s29 + $0x288] sm:$0xff] %vm1551_vm1, %v2365_v16  ;;  %v894_v20 = vpop.f32.mrb[23].mxu0  ;;  %2388 = vtanh.f32 %v2191_v18 }
 0x11c   : > { %v1214_v21 = vpop.f32.mrb[23].mxu1  ;;  %v2369_v22 = vpop.eup %2368  ;;  %1568 = vst.msk [vmem:[%s2913_s29 + $0x80] sm:$0xff] %vm1551_vm1, %v2367_v19  ;;  %2390 = vtanh.f32 %v894_v20 }
 0x11d   : > { %v2371_v23 = vpop.eup %2370  ;;  %1632 = vst.msk [vmem:[%s2913_s29 + $0x280] sm:$0xff] %vm1551_vm1, %v2369_v22  ;;  %2392 = vtanh.f32 %v1214_v21  ;;  %v2098_v25 = vpop.f32.mrb[24].mxu0 }
 0x11e   : > { %v2373_v24 = vpop.eup %2372  ;;  %1571 = vst.msk [vmem:[%s2913_s29 + $0x98] sm:$0xff] %vm1551_vm1, %v2371_v23  ;;  %v2194_v26 = vpop.f32.mrb[24].mxu1  ;;  %2394 = vtanh.f32 %v2098_v25 }
 0x11f   : > { %v2375_v27 = vpop.eup %2374  ;;  %1635 = vst.msk [vmem:[%s2913_s29 + $0x298] sm:$0xff] %vm1551_vm1, %v2373_v24  ;;  %v904_v28 = vpop.f32.mrb[25].mxu0  ;;  %2396 = vtanh.f32 %v2194_v26 }
 0x120   : > { %v1224_v29 = vpop.f32.mrb[25].mxu1  ;;  %v2377_v30 = vpop.eup %2376  ;;  %1570 = vst.msk [vmem:[%s2913_s29 + $0x90] sm:$0xff] %vm1551_vm1, %v2375_v27  ;;  %2398 = vtanh.f32 %v904_v28 }
 0x121   : > { %v2379_v31 = vpop.eup %2378  ;;  %1634 = vst.msk [vmem:[%s2913_s29 + $0x290] sm:$0xff] %vm1551_vm1, %v2377_v30  ;;  %2400 = vtanh.f32 %v1224_v29  ;;  %v2101_v33 = vpop.f32.mrb[26].mxu0 }
 0x122   : > { %v2381_v32 = vpop.eup %2380  ;;  %1573 = vst.msk [vmem:[%s2913_s29 + $0xa8] sm:$0xff] %vm1551_vm1, %v2379_v31  ;;  %v2197_v34 = vpop.f32.mrb[26].mxu1  ;;  %2402 = vtanh.f32 %v2101_v33 }
 0x123   : > { %v2383_v35 = vpop.eup %2382  ;;  %1637 = vst.msk [vmem:[%s2913_s29 + $0x2a8] sm:$0xff] %vm1551_vm1, %v2381_v32  ;;  %v914_v36 = vpop.f32.mrb[27].mxu0  ;;  %2404 = vtanh.f32 %v2197_v34 }
 0x124   : > { %v1234_v37 = vpop.f32.mrb[27].mxu1  ;;  %v2385_v38 = vpop.eup %2384  ;;  %1572 = vst.msk [vmem:[%s2913_s29 + $0xa0] sm:$0xff] %vm1551_vm1, %v2383_v35  ;;  %2406 = vtanh.f32 %v914_v36 }
 0x125   : > { %v2387_v39 = vpop.eup %2386  ;;  %1636 = vst.msk [vmem:[%s2913_s29 + $0x2a0] sm:$0xff] %vm1551_vm1, %v2385_v38  ;;  %2408 = vtanh.f32 %v1234_v37  ;;  %v2104_v41 = vpop.f32.mrb[28].mxu0 }
 0x126   : > { %v2389_v40 = vpop.eup %2388  ;;  %1575 = vst.msk [vmem:[%s2913_s29 + $0xb8] sm:$0xff] %vm1551_vm1, %v2387_v39  ;;  %v2200_v42 = vpop.f32.mrb[28].mxu1  ;;  %2410 = vtanh.f32 %v2104_v41 }
 0x127   : > { %v2391_v43 = vpop.eup %2390  ;;  %1639 = vst.msk [vmem:[%s2913_s29 + $0x2b8] sm:$0xff] %vm1551_vm1, %v2389_v40  ;;  %v924_v44 = vpop.f32.mrb[29].mxu0  ;;  %2412 = vtanh.f32 %v2200_v42 }
 0x128   : > { %v1244_v45 = vpop.f32.mrb[29].mxu1  ;;  %v2393_v46 = vpop.eup %2392  ;;  %1574 = vst.msk [vmem:[%s2913_s29 + $0xb0] sm:$0xff] %vm1551_vm1, %v2391_v43  ;;  %2414 = vtanh.f32 %v924_v44 }
 0x129   : > { %v2395_v47 = vpop.eup %2394  ;;  %1638 = vst.msk [vmem:[%s2913_s29 + $0x2b0] sm:$0xff] %vm1551_vm1, %v2393_v46  ;;  %2416 = vtanh.f32 %v1244_v45  ;;  %v2107_v49 = vpop.f32.mrb[30].mxu0 }
 0x12a   : > { %v2397_v48 = vpop.eup %2396  ;;  %1577 = vst.msk [vmem:[%s2913_s29 + $0xc8] sm:$0xff] %vm1551_vm1, %v2395_v47  ;;  %v2203_v50 = vpop.f32.mrb[30].mxu1  ;;  %2418 = vtanh.f32 %v2107_v49 }
 0x12b   : > { %v2399_v51 = vpop.eup %2398  ;;  %1641 = vst.msk [vmem:[%s2913_s29 + $0x2c8] sm:$0xff] %vm1551_vm1, %v2397_v48  ;;  %v934_v52 = vpop.f32.mrb[31].mxu0  ;;  %2420 = vtanh.f32 %v2203_v50 }
 0x12c   : > { %v1254_v53 = vpop.f32.mrb[31].mxu1  ;;  %v2401_v54 = vpop.eup %2400  ;;  %1576 = vst.msk [vmem:[%s2913_s29 + $0xc0] sm:$0xff] %vm1551_vm1, %v2399_v51  ;;  %2422 = vtanh.f32 %v934_v52 }
 0x12d   : > { %v2403_v55 = vpop.eup %2402  ;;  %1640 = vst.msk [vmem:[%s2913_s29 + $0x2c0] sm:$0xff] %vm1551_vm1, %v2401_v54  ;;  %2424 = vtanh.f32 %v1254_v53  ;;  %v2110_v57 = vpop.f32.mrb[32].mxu0 }
 0x12e   : > { %v2405_v56 = vpop.eup %2404  ;;  %1579 = vst.msk [vmem:[%s2913_s29 + $0xd8] sm:$0xff] %vm1551_vm1, %v2403_v55  ;;  %v2206_v58 = vpop.f32.mrb[32].mxu1  ;;  %2426 = vtanh.f32 %v2110_v57 }
 0x12f   : > { %v2407_v59 = vpop.eup %2406  ;;  %1643 = vst.msk [vmem:[%s2913_s29 + $0x2d8] sm:$0xff] %vm1551_vm1, %v2405_v56  ;;  %v944_v60 = vpop.f32.mrb[33].mxu0  ;;  %2428 = vtanh.f32 %v2206_v58 }
 0x130   : > { %v1264_v61 = vpop.f32.mrb[33].mxu1  ;;  %v2409_v62 = vpop.eup %2408  ;;  %1578 = vst.msk [vmem:[%s2913_s29 + $0xd0] sm:$0xff] %vm1551_vm1, %v2407_v59  ;;  %2430 = vtanh.f32 %v944_v60 }
 0x131   : > { %v2411_v63 = vpop.eup %2410  ;;  %1642 = vst.msk [vmem:[%s2913_s29 + $0x2d0] sm:$0xff] %vm1551_vm1, %v2409_v62  ;;  %2432 = vtanh.f32 %v1264_v61  ;;  %v2113_v1 = vpop.f32.mrb[34].mxu0 }
 0x132   : > { %v2413_v0 = vpop.eup %2412  ;;  %1581 = vst.msk [vmem:[%s2913_s29 + $0xe8] sm:$0xff] %vm1551_vm1, %v2411_v63  ;;  %v2209_v2 = vpop.f32.mrb[34].mxu1  ;;  %2434 = vtanh.f32 %v2113_v1 }
 0x133   : > { %v2415_v3 = vpop.eup %2414  ;;  %1645 = vst.msk [vmem:[%s2913_s29 + $0x2e8] sm:$0xff] %vm1551_vm1, %v2413_v0  ;;  %v954_v4 = vpop.f32.mrb[35].mxu0  ;;  %2436 = vtanh.f32 %v2209_v2 }
 0x134   : > { %v1274_v5 = vpop.f32.mrb[35].mxu1  ;;  %v2417_v6 = vpop.eup %2416  ;;  %1580 = vst.msk [vmem:[%s2913_s29 + $0xe0] sm:$0xff] %vm1551_vm1, %v2415_v3  ;;  %2438 = vtanh.f32 %v954_v4 }
 0x135   : > { %v2419_v7 = vpop.eup %2418  ;;  %1644 = vst.msk [vmem:[%s2913_s29 + $0x2e0] sm:$0xff] %vm1551_vm1, %v2417_v6  ;;  %2440 = vtanh.f32 %v1274_v5  ;;  %v2116_v9 = vpop.f32.mrb[36].mxu0 }
 0x136   : > { %v2421_v8 = vpop.eup %2420  ;;  %1583 = vst.msk [vmem:[%s2913_s29 + $0xf8] sm:$0xff] %vm1551_vm1, %v2419_v7  ;;  %v2212_v10 = vpop.f32.mrb[36].mxu1  ;;  %2442 = vtanh.f32 %v2116_v9 }
 0x137   : > { %v2423_v11 = vpop.eup %2422  ;;  %1647 = vst.msk [vmem:[%s2913_s29 + $0x2f8] sm:$0xff] %vm1551_vm1, %v2421_v8  ;;  %v964_v12 = vpop.f32.mrb[37].mxu0  ;;  %2444 = vtanh.f32 %v2212_v10 }
 0x138   : > { %v1284_v13 = vpop.f32.mrb[37].mxu1  ;;  %v2425_v14 = vpop.eup %2424  ;;  %1582 = vst.msk [vmem:[%s2913_s29 + $0xf0] sm:$0xff] %vm1551_vm1, %v2423_v11  ;;  %2446 = vtanh.f32 %v964_v12 }
 0x139   : > { %v2427_v15 = vpop.eup %2426  ;;  %1646 = vst.msk [vmem:[%s2913_s29 + $0x2f0] sm:$0xff] %vm1551_vm1, %v2425_v14  ;;  %2448 = vtanh.f32 %v1284_v13  ;;  %v2119_v17 = vpop.f32.mrb[38].mxu0 }
 0x13a   : > { %v2429_v16 = vpop.eup %2428  ;;  %1585 = vst.msk [vmem:[%s2913_s29 + $0x108] sm:$0xff] %vm1551_vm1, %v2427_v15  ;;  %v2215_v18 = vpop.f32.mrb[38].mxu1  ;;  %2450 = vtanh.f32 %v2119_v17 }
 0x13b   : > { %v2431_v19 = vpop.eup %2430  ;;  %1649 = vst.msk [vmem:[%s2913_s29 + $0x308] sm:$0xff] %vm1551_vm1, %v2429_v16  ;;  %v974_v20 = vpop.f32.mrb[39].mxu0  ;;  %2452 = vtanh.f32 %v2215_v18 }
 0x13c   : > { %v1294_v21 = vpop.f32.mrb[39].mxu1  ;;  %v2433_v22 = vpop.eup %2432  ;;  %1584 = vst.msk [vmem:[%s2913_s29 + $0x100] sm:$0xff] %vm1551_vm1, %v2431_v19  ;;  %2454 = vtanh.f32 %v974_v20 }
 0x13d   : > { %v2435_v23 = vpop.eup %2434  ;;  %1648 = vst.msk [vmem:[%s2913_s29 + $0x300] sm:$0xff] %vm1551_vm1, %v2433_v22  ;;  %2456 = vtanh.f32 %v1294_v21  ;;  %v2122_v25 = vpop.f32.mrb[40].mxu0 }
 0x13e   : > { %v2437_v24 = vpop.eup %2436  ;;  %1587 = vst.msk [vmem:[%s2913_s29 + $0x118] sm:$0xff] %vm1551_vm1, %v2435_v23  ;;  %v2218_v26 = vpop.f32.mrb[40].mxu1  ;;  %2458 = vtanh.f32 %v2122_v25 }
 0x13f   : > { %v2439_v27 = vpop.eup %2438  ;;  %1651 = vst.msk [vmem:[%s2913_s29 + $0x318] sm:$0xff] %vm1551_vm1, %v2437_v24  ;;  %v984_v28 = vpop.f32.mrb[41].mxu0  ;;  %2460 = vtanh.f32 %v2218_v26 }
 0x140   : > { %v1304_v29 = vpop.f32.mrb[41].mxu1  ;;  %v2441_v30 = vpop.eup %2440  ;;  %1586 = vst.msk [vmem:[%s2913_s29 + $0x110] sm:$0xff] %vm1551_vm1, %v2439_v27  ;;  %2462 = vtanh.f32 %v984_v28 }
 0x141   : > { %v2443_v31 = vpop.eup %2442  ;;  %1650 = vst.msk [vmem:[%s2913_s29 + $0x310] sm:$0xff] %vm1551_vm1, %v2441_v30  ;;  %2464 = vtanh.f32 %v1304_v29  ;;  %v2125_v33 = vpop.f32.mrb[42].mxu0 }
 0x142   : > { %v2445_v32 = vpop.eup %2444  ;;  %1589 = vst.msk [vmem:[%s2913_s29 + $0x128] sm:$0xff] %vm1551_vm1, %v2443_v31  ;;  %v2221_v34 = vpop.f32.mrb[42].mxu1  ;;  %2466 = vtanh.f32 %v2125_v33 }
 0x143   : > { %v2447_v35 = vpop.eup %2446  ;;  %1653 = vst.msk [vmem:[%s2913_s29 + $0x328] sm:$0xff] %vm1551_vm1, %v2445_v32  ;;  %v994_v36 = vpop.f32.mrb[43].mxu0  ;;  %2468 = vtanh.f32 %v2221_v34 }
 0x144   : > { %v1314_v37 = vpop.f32.mrb[43].mxu1  ;;  %v2449_v38 = vpop.eup %2448  ;;  %1588 = vst.msk [vmem:[%s2913_s29 + $0x120] sm:$0xff] %vm1551_vm1, %v2447_v35  ;;  %2470 = vtanh.f32 %v994_v36 }
 0x145   : > { %v2451_v39 = vpop.eup %2450  ;;  %1652 = vst.msk [vmem:[%s2913_s29 + $0x320] sm:$0xff] %vm1551_vm1, %v2449_v38  ;;  %2472 = vtanh.f32 %v1314_v37  ;;  %v2128_v41 = vpop.f32.mrb[44].mxu0 }
 0x146   : > { %v2453_v40 = vpop.eup %2452  ;;  %1591 = vst.msk [vmem:[%s2913_s29 + $0x138] sm:$0xff] %vm1551_vm1, %v2451_v39  ;;  %v2224_v42 = vpop.f32.mrb[44].mxu1  ;;  %2474 = vtanh.f32 %v2128_v41 }
 0x147   : > { %v2455_v43 = vpop.eup %2454  ;;  %1655 = vst.msk [vmem:[%s2913_s29 + $0x338] sm:$0xff] %vm1551_vm1, %v2453_v40  ;;  %v1004_v44 = vpop.f32.mrb[45].mxu0  ;;  %2476 = vtanh.f32 %v2224_v42 }
 0x148   : > { %v1324_v45 = vpop.f32.mrb[45].mxu1  ;;  %v2457_v46 = vpop.eup %2456  ;;  %1590 = vst.msk [vmem:[%s2913_s29 + $0x130] sm:$0xff] %vm1551_vm1, %v2455_v43  ;;  %2478 = vtanh.f32 %v1004_v44 }
 0x149   : > { %v2459_v47 = vpop.eup %2458  ;;  %1654 = vst.msk [vmem:[%s2913_s29 + $0x330] sm:$0xff] %vm1551_vm1, %v2457_v46  ;;  %2480 = vtanh.f32 %v1324_v45  ;;  %v2131_v49 = vpop.f32.mrb[46].mxu0 }
 0x14a   : > { %v2461_v48 = vpop.eup %2460  ;;  %1593 = vst.msk [vmem:[%s2913_s29 + $0x148] sm:$0xff] %vm1551_vm1, %v2459_v47  ;;  %v2227_v50 = vpop.f32.mrb[46].mxu1  ;;  %2482 = vtanh.f32 %v2131_v49 }
 0x14b   : > { %v2463_v51 = vpop.eup %2462  ;;  %1657 = vst.msk [vmem:[%s2913_s29 + $0x348] sm:$0xff] %vm1551_vm1, %v2461_v48  ;;  %v1014_v52 = vpop.f32.mrb[47].mxu0  ;;  %2484 = vtanh.f32 %v2227_v50 }
 0x14c   : > { %v1334_v53 = vpop.f32.mrb[47].mxu1  ;;  %v2465_v54 = vpop.eup %2464  ;;  %1592 = vst.msk [vmem:[%s2913_s29 + $0x140] sm:$0xff] %vm1551_vm1, %v2463_v51  ;;  %2486 = vtanh.f32 %v1014_v52 }
 0x14d   : > { %v2467_v55 = vpop.eup %2466  ;;  %1656 = vst.msk [vmem:[%s2913_s29 + $0x340] sm:$0xff] %vm1551_vm1, %v2465_v54  ;;  %2488 = vtanh.f32 %v1334_v53  ;;  %v2134_v57 = vpop.f32.mrb[48].mxu0 }
 0x14e   : > { %v2469_v56 = vpop.eup %2468  ;;  %1595 = vst.msk [vmem:[%s2913_s29 + $0x158] sm:$0xff] %vm1551_vm1, %v2467_v55  ;;  %v2230_v58 = vpop.f32.mrb[48].mxu1  ;;  %2490 = vtanh.f32 %v2134_v57 }
 0x14f   : > { %v2471_v59 = vpop.eup %2470  ;;  %1659 = vst.msk [vmem:[%s2913_s29 + $0x358] sm:$0xff] %vm1551_vm1, %v2469_v56  ;;  %v1024_v60 = vpop.f32.mrb[49].mxu0  ;;  %2492 = vtanh.f32 %v2230_v58 }
 0x150   : > { %v1344_v61 = vpop.f32.mrb[49].mxu1  ;;  %v2473_v62 = vpop.eup %2472  ;;  %1594 = vst.msk [vmem:[%s2913_s29 + $0x150] sm:$0xff] %vm1551_vm1, %v2471_v59  ;;  %2494 = vtanh.f32 %v1024_v60 }
 0x151   : > { %v2475_v63 = vpop.eup %2474  ;;  %1658 = vst.msk [vmem:[%s2913_s29 + $0x350] sm:$0xff] %vm1551_vm1, %v2473_v62  ;;  %2496 = vtanh.f32 %v1344_v61  ;;  %v2137_v1 = vpop.f32.mrb[50].mxu0 }
 0x152   : > { %v2477_v0 = vpop.eup %2476  ;;  %1597 = vst.msk [vmem:[%s2913_s29 + $0x168] sm:$0xff] %vm1551_vm1, %v2475_v63  ;;  %v2233_v2 = vpop.f32.mrb[50].mxu1  ;;  %2498 = vtanh.f32 %v2137_v1 }
 0x153   : > { %v2479_v3 = vpop.eup %2478  ;;  %1661 = vst.msk [vmem:[%s2913_s29 + $0x368] sm:$0xff] %vm1551_vm1, %v2477_v0  ;;  %v1034_v4 = vpop.f32.mrb[51].mxu0  ;;  %2500 = vtanh.f32 %v2233_v2 }
 0x154   : > { %v1354_v5 = vpop.f32.mrb[51].mxu1  ;;  %v2481_v6 = vpop.eup %2480  ;;  %1596 = vst.msk [vmem:[%s2913_s29 + $0x160] sm:$0xff] %vm1551_vm1, %v2479_v3  ;;  %2502 = vtanh.f32 %v1034_v4 }
 0x155   : > { %v2483_v7 = vpop.eup %2482  ;;  %1660 = vst.msk [vmem:[%s2913_s29 + $0x360] sm:$0xff] %vm1551_vm1, %v2481_v6  ;;  %2504 = vtanh.f32 %v1354_v5  ;;  %v2140_v9 = vpop.f32.mrb[52].mxu0 }
 0x156   : > { %v2485_v8 = vpop.eup %2484  ;;  %1599 = vst.msk [vmem:[%s2913_s29 + $0x178] sm:$0xff] %vm1551_vm1, %v2483_v7  ;;  %v2236_v10 = vpop.f32.mrb[52].mxu1  ;;  %2506 = vtanh.f32 %v2140_v9 }
 0x157   : > { %v2487_v11 = vpop.eup %2486  ;;  %1663 = vst.msk [vmem:[%s2913_s29 + $0x378] sm:$0xff] %vm1551_vm1, %v2485_v8  ;;  %v1044_v12 = vpop.f32.mrb[53].mxu0  ;;  %2508 = vtanh.f32 %v2236_v10 }
 0x158   : > { %v1364_v13 = vpop.f32.mrb[53].mxu1  ;;  %v2489_v14 = vpop.eup %2488  ;;  %1598 = vst.msk [vmem:[%s2913_s29 + $0x170] sm:$0xff] %vm1551_vm1, %v2487_v11  ;;  %2510 = vtanh.f32 %v1044_v12 }
 0x159   : > { %v2491_v15 = vpop.eup %2490  ;;  %1662 = vst.msk [vmem:[%s2913_s29 + $0x370] sm:$0xff] %vm1551_vm1, %v2489_v14  ;;  %2512 = vtanh.f32 %v1364_v13  ;;  %v2143_v17 = vpop.f32.mrb[54].mxu0 }
 0x15a   : > { %v2493_v16 = vpop.eup %2492  ;;  %1601 = vst.msk [vmem:[%s2913_s29 + $0x188] sm:$0xff] %vm1551_vm1, %v2491_v15  ;;  %v2239_v18 = vpop.f32.mrb[54].mxu1  ;;  %2514 = vtanh.f32 %v2143_v17 }
 0x15b   : > { %v2495_v19 = vpop.eup %2494  ;;  %1665 = vst.msk [vmem:[%s2913_s29 + $0x388] sm:$0xff] %vm1551_vm1, %v2493_v16  ;;  %v1054_v20 = vpop.f32.mrb[55].mxu0  ;;  %2516 = vtanh.f32 %v2239_v18 }
 0x15c   : > { %v1374_v21 = vpop.f32.mrb[55].mxu1  ;;  %v2497_v22 = vpop.eup %2496  ;;  %1600 = vst.msk [vmem:[%s2913_s29 + $0x180] sm:$0xff] %vm1551_vm1, %v2495_v19  ;;  %2518 = vtanh.f32 %v1054_v20 }
 0x15d   : > { %v2499_v23 = vpop.eup %2498  ;;  %1664 = vst.msk [vmem:[%s2913_s29 + $0x380] sm:$0xff] %vm1551_vm1, %v2497_v22  ;;  %2520 = vtanh.f32 %v1374_v21  ;;  %v2146_v25 = vpop.f32.mrb[56].mxu0 }
 0x15e   : > { %v2501_v24 = vpop.eup %2500  ;;  %1603 = vst.msk [vmem:[%s2913_s29 + $0x198] sm:$0xff] %vm1551_vm1, %v2499_v23  ;;  %v2242_v26 = vpop.f32.mrb[56].mxu1  ;;  %2522 = vtanh.f32 %v2146_v25 }
 0x15f   : > { %v2503_v27 = vpop.eup %2502  ;;  %1667 = vst.msk [vmem:[%s2913_s29 + $0x398] sm:$0xff] %vm1551_vm1, %v2501_v24  ;;  %v1064_v28 = vpop.f32.mrb[57].mxu0  ;;  %2524 = vtanh.f32 %v2242_v26 }
 0x160   : > { %v1384_v29 = vpop.f32.mrb[57].mxu1  ;;  %v2505_v30 = vpop.eup %2504  ;;  %1602 = vst.msk [vmem:[%s2913_s29 + $0x190] sm:$0xff] %vm1551_vm1, %v2503_v27  ;;  %2526 = vtanh.f32 %v1064_v28 }
 0x161   : > { %v2507_v31 = vpop.eup %2506  ;;  %1666 = vst.msk [vmem:[%s2913_s29 + $0x390] sm:$0xff] %vm1551_vm1, %v2505_v30  ;;  %2528 = vtanh.f32 %v1384_v29  ;;  %v2149_v33 = vpop.f32.mrb[58].mxu0 }
 0x162   : > { %v2509_v32 = vpop.eup %2508  ;;  %1605 = vst.msk [vmem:[%s2913_s29 + $0x1a8] sm:$0xff] %vm1551_vm1, %v2507_v31  ;;  %v2245_v34 = vpop.f32.mrb[58].mxu1  ;;  %2530 = vtanh.f32 %v2149_v33 }
 0x163   : > { %v2511_v35 = vpop.eup %2510  ;;  %1669 = vst.msk [vmem:[%s2913_s29 + $0x3a8] sm:$0xff] %vm1551_vm1, %v2509_v32  ;;  %v1074_v36 = vpop.f32.mrb[59].mxu0  ;;  %2532 = vtanh.f32 %v2245_v34 }
 0x164   : > { %v1394_v37 = vpop.f32.mrb[59].mxu1  ;;  %v2513_v38 = vpop.eup %2512  ;;  %1604 = vst.msk [vmem:[%s2913_s29 + $0x1a0] sm:$0xff] %vm1551_vm1, %v2511_v35  ;;  %2534 = vtanh.f32 %v1074_v36 }
 0x165   : > { %v2515_v39 = vpop.eup %2514  ;;  %1668 = vst.msk [vmem:[%s2913_s29 + $0x3a0] sm:$0xff] %vm1551_vm1, %v2513_v38  ;;  %2536 = vtanh.f32 %v1394_v37  ;;  %v2152_v41 = vpop.f32.mrb[60].mxu0 }
 0x166   : > { %v2517_v40 = vpop.eup %2516  ;;  %1607 = vst.msk [vmem:[%s2913_s29 + $0x1b8] sm:$0xff] %vm1551_vm1, %v2515_v39  ;;  %v2248_v42 = vpop.f32.mrb[60].mxu1  ;;  %2538 = vtanh.f32 %v2152_v41 }
 0x167   : > { %v2519_v43 = vpop.eup %2518  ;;  %1671 = vst.msk [vmem:[%s2913_s29 + $0x3b8] sm:$0xff] %vm1551_vm1, %v2517_v40  ;;  %v1084_v44 = vpop.f32.mrb[61].mxu0  ;;  %2540 = vtanh.f32 %v2248_v42 }
 0x168   : > { %v1404_v45 = vpop.f32.mrb[61].mxu1  ;;  %v2521_v46 = vpop.eup %2520  ;;  %1606 = vst.msk [vmem:[%s2913_s29 + $0x1b0] sm:$0xff] %vm1551_vm1, %v2519_v43  ;;  %2542 = vtanh.f32 %v1084_v44 }
 0x169   : > { %v2523_v47 = vpop.eup %2522  ;;  %1670 = vst.msk [vmem:[%s2913_s29 + $0x3b0] sm:$0xff] %vm1551_vm1, %v2521_v46  ;;  %2544 = vtanh.f32 %v1404_v45  ;;  %v2155_v49 = vpop.f32.mrb[62].mxu0 }
 0x16a   : > { %v2525_v48 = vpop.eup %2524  ;;  %1609 = vst.msk [vmem:[%s2913_s29 + $0x1c8] sm:$0xff] %vm1551_vm1, %v2523_v47  ;;  %v2251_v50 = vpop.f32.mrb[62].mxu1  ;;  %2546 = vtanh.f32 %v2155_v49 }
 0x16b   : > { %v2527_v51 = vpop.eup %2526  ;;  %1673 = vst.msk [vmem:[%s2913_s29 + $0x3c8] sm:$0xff] %vm1551_vm1, %v2525_v48  ;;  %v1094_v52 = vpop.f32.mrb[63].mxu0  ;;  %2548 = vtanh.f32 %v2251_v50 }
 0x16c   : > { %v1414_v53 = vpop.f32.mrb[63].mxu1  ;;  %v2529_v54 = vpop.eup %2528  ;;  %1608 = vst.msk [vmem:[%s2913_s29 + $0x1c0] sm:$0xff] %vm1551_vm1, %v2527_v51  ;;  %2550 = vtanh.f32 %v1094_v52 }
 0x16d   : > { %v2531_v55 = vpop.eup %2530  ;;  %1672 = vst.msk [vmem:[%s2913_s29 + $0x3c0] sm:$0xff] %vm1551_vm1, %v2529_v54  ;;  %2552 = vtanh.f32 %v1414_v53 }
 0x16e   : > { %v2533_v56 = vpop.eup %2532  ;;  %1611 = vst.msk [vmem:[%s2913_s29 + $0x1d8] sm:$0xff] %vm1551_vm1, %v2531_v55 }
 0x16f   : > { %v2535_v57 = vpop.eup %2534  ;;  %1675 = vst.msk [vmem:[%s2913_s29 + $0x3d8] sm:$0xff] %vm1551_vm1, %v2533_v56 }
 0x170   : > { %v2537_v58 = vpop.eup %2536  ;;  %1610 = vst.msk [vmem:[%s2913_s29 + $0x1d0] sm:$0xff] %vm1551_vm1, %v2535_v57 }
 0x171   : > { %v2539_v59 = vpop.eup %2538  ;;  %1674 = vst.msk [vmem:[%s2913_s29 + $0x3d0] sm:$0xff] %vm1551_vm1, %v2537_v58 }
 0x172   : > { %v2541_v60 = vpop.eup %2540  ;;  %1613 = vst.msk [vmem:[%s2913_s29 + $0x1e8] sm:$0xff] %vm1551_vm1, %v2539_v59 }
 0x173   : > { %v2543_v61 = vpop.eup %2542  ;;  %1677 = vst.msk [vmem:[%s2913_s29 + $0x3e8] sm:$0xff] %vm1551_vm1, %v2541_v60 }
 0x174   : > { %v2545_v62 = vpop.eup %2544  ;;  %1612 = vst.msk [vmem:[%s2913_s29 + $0x1e0] sm:$0xff] %vm1551_vm1, %v2543_v61 }
 0x175   : > { %v2547_v63 = vpop.eup %2546  ;;  %1676 = vst.msk [vmem:[%s2913_s29 + $0x3e0] sm:$0xff] %vm1551_vm1, %v2545_v62 }
 0x176   : > { %v2549_v0 = vpop.eup %2548  ;;  %1615 = vst.msk [vmem:[%s2913_s29 + $0x1f8] sm:$0xff] %vm1551_vm1, %v2547_v63 }
 0x177   : > { %v2551_v1 = vpop.eup %2550  ;;  %1679 = vst.msk [vmem:[%s2913_s29 + $0x3f8] sm:$0xff] %vm1551_vm1, %v2549_v0 }
 0x178   : > { %v2553_v2 = vpop.eup %2552  ;;  %1614 = vst.msk [vmem:[%s2913_s29 + $0x1f0] sm:$0xff] %vm1551_vm1, %v2551_v1 }
 0x179   : > { %1678 = vst.msk [vmem:[%s2913_s29 + $0x3f0] sm:$0xff] %vm1551_vm1, %v2553_v2 }
 0x17a PF: > { %s12_s13 = sadd.s32 1, %s2592_s13   ;;  %s3189_s9 = smov %s2584_s11 }
 0x17b   : > { %p9_p7 = scmp.ge.s32.totalorder %s12_s13, 10   ;;  %s3190_s10 = smov %s2588_s12 }
 0x17c   : > { %s3191_s11 = smov %s3194_s14  ;;  %s3192_s12 = smov %s3198_s15 }
 0x17d   :  { %11 = sbr.rel (!%p9_p7) target bundleno = 3 (0x3), region = 61 }

</bundles_post_ra>
